<compile_context>
chip_gen: v6e
topology: v6e:2x2x1
jax: 0.10.0
libtpu: 0.0.40
codegen_flags: <defaults>
</compile_context>

<pallas_src>
import jax
import jax.numpy as jnp
from jax import lax
from jax.experimental import pallas as pl
from jax.experimental.pallas import tpu as pltpu


# ----------------------------------------------------------------------------
# Pallas kernels
# ----------------------------------------------------------------------------
def _conv_relu_pool_kernel(p_ref, w_ref, b_ref, o_ref):
    """Fused conv-as-matmul + bias + ReLU + 2x2 maxpool for one batch element.

    p_ref : (1, 4, P, K)  im2col patches; axis 1 = position inside 2x2 window
    w_ref : (K, Cout)     conv weights reshaped to (kh*kw*Cin, Cout)
    b_ref : (1, Cout)     bias
    o_ref : (1, P, Cout)  pooled activations (P = pooled H * pooled W)
    """
    n_win = p_ref.shape[1]
    w = w_ref[...]
    # maxpool(relu(conv + b)) == relu(max_j(conv_j) + b)  (relu monotone,
    # bias constant across the pool window), so take the max over the four
    # window positions first and apply bias/ReLU once.
    m = jnp.dot(p_ref[0, 0], w, preferred_element_type=jnp.float32)
    for j in range(1, n_win):
        m = jnp.maximum(
            m, jnp.dot(p_ref[0, j], w, preferred_element_type=jnp.float32))
    o_ref[0] = jnp.maximum(m + b_ref[...], 0.0)


def _fc_relu_kernel(x_ref, w_ref, b_ref, o_ref):
    """relu(x @ w + b);  x:(B,K)  w:(K,N)  b:(1,N)  o:(B,N)."""
    y = jnp.dot(x_ref[...], w_ref[...], preferred_element_type=jnp.float32)
    o_ref[...] = jnp.maximum(y + b_ref[...], 0.0)


# ----------------------------------------------------------------------------
# pallas_call wrappers
# ----------------------------------------------------------------------------
def _conv_relu_pool(patches, w, b):
    """patches: (B, 4, P, K), w: (K, Cout), b: (1, Cout) -> (B, P, Cout)."""
    B, J, P, K = patches.shape
    c_out = w.shape[1]
    return pl.pallas_call(
        _conv_relu_pool_kernel,
        out_shape=jax.ShapeDtypeStruct((B, P, c_out), jnp.float32),
        grid_spec=pltpu.PrefetchScalarGridSpec(
            num_scalar_prefetch=0,
            grid=(B,),
            in_specs=[
                pl.BlockSpec((1, J, P, K), lambda bi: (bi, 0, 0, 0)),
                pl.BlockSpec((K, c_out), lambda bi: (0, 0)),   # VMEM-resident weights
                pl.BlockSpec((1, c_out), lambda bi: (0, 0)),   # VMEM-resident bias
            ],
            out_specs=pl.BlockSpec((1, P, c_out), lambda bi: (bi, 0, 0)),
        ),
        compiler_params=pltpu.CompilerParams(
            dimension_semantics=("parallel",)),  # batch axis -> both v7x TCs
    )(patches, w, b)


def _fc_relu(x, w, b):
    """x: (B, K), w: (K, N), b: (1, N) -> relu(x @ w + b): (B, N)."""
    B = x.shape[0]
    N = w.shape[1]
    # Whole-problem block: x (B,3136) + w (3136,128) are ~1.6 MiB of f32,
    # far below VMEM limits on v5e/v6e/v7x.
    # TODO(synk): for very large B, tile the batch with a grid here as well.
    return pl.pallas_call(
        _fc_relu_kernel,
        out_shape=jax.ShapeDtypeStruct((B, N), jnp.float32),
        in_specs=[pl.BlockSpec(memory_space=pltpu.MemorySpace.VMEM)] * 3,
        out_specs=pl.BlockSpec(memory_space=pltpu.MemorySpace.VMEM),
    )(x, w, b)


# ----------------------------------------------------------------------------
# Host-side layout helpers (pure data movement, no arithmetic)
# ----------------------------------------------------------------------------
def _im2col_pool_patches(x_nhwc, k=3, pad=1, pool=2):
    """(B, H, W, C) -> (B, pool*pool, (H//pool)*(W//pool), k*k*C).

    Axis 1 enumerates the (jy, jx) position inside each 2x2 pooling window;
    axis 2 enumerates pooled output positions; axis 3 is the flattened
    (dy, dx, ci) conv tap, matching the weight reshape below.
    """
    B, H, W, C = x_nhwc.shape
    xp = jnp.pad(x_nhwc, ((0, 0), (pad, pad), (pad, pad), (0, 0)))
    taps = [xp[:, dy:dy + H, dx:dx + W, :] for dy in range(k) for dx in range(k)]
    patches = jnp.concatenate(taps, axis=-1)                 # (B, H, W, k*k*C)
    Ho, Wo = H // pool, W // pool
    patches = patches.reshape(B, Ho, pool, Wo, pool, k * k * C)
    patches = patches.transpose(0, 2, 4, 1, 3, 5)            # (B, jy, jx, Ho, Wo, kkC)
    return patches.reshape(B, pool * pool, Ho * Wo, k * k * C)


def _reorder_conv_weight(w_oihw):
    """PyTorch OIHW conv weight -> (kh*kw*Cin, Cout), tap order (dy, dx, ci)."""
    co, ci, kh, kw = w_oihw.shape
    return jnp.transpose(w_oihw, (2, 3, 1, 0)).reshape(kh * kw * ci, co)


# ----------------------------------------------------------------------------
# Full forward pass (PyTorch semantics)
# ----------------------------------------------------------------------------
def conv_feature_extractor(x, params):
    """x: (B, Cin, 28, 28) NCHW -> (B, 128) features."""
    w1, b1, w2, b2, wfc, bfc = params
    B, cin, H, W = x.shape
    c1, c2 = w1.shape[0], w2.shape[0]

    x_nhwc = jnp.transpose(x, (0, 2, 3, 1))                        # (B, H, W, Cin)

    # stage 1: relu(conv1) + maxpool2  -> (B, (H/2)*(W/2), 32)
    p1 = _im2col_pool_patches(x_nhwc)
    h1 = _conv_relu_pool(p1, _reorder_conv_weight(w1), b1.reshape(1, -1))

    # stage 2: relu(conv2) + maxpool2  -> (B, (H/4)*(W/4), 64)
    h1_nhwc = h1.reshape(B, H // 2, W // 2, c1)
    p2 = _im2col_pool_patches(h1_nhwc)
    h2 = _conv_relu_pool(p2, _reorder_conv_weight(w2), b2.reshape(1, -1))

    # stage 3: flatten in PyTorch NCHW order (c*49 + h*7 + w), then relu(fc1)
    flat = jnp.transpose(h2, (0, 2, 1)).reshape(B, c2 * (H // 4) * (W // 4))
    return _fc_relu(flat, jnp.transpose(wfc), bfc.reshape(1, -1))


# ----------------------------------------------------------------------------
# Pure-JAX reference (mirrors the PyTorch module exactly)
# ----------------------------------------------------------------------------
def _ref_forward(x, w1, b1, w2, b2, wfc, bfc):
    def conv(y, w):
        return lax.conv_general_dilated(
            y, w, window_strides=(1, 1), padding=((1, 1), (1, 1)),
            dimension_numbers=("NCHW", "OIHW", "NCHW"),
            precision=lax.Precision.HIGHEST)

    def pool2(y):
        b, c, h, w_ = y.shape
        return y.reshape(b, c, h // 2, 2, w_ // 2, 2).max(axis=(3, 5))

    y = pool2(jax.nn.relu(conv(x, w1) + b1[None, :, None, None]))
    y = pool2(jax.nn.relu(conv(y, w2) + b2[None, :, None, None]))
    y = y.reshape(x.shape[0], -1)
    return jax.nn.relu(
        jnp.dot(y, wfc.T, precision=lax.Precision.HIGHEST) + bfc)


if __name__ == "__main__":
    key = jax.random.PRNGKey(0)
    k = jax.random.split(key, 7)
    # fc1 expects 64*7*7, which implies 28x28 inputs (MNIST-like).
    B, Cin, H, W, F = 2, 1, 28, 28, 128

    x = jax.random.normal(k[0], (B, Cin, H, W), jnp.float32)
    w1 = jax.random.normal(k[1], (32, Cin, 3, 3), jnp.float32) * 0.2
    b1 = jax.random.normal(k[2], (32,), jnp.float32) * 0.1
    w2 = jax.random.normal(k[3], (64, 32, 3, 3), jnp.float32) * 0.05
    b2 = jax.random.normal(k[4], (64,), jnp.float32) * 0.1
    wfc = jax.random.normal(k[5], (F, 64 * 7 * 7), jnp.float32) * 0.02
    bfc = jax.random.normal(k[6], (F,), jnp.float32) * 0.1
    params = (w1, b1, w2, b2, wfc, bfc)

    fwd = jax.jit(conv_feature_extractor)
    out = fwd(x, params)
    jax.block_until_ready(out)

    ref = _ref_forward(x, *params)
    assert out.shape == (B, F), out.shape
    max_err = float(jnp.max(jnp.abs(out - ref)))
    assert jnp.allclose(out, ref, atol=3e-3, rtol=3e-3), max_err

    print("KERNEL_OK")
</pallas_src>

<mosaic_0001>
module attributes {stable_mosaic.version = 11 : i64} {
  func.func @_conv_relu_pool_kernel(%arg0: i32, %arg1: memref<1x4x196x9xf32, #tpu.memory_space<vmem>>, %arg2: memref<9x32xf32, #tpu.memory_space<vmem>>, %arg3: memref<1x32xf32, #tpu.memory_space<vmem>>, %arg4: memref<1x196x32xf32, #tpu.memory_space<vmem>>) attributes {dimension_semantics = [#tpu.dimension_semantics<parallel>], iteration_bounds = array<i64: 2>, scalar_prefetch = 0 : i64, scratch_operands = 0 : i64, tpu.core_type = #tpu.core_type<tc>, window_params = [{transform_indices = @transform_0, window_bounds = array<i64: 1, 4, 196, 9>}, {pipeline_mode = #tpu.pipeline_mode<synchronous>, transform_indices = @transform_1, window_bounds = array<i64: 9, 32>}, {pipeline_mode = #tpu.pipeline_mode<synchronous>, transform_indices = @transform_2, window_bounds = array<i64: 1, 32>}, {transform_indices = @transform_3, window_bounds = array<i64: 1, 196, 32>}]} {
    %c0 = arith.constant 0 : index
    %c0_0 = arith.constant 0 : index
    %0 = vector.load %arg2[%c0, %c0_0] : memref<9x32xf32, #tpu.memory_space<vmem>>, vector<9x32xf32>
    %c0_1 = arith.constant 0 : index
    %c0_2 = arith.constant 0 : index
    %c0_3 = arith.constant 0 : index
    %c0_4 = arith.constant 0 : index
    %1 = vector.load %arg1[%c0_1, %c0_2, %c0_3, %c0_4] : memref<1x4x196x9xf32, #tpu.memory_space<vmem>>, vector<1x1x196x9xf32>
    %2 = vector.shape_cast %1 : vector<1x1x196x9xf32> to vector<196x9xf32>
    %cst = arith.constant dense<0.000000e+00> : vector<196x32xf32>
    %3 = tpu.matmul %2, %0, %cst {dimension_numbers = #tpu.dot_dimension_numbers<[1], [0], [0], [1], [0, 0, 1, 1], [], []>} : vector<196x9xf32>, vector<9x32xf32>, vector<196x32xf32> -> vector<196x32xf32>
    %c0_5 = arith.constant 0 : index
    %c1 = arith.constant 1 : index
    %c0_6 = arith.constant 0 : index
    %c0_7 = arith.constant 0 : index
    %4 = vector.load %arg1[%c0_5, %c1, %c0_6, %c0_7] : memref<1x4x196x9xf32, #tpu.memory_space<vmem>>, vector<1x1x196x9xf32>
    %5 = vector.shape_cast %4 : vector<1x1x196x9xf32> to vector<196x9xf32>
    %cst_8 = arith.constant dense<0.000000e+00> : vector<196x32xf32>
    %6 = tpu.matmul %5, %0, %cst_8 {dimension_numbers = #tpu.dot_dimension_numbers<[1], [0], [0], [1], [0, 0, 1, 1], [], []>} : vector<196x9xf32>, vector<9x32xf32>, vector<196x32xf32> -> vector<196x32xf32>
    %7 = arith.maximumf %3, %6 : vector<196x32xf32>
    %c0_9 = arith.constant 0 : index
    %c2 = arith.constant 2 : index
    %c0_10 = arith.constant 0 : index
    %c0_11 = arith.constant 0 : index
    %8 = vector.load %arg1[%c0_9, %c2, %c0_10, %c0_11] : memref<1x4x196x9xf32, #tpu.memory_space<vmem>>, vector<1x1x196x9xf32>
    %9 = vector.shape_cast %8 : vector<1x1x196x9xf32> to vector<196x9xf32>
    %cst_12 = arith.constant dense<0.000000e+00> : vector<196x32xf32>
    %10 = tpu.matmul %9, %0, %cst_12 {dimension_numbers = #tpu.dot_dimension_numbers<[1], [0], [0], [1], [0, 0, 1, 1], [], []>} : vector<196x9xf32>, vector<9x32xf32>, vector<196x32xf32> -> vector<196x32xf32>
    %11 = arith.maximumf %7, %10 : vector<196x32xf32>
    %c0_13 = arith.constant 0 : index
    %c3 = arith.constant 3 : index
    %c0_14 = arith.constant 0 : index
    %c0_15 = arith.constant 0 : index
    %12 = vector.load %arg1[%c0_13, %c3, %c0_14, %c0_15] : memref<1x4x196x9xf32, #tpu.memory_space<vmem>>, vector<1x1x196x9xf32>
    %13 = vector.shape_cast %12 : vector<1x1x196x9xf32> to vector<196x9xf32>
    %cst_16 = arith.constant dense<0.000000e+00> : vector<196x32xf32>
    %14 = tpu.matmul %13, %0, %cst_16 {dimension_numbers = #tpu.dot_dimension_numbers<[1], [0], [0], [1], [0, 0, 1, 1], [], []>} : vector<196x9xf32>, vector<9x32xf32>, vector<196x32xf32> -> vector<196x32xf32>
    %15 = arith.maximumf %11, %14 : vector<196x32xf32>
    %c0_17 = arith.constant 0 : index
    %c0_18 = arith.constant 0 : index
    %16 = vector.load %arg3[%c0_17, %c0_18] : memref<1x32xf32, #tpu.memory_space<vmem>>, vector<1x32xf32>
    %17 = vector.broadcast %16 : vector<1x32xf32> to vector<196x32xf32>
    %18 = arith.addf %15, %17 : vector<196x32xf32>
    %cst_19 = arith.constant 0.000000e+00 : f32
    %19 = vector.broadcast %cst_19 : f32 to vector<196x32xf32>
    %20 = arith.maximumf %18, %19 : vector<196x32xf32>
    %c0_20 = arith.constant 0 : index
    %c0_21 = arith.constant 0 : index
    %c0_22 = arith.constant 0 : index
    %21 = vector.load %arg4[%c0_20, %c0_21, %c0_22] : memref<1x196x32xf32, #tpu.memory_space<vmem>>, vector<1x196x32xf32>
    %22 = vector.shape_cast %21 : vector<1x196x32xf32> to vector<196x32xf32>
    %23 = vector.shape_cast %20 : vector<196x32xf32> to vector<1x196x32xf32>
    tpu.vector_store %arg4[%c0_20, %c0_21, %c0_22], %23 {strides = array<i32>} : memref<1x196x32xf32, #tpu.memory_space<vmem>>, vector<1x196x32xf32>,
    return
  }
  func.func @transform_0(%arg0: i32) -> (i32, i32, i32, i32) {
    %c0_i32 = arith.constant 0 : i32
    %c0_i32_0 = arith.constant 0 : i32
    %c0_i32_1 = arith.constant 0 : i32
    %c0_i32_2 = arith.constant 0 : i32
    return %arg0, %c0_i32, %c0_i32_0, %c0_i32_1 : i32, i32, i32, i32
  }
  func.func @transform_1(%arg0: i32) -> (i32, i32) {
    %c0_i32 = arith.constant 0 : i32
    %c0_i32_0 = arith.constant 0 : i32
    %c0_i32_1 = arith.constant 0 : i32
    return %c0_i32, %c0_i32_0 : i32, i32
  }
  func.func @transform_2(%arg0: i32) -> (i32, i32) {
    %c0_i32 = arith.constant 0 : i32
    %c0_i32_0 = arith.constant 0 : i32
    %c0_i32_1 = arith.constant 0 : i32
    return %c0_i32, %c0_i32_0 : i32, i32
  }
  func.func @transform_3(%arg0: i32) -> (i32, i32, i32) {
    %c0_i32 = arith.constant 0 : i32
    %c0_i32_0 = arith.constant 0 : i32
    %c0_i32_1 = arith.constant 0 : i32
    return %arg0, %c0_i32, %c0_i32_0 : i32, i32, i32
  }
}

module attributes {stable_mosaic.version = 11 : i64} {
  func.func @_conv_relu_pool_kernel(%arg0: i32, %arg1: memref<1x4x49x288xf32, #tpu.memory_space<vmem>>, %arg2: memref<288x64xf32, #tpu.memory_space<vmem>>, %arg3: memref<1x64xf32, #tpu.memory_space<vmem>>, %arg4: memref<1x49x64xf32, #tpu.memory_space<vmem>>) attributes {dimension_semantics = [#tpu.dimension_semantics<parallel>], iteration_bounds = array<i64: 2>, scalar_prefetch = 0 : i64, scratch_operands = 0 : i64, tpu.core_type = #tpu.core_type<tc>, window_params = [{transform_indices = @transform_0, window_bounds = array<i64: 1, 4, 49, 288>}, {pipeline_mode = #tpu.pipeline_mode<synchronous>, transform_indices = @transform_1, window_bounds = array<i64: 288, 64>}, {pipeline_mode = #tpu.pipeline_mode<synchronous>, transform_indices = @transform_2, window_bounds = array<i64: 1, 64>}, {transform_indices = @transform_3, window_bounds = array<i64: 1, 49, 64>}]} {
    %c0 = arith.constant 0 : index
    %c0_0 = arith.constant 0 : index
    %0 = vector.load %arg2[%c0, %c0_0] : memref<288x64xf32, #tpu.memory_space<vmem>>, vector<288x64xf32>
    %c0_1 = arith.constant 0 : index
    %c0_2 = arith.constant 0 : index
    %c0_3 = arith.constant 0 : index
    %c0_4 = arith.constant 0 : index
    %1 = vector.load %arg1[%c0_1, %c0_2, %c0_3, %c0_4] : memref<1x4x49x288xf32, #tpu.memory_space<vmem>>, vector<1x1x49x288xf32>
    %2 = vector.shape_cast %1 : vector<1x1x49x288xf32> to vector<49x288xf32>
    %cst = arith.constant dense<0.000000e+00> : vector<49x64xf32>
    %3 = tpu.matmul %2, %0, %cst {dimension_numbers = #tpu.dot_dimension_numbers<[1], [0], [0], [1], [0, 0, 1, 1], [], []>} : vector<49x288xf32>, vector<288x64xf32>, vector<49x64xf32> -> vector<49x64xf32>
    %c0_5 = arith.constant 0 : index
    %c1 = arith.constant 1 : index
    %c0_6 = arith.constant 0 : index
    %c0_7 = arith.constant 0 : index
    %4 = vector.load %arg1[%c0_5, %c1, %c0_6, %c0_7] : memref<1x4x49x288xf32, #tpu.memory_space<vmem>>, vector<1x1x49x288xf32>
    %5 = vector.shape_cast %4 : vector<1x1x49x288xf32> to vector<49x288xf32>
    %cst_8 = arith.constant dense<0.000000e+00> : vector<49x64xf32>
    %6 = tpu.matmul %5, %0, %cst_8 {dimension_numbers = #tpu.dot_dimension_numbers<[1], [0], [0], [1], [0, 0, 1, 1], [], []>} : vector<49x288xf32>, vector<288x64xf32>, vector<49x64xf32> -> vector<49x64xf32>
    %7 = arith.maximumf %3, %6 : vector<49x64xf32>
    %c0_9 = arith.constant 0 : index
    %c2 = arith.constant 2 : index
    %c0_10 = arith.constant 0 : index
    %c0_11 = arith.constant 0 : index
    %8 = vector.load %arg1[%c0_9, %c2, %c0_10, %c0_11] : memref<1x4x49x288xf32, #tpu.memory_space<vmem>>, vector<1x1x49x288xf32>
    %9 = vector.shape_cast %8 : vector<1x1x49x288xf32> to vector<49x288xf32>
    %cst_12 = arith.constant dense<0.000000e+00> : vector<49x64xf32>
    %10 = tpu.matmul %9, %0, %cst_12 {dimension_numbers = #tpu.dot_dimension_numbers<[1], [0], [0], [1], [0, 0, 1, 1], [], []>} : vector<49x288xf32>, vector<288x64xf32>, vector<49x64xf32> -> vector<49x64xf32>
    %11 = arith.maximumf %7, %10 : vector<49x64xf32>
    %c0_13 = arith.constant 0 : index
    %c3 = arith.constant 3 : index
    %c0_14 = arith.constant 0 : index
    %c0_15 = arith.constant 0 : index
    %12 = vector.load %arg1[%c0_13, %c3, %c0_14, %c0_15] : memref<1x4x49x288xf32, #tpu.memory_space<vmem>>, vector<1x1x49x288xf32>
    %13 = vector.shape_cast %12 : vector<1x1x49x288xf32> to vector<49x288xf32>
    %cst_16 = arith.constant dense<0.000000e+00> : vector<49x64xf32>
    %14 = tpu.matmul %13, %0, %cst_16 {dimension_numbers = #tpu.dot_dimension_numbers<[1], [0], [0], [1], [0, 0, 1, 1], [], []>} : vector<49x288xf32>, vector<288x64xf32>, vector<49x64xf32> -> vector<49x64xf32>
    %15 = arith.maximumf %11, %14 : vector<49x64xf32>
    %c0_17 = arith.constant 0 : index
    %c0_18 = arith.constant 0 : index
    %16 = vector.load %arg3[%c0_17, %c0_18] : memref<1x64xf32, #tpu.memory_space<vmem>>, vector<1x64xf32>
    %17 = vector.broadcast %16 : vector<1x64xf32> to vector<49x64xf32>
    %18 = arith.addf %15, %17 : vector<49x64xf32>
    %cst_19 = arith.constant 0.000000e+00 : f32
    %19 = vector.broadcast %cst_19 : f32 to vector<49x64xf32>
    %20 = arith.maximumf %18, %19 : vector<49x64xf32>
    %c0_20 = arith.constant 0 : index
    %c0_21 = arith.constant 0 : index
    %c0_22 = arith.constant 0 : index
    %21 = vector.load %arg4[%c0_20, %c0_21, %c0_22] : memref<1x49x64xf32, #tpu.memory_space<vmem>>, vector<1x49x64xf32>
    %22 = vector.shape_cast %21 : vector<1x49x64xf32> to vector<49x64xf32>
    %23 = vector.shape_cast %20 : vector<49x64xf32> to vector<1x49x64xf32>
    tpu.vector_store %arg4[%c0_20, %c0_21, %c0_22], %23 {strides = array<i32>} : memref<1x49x64xf32, #tpu.memory_space<vmem>>, vector<1x49x64xf32>,
    return
  }
  func.func @transform_0(%arg0: i32) -> (i32, i32, i32, i32) {
    %c0_i32 = arith.constant 0 : i32
    %c0_i32_0 = arith.constant 0 : i32
    %c0_i32_1 = arith.constant 0 : i32
    %c0_i32_2 = arith.constant 0 : i32
    return %arg0, %c0_i32, %c0_i32_0, %c0_i32_1 : i32, i32, i32, i32
  }
  func.func @transform_1(%arg0: i32) -> (i32, i32) {
    %c0_i32 = arith.constant 0 : i32
    %c0_i32_0 = arith.constant 0 : i32
    %c0_i32_1 = arith.constant 0 : i32
    return %c0_i32, %c0_i32_0 : i32, i32
  }
  func.func @transform_2(%arg0: i32) -> (i32, i32) {
    %c0_i32 = arith.constant 0 : i32
    %c0_i32_0 = arith.constant 0 : i32
    %c0_i32_1 = arith.constant 0 : i32
    return %c0_i32, %c0_i32_0 : i32, i32
  }
  func.func @transform_3(%arg0: i32) -> (i32, i32, i32) {
    %c0_i32 = arith.constant 0 : i32
    %c0_i32_0 = arith.constant 0 : i32
    %c0_i32_1 = arith.constant 0 : i32
    return %arg0, %c0_i32, %c0_i32_0 : i32, i32, i32
  }
}

module attributes {stable_mosaic.version = 11 : i64} {
  func.func @_fc_relu_kernel(%arg0: memref<2x3136xf32, #tpu.memory_space<vmem>>, %arg1: memref<3136x128xf32, #tpu.memory_space<vmem>>, %arg2: memref<1x128xf32, #tpu.memory_space<vmem>>, %arg3: memref<2x128xf32, #tpu.memory_space<vmem>>) attributes {dimension_semantics = [], scalar_prefetch = 0 : i64, scratch_operands = 0 : i64, tpu.core_type = #tpu.core_type<tc>} {
    %c0 = arith.constant 0 : index
    %c0_0 = arith.constant 0 : index
    %0 = vector.load %arg0[%c0, %c0_0] : memref<2x3136xf32, #tpu.memory_space<vmem>>, vector<2x3136xf32>
    %c0_1 = arith.constant 0 : index
    %c0_2 = arith.constant 0 : index
    %1 = vector.load %arg1[%c0_1, %c0_2] : memref<3136x128xf32, #tpu.memory_space<vmem>>, vector<3136x128xf32>
    %cst = arith.constant dense<0.000000e+00> : vector<2x128xf32>
    %2 = tpu.matmul %0, %1, %cst {dimension_numbers = #tpu.dot_dimension_numbers<[1], [0], [0], [1], [0, 0, 1, 1], [], []>} : vector<2x3136xf32>, vector<3136x128xf32>, vector<2x128xf32> -> vector<2x128xf32>
    %c0_3 = arith.constant 0 : index
    %c0_4 = arith.constant 0 : index
    %3 = vector.load %arg2[%c0_3, %c0_4] : memref<1x128xf32, #tpu.memory_space<vmem>>, vector<1x128xf32>
    %4 = vector.broadcast %3 : vector<1x128xf32> to vector<2x128xf32>
    %5 = arith.addf %2, %4 : vector<2x128xf32>
    %cst_5 = arith.constant 0.000000e+00 : f32
    %6 = vector.broadcast %cst_5 : f32 to vector<2x128xf32>
    %7 = arith.maximumf %5, %6 : vector<2x128xf32>
    %c0_6 = arith.constant 0 : index
    %c0_7 = arith.constant 0 : index
    %8 = vector.load %arg3[%c0_6, %c0_7] : memref<2x128xf32, #tpu.memory_space<vmem>>, vector<2x128xf32>
    tpu.vector_store %arg3[%c0_6, %c0_7], %7 {strides = array<i32>} : memref<2x128xf32, #tpu.memory_space<vmem>>, vector<2x128xf32>,
    return
  }
}

</mosaic_0001>

<bundles_post_ra>
// kernel: conv_feature_extractor.3
= control target key start
LH: loop header
LB: loop body
LE: loop exit
PB: predicated region body
PF: predicated region fallthrough
CT: control target
= control target key end

     0   :  { %s2210_s12 = smov 0   ;;  %s2957_s0 = inlined_call_operand.vmem [shape: f32[2,4,196,9], index: 0, kind: input, shape index: {}]   ;;  %s2958_s1 = inlined_call_operand.vmem [shape: f32[9,32], index: 1, kind: input, shape index: {}]   ;;  %s2959_s2 = inlined_call_operand.vmem [shape: f32[1,32], index: 2, kind: input, shape index: {}]   ;;  %s2960_s3 = inlined_call_operand.vmem [shape: f32[2,196,32], index: 3, kind: output, shape index: {}]  }
   0x1 LB: > { %s1555_s13 = sadd.s32 4294967295, %s2186_s12   ;;  %p1559_p0 = scmp.ge.s32.totalorder %s2186_s12, 1  ;;  %s2186_s12 = sphi %s2210_s12, %s13_s12  }
   0x2   : > { %p137_p1 = scmp.lt.s32.totalorder %s2186_s12, 3 }
   0x4   : > { %p138_p2 = pnand %p1559_p0, %p137_p1 }
   0x5   : > { %p161_p3 = scmp.lt.s32.totalorder (!%p138_p2), %s1555_s13, 1 }
   0x6   : > { %141 = sbr.rel (%p138_p2) target bundleno = 416 (0x1a0), region = 32 }
   0xb   : > { %v172_v0 = vld [vmem:[%s2958_s1 + $0x8] sm:$0x1]  ;;  %vm274_vm0 = vcmask 1040384   ;;  %v2188_v1 = vmov 0.0   ;;  %v171_v2 = vld [vmem:[%s2958_s1] sm:$0xff]  ;;  %s2985_s13 = smov (!%p161_p3, %s1555_s13), 1 }
   0xc   : > { %1852 = vmatprep.subr.mxu0 %v2188_v1  ;;  %1931 = vmatprep.subr.mxu1 %v2188_v1  ;;  %vm2189_vm1 = vmmov 0   ;;  %s2168_s18 = smul.u32 800, %s2985_s13  ;;  %vm198_vm2 = vcmask 72704   ;;  %vm1473_vm3 = vcmask 261120   ;;  %vm1498_vm4 = vcmask 257024  }
   0xd   : > { %1853 = vmatpush3.msk.msra.mxu0 %vm274_vm0, %v172_v0  ;;  %1932 = vmatpush3.msk.msra.mxu1 %vm274_vm0, %v172_v0  ;;  %s2169_s22 = smul.u32 200, %s2985_s13 }
   0xe   : > { %1854 = vmatprep.subr.mxu0 %v2188_v1  ;;  %1933 = vmatprep.subr.mxu1 %v2188_v1  ;;  %s2242_s21 = scalar_lea.vmem %s2957_s0, %s2168_s18 }
   0xf   : > { %1855 = vmatpush3.msra.mxu0 %v171_v2  ;;  %1856 = vmatprep.mubr.msk.f32.mxu0 %vm2189_vm1, %v2188_v1  ;;  %v173_v3 = vld [vmem:[%s2242_s21] sm:$0xff]  ;;  %v1588_v4 = vld [vmem:[%s2242_s21 + $0xc8] sm:$0xff]  ;;  %v1589_v6 = vld [vmem:[%s2242_s21 + $0xd0] sm:$0xff]  ;;  %s2810_s27 = scalar_lea.vmem %s2960_s3, %s2169_s22 }
  0x10   : > { %1934 = vmatpush3.msra.mxu1 %v171_v2  ;;  %1935 = vmatprep.mubr.msk.f32.mxu1 %vm2189_vm1, %v2188_v1  ;;  %v174_v5 = vld [vmem:[%s2242_s21 + $0x8] sm:$0xff]  ;;  %v175_v7 = vld [vmem:[%s2242_s21 + $0x10] sm:$0xff]  ;;  %v1590_v8 = vld [vmem:[%s2242_s21 + $0xd8] sm:$0xff] }
  0x11   : > { %2010 = vmatprep.subr.mxu0 %v2188_v1  ;;  %2089 = vmatprep.subr.mxu1 %v2188_v1  ;;  %v176_v9 = vld [vmem:[%s2242_s21 + $0x18] sm:$0xff]  ;;  %v1591_v10 = vld [vmem:[%s2242_s21 + $0xe0] sm:$0xff]  ;;  %v1592_v12 = vld [vmem:[%s2242_s21 + $0xe8] sm:$0xff] }
  0x12   : > { %1857 = vmatmul.mubr.msk.f32.vlgmr.msra.gmra.mxu0 %vm198_vm2, %v173_v3  ;;  %1936 = vmatmul.mubr.msk.f32.vlgmr.msra.gmra.mxu1 %vm198_vm2, %v1588_v4  ;;  %v177_v11 = vld [vmem:[%s2242_s21 + $0x20] sm:$0xff]  ;;  %v178_v13 = vld [vmem:[%s2242_s21 + $0x28] sm:$0xff]  ;;  %v1593_v14 = vld [vmem:[%s2242_s21 + $0xf0] sm:$0xff] }
  0x13   : > { %2011 = vmatpush3.msk.msra.mxu0 %vm274_vm0, %v172_v0  ;;  %2090 = vmatpush3.msk.msra.mxu1 %vm274_vm0, %v172_v0  ;;  %v179_v15 = vld [vmem:[%s2242_s21 + $0x30] sm:$0xff]  ;;  %v1594_v16 = vld [vmem:[%s2242_s21 + $0xf8] sm:$0xff]  ;;  %v1595_v18 = vld [vmem:[%s2242_s21 + $0x100] sm:$0xff] }
  0x14   : > { %1859 = vmatprep.mubr.msk.f32.mxu0 %vm2189_vm1, %v2188_v1  ;;  %1938 = vmatprep.mubr.msk.f32.mxu1 %vm2189_vm1, %v2188_v1  ;;  %v180_v17 = vld [vmem:[%s2242_s21 + $0x38] sm:$0xff]  ;;  %v181_v19 = vld [vmem:[%s2242_s21 + $0x40] sm:$0xff]  ;;  %v1596_v20 = vld [vmem:[%s2242_s21 + $0x108] sm:$0xff] }
  0x15   : > { %2012 = vmatprep.subr.mxu0 %v2188_v1  ;;  %2091 = vmatprep.subr.mxu1 %v2188_v1  ;;  %v182_v21 = vld [vmem:[%s2242_s21 + $0x48] sm:$0xff]  ;;  %v1597_v22 = vld [vmem:[%s2242_s21 + $0x110] sm:$0xff]  ;;  %v1598_v24 = vld [vmem:[%s2242_s21 + $0x118] sm:$0xff] }
  0x16   : > { %1860 = vmatmul.mubr.msk.f32.gmra.mxu0 %vm198_vm2, %v174_v5  ;;  %1939 = vmatmul.mubr.msk.f32.gmra.mxu1 %vm198_vm2, %v1589_v6  ;;  %v183_v23 = vld [vmem:[%s2242_s21 + $0x50] sm:$0xff]  ;;  %v184_v25 = vld [vmem:[%s2242_s21 + $0x58] sm:$0xff]  ;;  %v1599_v26 = vld [vmem:[%s2242_s21 + $0x120] sm:$0xff] }
  0x17   : > { %1862 = vmatprep.mubr.msk.f32.mxu0 %vm2189_vm1, %v2188_v1  ;;  %1941 = vmatprep.mubr.msk.f32.mxu1 %vm2189_vm1, %v2188_v1  ;;  %v185_v27 = vld [vmem:[%s2242_s21 + $0x60] sm:$0xff]  ;;  %v1600_v28 = vld [vmem:[%s2242_s21 + $0x128] sm:$0xff]  ;;  %v1601_v30 = vld [vmem:[%s2242_s21 + $0x130] sm:$0xff] }
  0x18   : > { %2013 = vmatpush3.msra.mxu0 %v171_v2  ;;  %2092 = vmatpush3.msra.mxu1 %v171_v2  ;;  %v186_v29 = vld [vmem:[%s2242_s21 + $0x68] sm:$0xff]  ;;  %v187_v31 = vld [vmem:[%s2242_s21 + $0x70] sm:$0xff]  ;;  %v1602_v32 = vld [vmem:[%s2242_s21 + $0x138] sm:$0xff] }
  0x19   : > { %v188_v33 = vld [vmem:[%s2242_s21 + $0x78] sm:$0xff]  ;;  %v1603_v34 = vld [vmem:[%s2242_s21 + $0x140] sm:$0xff]  ;;  %v1604_v36 = vld [vmem:[%s2242_s21 + $0x148] sm:$0xff] }
  0x1a   : > { %1863 = vmatmul.mubr.msk.f32.gmra.mxu0 %vm198_vm2, %v175_v7  ;;  %1942 = vmatmul.mubr.msk.f32.gmra.mxu1 %vm198_vm2, %v1590_v8  ;;  %v189_v35 = vld [vmem:[%s2242_s21 + $0x80] sm:$0xff]  ;;  %v190_v37 = vld [vmem:[%s2242_s21 + $0x88] sm:$0xff]  ;;  %v1605_v38 = vld [vmem:[%s2242_s21 + $0x150] sm:$0xff] }
  0x1b   : > { %1865 = vmatprep.mubr.msk.f32.mxu0 %vm2189_vm1, %v2188_v1  ;;  %1944 = vmatprep.mubr.msk.f32.mxu1 %vm2189_vm1, %v2188_v1  ;;  %v191_v39 = vld [vmem:[%s2242_s21 + $0x90] sm:$0xff]  ;;  %v1606_v40 = vld [vmem:[%s2242_s21 + $0x158] sm:$0xff]  ;;  %v1607_v42 = vld [vmem:[%s2242_s21 + $0x160] sm:$0xff] }
  0x1c   : > { %v192_v41 = vld [vmem:[%s2242_s21 + $0x98] sm:$0xff]  ;;  %v193_v43 = vld [vmem:[%s2242_s21 + $0xa0] sm:$0xff]  ;;  %v1608_v44 = vld [vmem:[%s2242_s21 + $0x168] sm:$0xff] }
  0x1d   : > { %v194_v45 = vld [vmem:[%s2242_s21 + $0xa8] sm:$0xff]  ;;  %v1609_v46 = vld [vmem:[%s2242_s21 + $0x170] sm:$0xff]  ;;  %v1610_v48 = vld [vmem:[%s2242_s21 + $0x178] sm:$0xff] }
  0x1e   : > { %1866 = vmatmul.mubr.msk.f32.gmra.mxu0 %vm198_vm2, %v176_v9  ;;  %1945 = vmatmul.mubr.msk.f32.gmra.mxu1 %vm198_vm2, %v1591_v10  ;;  %v195_v47 = vld [vmem:[%s2242_s21 + $0xb0] sm:$0xff]  ;;  %v196_v49 = vld [vmem:[%s2242_s21 + $0xb8] sm:$0xff]  ;;  %v1611_v50 = vld [vmem:[%s2242_s21 + $0x180] sm:$0xff] }
  0x1f   : > { %1868 = vmatprep.mubr.msk.f32.mxu0 %vm2189_vm1, %v2188_v1  ;;  %1947 = vmatprep.mubr.msk.f32.mxu1 %vm2189_vm1, %v2188_v1  ;;  %v197_v51 = vld [vmem:[%s2242_s21 + $0xc0] sm:$0xf]  ;;  %v1612_v52 = vld [vmem:[%s2242_s21 + $0x188] sm:$0xf]  ;;  %v1639_v53 = vld [vmem:[%s2242_s21 + $0x190] sm:$0xff] }
  0x20   : > { %v1690_v54 = vld [vmem:[%s2242_s21 + $0x258] sm:$0xff]  ;;  %v1691_v56 = vld [vmem:[%s2242_s21 + $0x260] sm:$0xff]  ;;  %v1692_v58 = vld [vmem:[%s2242_s21 + $0x268] sm:$0xff] }
  0x21   : > { %v1640_v55 = vld [vmem:[%s2242_s21 + $0x198] sm:$0xff]  ;;  %v1641_v57 = vld [vmem:[%s2242_s21 + $0x1a0] sm:$0xff]  ;;  %v1642_v59 = vld [vmem:[%s2242_s21 + $0x1a8] sm:$0xff] }
  0x22   : > { %1869 = vmatmul.mubr.msk.f32.gmra.mxu0 %vm198_vm2, %v177_v11  ;;  %1948 = vmatmul.mubr.msk.f32.gmra.mxu1 %vm198_vm2, %v1592_v12  ;;  %v1693_v60 = vld [vmem:[%s2242_s21 + $0x270] sm:$0xff]  ;;  %v1694_v62 = vld [vmem:[%s2242_s21 + $0x278] sm:$0xff]  ;;  %v1695_v0 = vld [vmem:[%s2242_s21 + $0x280] sm:$0xff] }
  0x23   : > { %1871 = vmatprep.mubr.msk.f32.mxu0 %vm2189_vm1, %v2188_v1  ;;  %1950 = vmatprep.mubr.msk.f32.mxu1 %vm2189_vm1, %v2188_v1  ;;  %v1643_v61 = vld [vmem:[%s2242_s21 + $0x1b0] sm:$0xff]  ;;  %v1644_v63 = vld [vmem:[%s2242_s21 + $0x1b8] sm:$0xff]  ;;  %v1645_v2 = vld [vmem:[%s2242_s21 + $0x1c0] sm:$0xff] }
  0x24   : > { %v1696_v3 = vld [vmem:[%s2242_s21 + $0x288] sm:$0xff]  ;;  %v1697_v5 = vld [vmem:[%s2242_s21 + $0x290] sm:$0xff]  ;;  %v1698_v7 = vld [vmem:[%s2242_s21 + $0x298] sm:$0xff] }
  0x25   : > { %v1646_v4 = vld [vmem:[%s2242_s21 + $0x1c8] sm:$0xff]  ;;  %v1647_v6 = vld [vmem:[%s2242_s21 + $0x1d0] sm:$0xff]  ;;  %v1648_v8 = vld [vmem:[%s2242_s21 + $0x1d8] sm:$0xff] }
  0x26   : > { %1872 = vmatmul.mubr.msk.f32.gmra.mxu0 %vm198_vm2, %v178_v13  ;;  %1951 = vmatmul.mubr.msk.f32.gmra.mxu1 %vm198_vm2, %v1593_v14  ;;  %v1699_v9 = vld [vmem:[%s2242_s21 + $0x2a0] sm:$0xff]  ;;  %v1700_v11 = vld [vmem:[%s2242_s21 + $0x2a8] sm:$0xff]  ;;  %v1701_v13 = vld [vmem:[%s2242_s21 + $0x2b0] sm:$0xff] }
  0x27   : > { %1874 = vmatprep.mubr.msk.f32.mxu0 %vm2189_vm1, %v2188_v1  ;;  %1953 = vmatprep.mubr.msk.f32.mxu1 %vm2189_vm1, %v2188_v1  ;;  %v1649_v10 = vld [vmem:[%s2242_s21 + $0x1e0] sm:$0xff]  ;;  %v1650_v12 = vld [vmem:[%s2242_s21 + $0x1e8] sm:$0xff]  ;;  %v1651_v14 = vld [vmem:[%s2242_s21 + $0x1f0] sm:$0xff] }
  0x2a   : > { %1875 = vmatmul.mubr.msk.f32.gmra.mxu0 %vm198_vm2, %v179_v15  ;;  %1954 = vmatmul.mubr.msk.f32.gmra.mxu1 %vm198_vm2, %v1594_v16  ;;  %v1702_v15 = vld [vmem:[%s2242_s21 + $0x2b8] sm:$0xff] }
  0x2b   : > { %1877 = vmatprep.mubr.msk.f32.mxu0 %vm2189_vm1, %v2188_v1  ;;  %1956 = vmatprep.mubr.msk.f32.mxu1 %vm2189_vm1, %v2188_v1  ;;  %v1652_v16 = vld [vmem:[%s2242_s21 + $0x1f8] sm:$0xff] }
  0x2e   : > { %1878 = vmatmul.mubr.msk.f32.gmra.mxu0 %vm198_vm2, %v180_v17  ;;  %1957 = vmatmul.mubr.msk.f32.gmra.mxu1 %vm198_vm2, %v1595_v18  ;;  %v1703_v17 = vld [vmem:[%s2242_s21 + $0x2c0] sm:$0xff] }
  0x2f   : > { %1880 = vmatprep.mubr.msk.f32.mxu0 %vm2189_vm1, %v2188_v1  ;;  %1959 = vmatprep.mubr.msk.f32.mxu1 %vm2189_vm1, %v2188_v1  ;;  %v1653_v18 = vld [vmem:[%s2242_s21 + $0x200] sm:$0xff] }
  0x32   : > { %1881 = vmatmul.mubr.msk.f32.gmra.mxu0 %vm198_vm2, %v181_v19  ;;  %1960 = vmatmul.mubr.msk.f32.gmra.mxu1 %vm198_vm2, %v1596_v20  ;;  %v1704_v19 = vld [vmem:[%s2242_s21 + $0x2c8] sm:$0xff] }
  0x33   : > { %1883 = vmatprep.mubr.msk.f32.mxu0 %vm2189_vm1, %v2188_v1  ;;  %1962 = vmatprep.mubr.msk.f32.mxu1 %vm2189_vm1, %v2188_v1  ;;  %v1654_v20 = vld [vmem:[%s2242_s21 + $0x208] sm:$0xff] }
  0x36   : > { %1884 = vmatmul.mubr.msk.f32.gmra.mxu0 %vm198_vm2, %v182_v21  ;;  %1963 = vmatmul.mubr.msk.f32.gmra.mxu1 %vm198_vm2, %v1597_v22  ;;  %v1705_v21 = vld [vmem:[%s2242_s21 + $0x2d0] sm:$0xff] }
  0x37   : > { %1886 = vmatprep.mubr.msk.f32.mxu0 %vm2189_vm1, %v2188_v1  ;;  %1965 = vmatprep.mubr.msk.f32.mxu1 %vm2189_vm1, %v2188_v1  ;;  %v1655_v22 = vld [vmem:[%s2242_s21 + $0x210] sm:$0xff] }
  0x3a   : > { %1887 = vmatmul.mubr.msk.f32.gmra.mxu0 %vm198_vm2, %v183_v23  ;;  %1966 = vmatmul.mubr.msk.f32.gmra.mxu1 %vm198_vm2, %v1598_v24  ;;  %v1706_v23 = vld [vmem:[%s2242_s21 + $0x2d8] sm:$0xff] }
  0x3b   : > { %1889 = vmatprep.mubr.msk.f32.mxu0 %vm2189_vm1, %v2188_v1  ;;  %1968 = vmatprep.mubr.msk.f32.mxu1 %vm2189_vm1, %v2188_v1  ;;  %v1656_v24 = vld [vmem:[%s2242_s21 + $0x218] sm:$0xff] }
  0x3e   : > { %1890 = vmatmul.mubr.msk.f32.gmra.mxu0 %vm198_vm2, %v184_v25  ;;  %1969 = vmatmul.mubr.msk.f32.gmra.mxu1 %vm198_vm2, %v1599_v26  ;;  %v1707_v25 = vld [vmem:[%s2242_s21 + $0x2e0] sm:$0xff] }
  0x3f   : > { %1892 = vmatprep.mubr.msk.f32.mxu0 %vm2189_vm1, %v2188_v1  ;;  %1971 = vmatprep.mubr.msk.f32.mxu1 %vm2189_vm1, %v2188_v1  ;;  %v1657_v26 = vld [vmem:[%s2242_s21 + $0x220] sm:$0xff] }
  0x42   : > { %1893 = vmatmul.mubr.msk.f32.gmra.mxu0 %vm198_vm2, %v185_v27  ;;  %1972 = vmatmul.mubr.msk.f32.gmra.mxu1 %vm198_vm2, %v1600_v28  ;;  %v1708_v27 = vld [vmem:[%s2242_s21 + $0x2e8] sm:$0xff] }
  0x43   : > { %1895 = vmatprep.mubr.msk.f32.mxu0 %vm2189_vm1, %v2188_v1  ;;  %1974 = vmatprep.mubr.msk.f32.mxu1 %vm2189_vm1, %v2188_v1  ;;  %v1658_v28 = vld [vmem:[%s2242_s21 + $0x228] sm:$0xff] }
  0x46   : > { %1896 = vmatmul.mubr.msk.f32.gmra.mxu0 %vm198_vm2, %v186_v29  ;;  %1975 = vmatmul.mubr.msk.f32.gmra.mxu1 %vm198_vm2, %v1601_v30  ;;  %v1709_v29 = vld [vmem:[%s2242_s21 + $0x2f0] sm:$0xff] }
  0x47   : > { %1898 = vmatprep.mubr.msk.f32.mxu0 %vm2189_vm1, %v2188_v1  ;;  %1977 = vmatprep.mubr.msk.f32.mxu1 %vm2189_vm1, %v2188_v1  ;;  %v1659_v30 = vld [vmem:[%s2242_s21 + $0x230] sm:$0xff] }
  0x4a   : > { %1899 = vmatmul.mubr.msk.f32.gmra.mxu0 %vm198_vm2, %v187_v31  ;;  %1978 = vmatmul.mubr.msk.f32.gmra.mxu1 %vm198_vm2, %v1602_v32  ;;  %v1710_v31 = vld [vmem:[%s2242_s21 + $0x2f8] sm:$0xff] }
  0x4b   : > { %1901 = vmatprep.mubr.msk.f32.mxu0 %vm2189_vm1, %v2188_v1  ;;  %1980 = vmatprep.mubr.msk.f32.mxu1 %vm2189_vm1, %v2188_v1  ;;  %v1660_v32 = vld [vmem:[%s2242_s21 + $0x238] sm:$0xff] }
  0x4e   : > { %1902 = vmatmul.mubr.msk.f32.gmra.mxu0 %vm198_vm2, %v188_v33  ;;  %1981 = vmatmul.mubr.msk.f32.gmra.mxu1 %vm198_vm2, %v1603_v34  ;;  %v1711_v33 = vld [vmem:[%s2242_s21 + $0x300] sm:$0xff] }
  0x4f   : > { %1904 = vmatprep.mubr.msk.f32.mxu0 %vm2189_vm1, %v2188_v1  ;;  %1983 = vmatprep.mubr.msk.f32.mxu1 %vm2189_vm1, %v2188_v1  ;;  %v1661_v34 = vld [vmem:[%s2242_s21 + $0x240] sm:$0xff] }
  0x52   : > { %1905 = vmatmul.mubr.msk.f32.gmra.mxu0 %vm198_vm2, %v189_v35  ;;  %1984 = vmatmul.mubr.msk.f32.gmra.mxu1 %vm198_vm2, %v1604_v36  ;;  %v1712_v35 = vld [vmem:[%s2242_s21 + $0x308] sm:$0xff] }
  0x53   : > { %1907 = vmatprep.mubr.msk.f32.mxu0 %vm2189_vm1, %v2188_v1  ;;  %1986 = vmatprep.mubr.msk.f32.mxu1 %vm2189_vm1, %v2188_v1  ;;  %v1662_v36 = vld [vmem:[%s2242_s21 + $0x248] sm:$0xff] }
  0x56   : > { %1908 = vmatmul.mubr.msk.f32.gmra.mxu0 %vm198_vm2, %v190_v37  ;;  %1987 = vmatmul.mubr.msk.f32.gmra.mxu1 %vm198_vm2, %v1605_v38  ;;  %v1713_v37 = vld [vmem:[%s2242_s21 + $0x310] sm:$0xff] }
  0x57   : > { %1910 = vmatprep.mubr.msk.f32.mxu0 %vm2189_vm1, %v2188_v1  ;;  %1989 = vmatprep.mubr.msk.f32.mxu1 %vm2189_vm1, %v2188_v1 }
  0x5a   : > { %1911 = vmatmul.mubr.msk.f32.gmra.mxu0 %vm198_vm2, %v191_v39  ;;  %1990 = vmatmul.mubr.msk.f32.gmra.mxu1 %vm198_vm2, %v1606_v40 }
  0x5b   : > { %1913 = vmatprep.mubr.msk.f32.mxu0 %vm2189_vm1, %v2188_v1  ;;  %1992 = vmatprep.mubr.msk.f32.mxu1 %vm2189_vm1, %v2188_v1 }
  0x5e   : > { %1914 = vmatmul.mubr.msk.f32.gmra.mxu0 %vm198_vm2, %v192_v41  ;;  %1993 = vmatmul.mubr.msk.f32.gmra.mxu1 %vm198_vm2, %v1607_v42  ;;  %v1663_v41 = vld [vmem:[%s2242_s21 + $0x250] sm:$0xf]  ;;  %v1714_v42 = vld [vmem:[%s2242_s21 + $0x318] sm:$0xf] }
  0x5f   : > { %1916 = vmatprep.mubr.msk.f32.mxu0 %vm2189_vm1, %v2188_v1  ;;  %1995 = vmatprep.mubr.msk.f32.mxu1 %vm2189_vm1, %v2188_v1 }
  0x62   : > { %1917 = vmatmul.mubr.msk.f32.gmra.mxu0 %vm198_vm2, %v193_v43  ;;  %1996 = vmatmul.mubr.msk.f32.gmra.mxu1 %vm198_vm2, %v1608_v44 }
  0x63   : > { %1919 = vmatprep.mubr.msk.f32.mxu0 %vm2189_vm1, %v2188_v1  ;;  %1998 = vmatprep.mubr.msk.f32.mxu1 %vm2189_vm1, %v2188_v1 }
  0x66   : > { %1920 = vmatmul.mubr.msk.f32.gmra.mxu0 %vm198_vm2, %v194_v45  ;;  %1999 = vmatmul.mubr.msk.f32.gmra.mxu1 %vm198_vm2, %v1609_v46 }
  0x67   : > { %1922 = vmatprep.mubr.msk.f32.mxu0 %vm2189_vm1, %v2188_v1  ;;  %2001 = vmatprep.mubr.msk.f32.mxu1 %vm2189_vm1, %v2188_v1 }
  0x6a   : > { %1923 = vmatmul.mubr.msk.f32.gmra.mxu0 %vm198_vm2, %v195_v47  ;;  %2002 = vmatmul.mubr.msk.f32.gmra.mxu1 %vm198_vm2, %v1610_v48 }
  0x6b   : > { %1925 = vmatprep.mubr.msk.f32.mxu0 %vm2189_vm1, %v2188_v1  ;;  %2004 = vmatprep.mubr.msk.f32.mxu1 %vm2189_vm1, %v2188_v1 }
  0x6e   : > { %1926 = vmatmul.mubr.msk.f32.gmra.mxu0 %vm198_vm2, %v196_v49  ;;  %2005 = vmatmul.mubr.msk.f32.gmra.mxu1 %vm198_vm2, %v1611_v50 }
  0x6f   : > { %1928 = vmatprep.mubr.msk.f32.mxu0 %vm2189_vm1, %v2188_v1  ;;  %2007 = vmatprep.mubr.msk.f32.mxu1 %vm2189_vm1, %v2188_v1 }
  0x72   : > { %1929 = vmatmul.mubr.msk.f32.gmra.mxu0 %vm198_vm2, %v197_v51  ;;  %2008 = vmatmul.mubr.msk.f32.gmra.mxu1 %vm198_vm2, %v1612_v52 }
  0x73   : > { %2014 = vmatprep.mubr.msk.f32.mxu0 %vm2189_vm1, %v2188_v1  ;;  %2093 = vmatprep.mubr.msk.f32.mxu1 %vm2189_vm1, %v2188_v1 }
  0x76   : > { %2015 = vmatmul.mubr.msk.f32.vlgmr.msra.gmra.mxu0 %vm198_vm2, %v1639_v53  ;;  %2094 = vmatmul.mubr.msk.f32.vlgmr.msra.gmra.mxu1 %vm198_vm2, %v1690_v54 }
  0x77   : > { %2017 = vmatprep.mubr.msk.f32.mxu0 %vm2189_vm1, %v2188_v1  ;;  %2096 = vmatprep.mubr.msk.f32.mxu1 %vm2189_vm1, %v2188_v1 }
  0x7a   : > { %2018 = vmatmul.mubr.msk.f32.gmra.mxu0 %vm198_vm2, %v1640_v55  ;;  %2097 = vmatmul.mubr.msk.f32.gmra.mxu1 %vm198_vm2, %v1691_v56 }
  0x7b   : > { %2020 = vmatprep.mubr.msk.f32.mxu0 %vm2189_vm1, %v2188_v1  ;;  %2099 = vmatprep.mubr.msk.f32.mxu1 %vm2189_vm1, %v2188_v1 }
  0x7e   : > { %2021 = vmatmul.mubr.msk.f32.gmra.mxu0 %vm198_vm2, %v1641_v57  ;;  %2100 = vmatmul.mubr.msk.f32.gmra.mxu1 %vm198_vm2, %v1692_v58 }
  0x7f   : > { %2023 = vmatprep.mubr.msk.f32.mxu0 %vm2189_vm1, %v2188_v1  ;;  %2102 = vmatprep.mubr.msk.f32.mxu1 %vm2189_vm1, %v2188_v1 }
  0x82   : > { %2024 = vmatmul.mubr.msk.f32.gmra.mxu0 %vm198_vm2, %v1642_v59  ;;  %2103 = vmatmul.mubr.msk.f32.gmra.mxu1 %vm198_vm2, %v1693_v60 }
  0x83   : > { %2026 = vmatprep.mubr.msk.f32.mxu0 %vm2189_vm1, %v2188_v1  ;;  %2105 = vmatprep.mubr.msk.f32.mxu1 %vm2189_vm1, %v2188_v1 }
  0x86   : > { %2027 = vmatmul.mubr.msk.f32.gmra.mxu0 %vm198_vm2, %v1643_v61  ;;  %2106 = vmatmul.mubr.msk.f32.gmra.mxu1 %vm198_vm2, %v1694_v62 }
  0x87   : > { %2029 = vmatprep.mubr.msk.f32.mxu0 %vm2189_vm1, %v2188_v1  ;;  %2108 = vmatprep.mubr.msk.f32.mxu1 %vm2189_vm1, %v2188_v1 }
  0x8a   : > { %2030 = vmatmul.mubr.msk.f32.gmra.mxu0 %vm198_vm2, %v1644_v63  ;;  %2109 = vmatmul.mubr.msk.f32.gmra.mxu1 %vm198_vm2, %v1695_v0 }
  0x8b   : > { %2032 = vmatprep.mubr.msk.f32.mxu0 %vm2189_vm1, %v2188_v1  ;;  %2111 = vmatprep.mubr.msk.f32.mxu1 %vm2189_vm1, %v2188_v1 }
  0x8e   : > { %2033 = vmatmul.mubr.msk.f32.gmra.mxu0 %vm198_vm2, %v1645_v2  ;;  %2112 = vmatmul.mubr.msk.f32.gmra.mxu1 %vm198_vm2, %v1696_v3 }
  0x8f   : > { %2035 = vmatprep.mubr.msk.f32.mxu0 %vm2189_vm1, %v2188_v1  ;;  %2114 = vmatprep.mubr.msk.f32.mxu1 %vm2189_vm1, %v2188_v1 }
  0x92   : > { %2036 = vmatmul.mubr.msk.f32.gmra.mxu0 %vm198_vm2, %v1646_v4  ;;  %2115 = vmatmul.mubr.msk.f32.gmra.mxu1 %vm198_vm2, %v1697_v5 }
  0x93   : > { %2038 = vmatprep.mubr.msk.f32.mxu0 %vm2189_vm1, %v2188_v1  ;;  %2117 = vmatprep.mubr.msk.f32.mxu1 %vm2189_vm1, %v2188_v1 }
  0x96   : > { %2039 = vmatmul.mubr.msk.f32.gmra.mxu0 %vm198_vm2, %v1647_v6  ;;  %2118 = vmatmul.mubr.msk.f32.gmra.mxu1 %vm198_vm2, %v1698_v7 }
  0x97   : > { %2041 = vmatprep.mubr.msk.f32.mxu0 %vm2189_vm1, %v2188_v1  ;;  %2120 = vmatprep.mubr.msk.f32.mxu1 %vm2189_vm1, %v2188_v1 }
  0x9a   : > { %2042 = vmatmul.mubr.msk.f32.gmra.mxu0 %vm198_vm2, %v1648_v8  ;;  %2121 = vmatmul.mubr.msk.f32.gmra.mxu1 %vm198_vm2, %v1699_v9 }
  0x9b   : > { %2044 = vmatprep.mubr.msk.f32.mxu0 %vm2189_vm1, %v2188_v1  ;;  %2123 = vmatprep.mubr.msk.f32.mxu1 %vm2189_vm1, %v2188_v1 }
  0x9e   : > { %2045 = vmatmul.mubr.msk.f32.gmra.mxu0 %vm198_vm2, %v1649_v10  ;;  %2124 = vmatmul.mubr.msk.f32.gmra.mxu1 %vm198_vm2, %v1700_v11 }
  0x9f   : > { %2047 = vmatprep.mubr.msk.f32.mxu0 %vm2189_vm1, %v2188_v1  ;;  %2126 = vmatprep.mubr.msk.f32.mxu1 %vm2189_vm1, %v2188_v1 }
  0xa2   : > { %2048 = vmatmul.mubr.msk.f32.gmra.mxu0 %vm198_vm2, %v1650_v12  ;;  %2127 = vmatmul.mubr.msk.f32.gmra.mxu1 %vm198_vm2, %v1701_v13 }
  0xa3   : > { %2050 = vmatprep.mubr.msk.f32.mxu0 %vm2189_vm1, %v2188_v1  ;;  %2129 = vmatprep.mubr.msk.f32.mxu1 %vm2189_vm1, %v2188_v1 }
  0xa6   : > { %2051 = vmatmul.mubr.msk.f32.gmra.mxu0 %vm198_vm2, %v1651_v14  ;;  %2130 = vmatmul.mubr.msk.f32.gmra.mxu1 %vm198_vm2, %v1702_v15 }
  0xa7   : > { %2053 = vmatprep.mubr.msk.f32.mxu0 %vm2189_vm1, %v2188_v1  ;;  %2132 = vmatprep.mubr.msk.f32.mxu1 %vm2189_vm1, %v2188_v1 }
  0xaa   : > { %2054 = vmatmul.mubr.msk.f32.gmra.mxu0 %vm198_vm2, %v1652_v16  ;;  %2133 = vmatmul.mubr.msk.f32.gmra.mxu1 %vm198_vm2, %v1703_v17 }
  0xab   : > { %2056 = vmatprep.mubr.msk.f32.mxu0 %vm2189_vm1, %v2188_v1  ;;  %2135 = vmatprep.mubr.msk.f32.mxu1 %vm2189_vm1, %v2188_v1 }
  0xae   : > { %2057 = vmatmul.mubr.msk.f32.gmra.mxu0 %vm198_vm2, %v1653_v18  ;;  %2136 = vmatmul.mubr.msk.f32.gmra.mxu1 %vm198_vm2, %v1704_v19 }
  0xaf   : > { %2059 = vmatprep.mubr.msk.f32.mxu0 %vm2189_vm1, %v2188_v1  ;;  %2138 = vmatprep.mubr.msk.f32.mxu1 %vm2189_vm1, %v2188_v1 }
  0xb2   : > { %2060 = vmatmul.mubr.msk.f32.gmra.mxu0 %vm198_vm2, %v1654_v20  ;;  %2139 = vmatmul.mubr.msk.f32.gmra.mxu1 %vm198_vm2, %v1705_v21 }
  0xb3   : > { %2062 = vmatprep.mubr.msk.f32.mxu0 %vm2189_vm1, %v2188_v1  ;;  %2141 = vmatprep.mubr.msk.f32.mxu1 %vm2189_vm1, %v2188_v1 }
  0xb6   : > { %2063 = vmatmul.mubr.msk.f32.gmra.mxu0 %vm198_vm2, %v1655_v22  ;;  %2142 = vmatmul.mubr.msk.f32.gmra.mxu1 %vm198_vm2, %v1706_v23 }
  0xb7   : > { %2065 = vmatprep.mubr.msk.f32.mxu0 %vm2189_vm1, %v2188_v1  ;;  %2144 = vmatprep.mubr.msk.f32.mxu1 %vm2189_vm1, %v2188_v1 }
  0xba   : > { %2066 = vmatmul.mubr.msk.f32.gmra.mxu0 %vm198_vm2, %v1656_v24  ;;  %2145 = vmatmul.mubr.msk.f32.gmra.mxu1 %vm198_vm2, %v1707_v25 }
  0xbb   : > { %2068 = vmatprep.mubr.msk.f32.mxu0 %vm2189_vm1, %v2188_v1  ;;  %2147 = vmatprep.mubr.msk.f32.mxu1 %vm2189_vm1, %v2188_v1 }
  0xbe   : > { %2069 = vmatmul.mubr.msk.f32.gmra.mxu0 %vm198_vm2, %v1657_v26  ;;  %2148 = vmatmul.mubr.msk.f32.gmra.mxu1 %vm198_vm2, %v1708_v27 }
  0xbf   : > { %2071 = vmatprep.mubr.msk.f32.mxu0 %vm2189_vm1, %v2188_v1  ;;  %2150 = vmatprep.mubr.msk.f32.mxu1 %vm2189_vm1, %v2188_v1 }
  0xc2   : > { %2072 = vmatmul.mubr.msk.f32.gmra.mxu0 %vm198_vm2, %v1658_v28  ;;  %2151 = vmatmul.mubr.msk.f32.gmra.mxu1 %vm198_vm2, %v1709_v29 }
  0xc3   : > { %2074 = vmatprep.mubr.msk.f32.mxu0 %vm2189_vm1, %v2188_v1  ;;  %2153 = vmatprep.mubr.msk.f32.mxu1 %vm2189_vm1, %v2188_v1 }
  0xc6   : > { %2075 = vmatmul.mubr.msk.f32.gmra.mxu0 %vm198_vm2, %v1659_v30  ;;  %2154 = vmatmul.mubr.msk.f32.gmra.mxu1 %vm198_vm2, %v1710_v31 }
  0xc7   : > { %2077 = vmatprep.mubr.msk.f32.mxu0 %vm2189_vm1, %v2188_v1  ;;  %2156 = vmatprep.mubr.msk.f32.mxu1 %vm2189_vm1, %v2188_v1 }
  0xca   : > { %2078 = vmatmul.mubr.msk.f32.gmra.mxu0 %vm198_vm2, %v1660_v32  ;;  %2157 = vmatmul.mubr.msk.f32.gmra.mxu1 %vm198_vm2, %v1711_v33 }
  0xcb   : > { %2080 = vmatprep.mubr.msk.f32.mxu0 %vm2189_vm1, %v2188_v1  ;;  %2159 = vmatprep.mubr.msk.f32.mxu1 %vm2189_vm1, %v2188_v1 }
  0xce   : > { %2081 = vmatmul.mubr.msk.f32.gmra.mxu0 %vm198_vm2, %v1661_v34  ;;  %2160 = vmatmul.mubr.msk.f32.gmra.mxu1 %vm198_vm2, %v1712_v35 }
  0xcf   : > { %2083 = vmatprep.mubr.msk.f32.mxu0 %vm2189_vm1, %v2188_v1  ;;  %2162 = vmatprep.mubr.msk.f32.mxu1 %vm2189_vm1, %v2188_v1 }
  0xd2   : > { %v2634_v38 = vpop.f32.mrf.mxu0  ;;  %v2636_v39 = vpop.f32.mrf.mxu1  ;;  %2084 = vmatmul.mubr.msk.f32.gmra.mxu0 %vm198_vm2, %v1662_v36  ;;  %2163 = vmatmul.mubr.msk.f32.gmra.mxu1 %vm198_vm2, %v1713_v37 }
  0xd3   : > { %v759_v40 = vmax.f32 %v2634_v38, %v2636_v39  ;;  %2086 = vmatprep.mubr.msk.f32.mxu0 %vm2189_vm1, %v2188_v1  ;;  %2165 = vmatprep.mubr.msk.f32.mxu1 %vm2189_vm1, %v2188_v1 }
  0xd4   : > { %v1858_v43 = vpop.f32.mrf.mxu0  ;;  %v1937_v44 = vpop.f32.mrf.mxu1 }
  0xd6   : > { %v2648_v45 = vpop.f32.mrf.mxu0  ;;  %v2650_v46 = vpop.f32.mrf.mxu1  ;;  %2087 = vmatmul.mubr.msk.f32.gmra.mxu0 %vm198_vm2, %v1663_v41  ;;  %2166 = vmatmul.mubr.msk.f32.gmra.mxu1 %vm198_vm2, %v1714_v42 }
  0xd7   : > { %v760_v47 = vmax.f32 %v2648_v45, %v2650_v46 }
  0xd8   : > { %v1861_v48 = vpop.f32.mrf.mxu0  ;;  %v1940_v49 = vpop.f32.mrf.mxu1 }
  0xda   : > { %v2656_v50 = vpop.f32.mrf.mxu0  ;;  %v2658_v1 = vpop.f32.mrf.mxu1 }
  0xdb   : > { %v2961_v45 = vmax.f32 %v2656_v50, %v2658_v1 }
  0xdc   : > { %v1864_v52 = vpop.f32.mrf.mxu0  ;;  %v1943_v53 = vpop.f32.mrf.mxu1 }
  0xde   : > { %v2662_v54 = vpop.f32.mrf.mxu0  ;;  %v2664_v55 = vpop.f32.mrf.mxu1 }
  0xe0   : > { %v1867_v57 = vpop.f32.mrf.mxu0  ;;  %v1946_v58 = vpop.f32.mrf.mxu1 }
  0xe2   : > { %v2668_v59 = vpop.f32.mrf.mxu0  ;;  %v2670_v60 = vpop.f32.mrf.mxu1 }
  0xe4   : > { %v1870_v62 = vpop.f32.mrf.mxu0  ;;  %v1949_v63 = vpop.f32.mrf.mxu1 }
  0xe6   : > { %v2674_v0 = vpop.f32.mrf.mxu0  ;;  %v2676_v2 = vpop.f32.mrf.mxu1 }
  0xe8   : > { %v1873_v4 = vpop.f32.mrf.mxu0  ;;  %v1952_v5 = vpop.f32.mrf.mxu1 }
  0xea   : > { %v2680_v6 = vpop.f32.mrf.mxu0  ;;  %v2682_v7 = vpop.f32.mrf.mxu1 }
  0xec   : > { %v1876_v9 = vpop.f32.mrf.mxu0  ;;  %v1955_v10 = vpop.f32.mrf.mxu1 }
  0xee   : > { %v2686_v11 = vpop.f32.mrf.mxu0  ;;  %v2688_v12 = vpop.f32.mrf.mxu1 }
  0xf0   : > { %v1879_v14 = vpop.f32.mrf.mxu0  ;;  %v1958_v15 = vpop.f32.mrf.mxu1 }
  0xf2   : > { %v2692_v16 = vpop.f32.mrf.mxu0  ;;  %v2694_v17 = vpop.f32.mrf.mxu1 }
  0xf4   : > { %v1882_v19 = vpop.f32.mrf.mxu0  ;;  %v1961_v20 = vpop.f32.mrf.mxu1 }
  0xf6   : > { %v2698_v21 = vpop.f32.mrf.mxu0  ;;  %v2700_v22 = vpop.f32.mrf.mxu1 }
  0xf8   : > { %v1885_v24 = vpop.f32.mrf.mxu0  ;;  %v1964_v25 = vpop.f32.mrf.mxu1 }
  0xfa   : > { %v2704_v26 = vpop.f32.mrf.mxu0  ;;  %v2706_v27 = vpop.f32.mrf.mxu1 }
  0xfc   : > { %v1888_v29 = vpop.f32.mrf.mxu0  ;;  %v1967_v30 = vpop.f32.mrf.mxu1 }
  0xfe   : > { %v2710_v31 = vpop.f32.mrf.mxu0  ;;  %v2712_v32 = vpop.f32.mrf.mxu1 }
 0x100   : > { %v1891_v34 = vpop.f32.mrf.mxu0  ;;  %v1970_v35 = vpop.f32.mrf.mxu1 }
 0x102   : > { %v2716_v36 = vpop.f32.mrf.mxu0  ;;  %v2718_v37 = vpop.f32.mrf.mxu1 }
 0x104   : > { %v1894_v42 = vpop.f32.mrf.mxu0  ;;  %v1973_v43 = vpop.f32.mrf.mxu1 }
 0x106   : > { %v2722_v44 = vpop.f32.mrf.mxu0  ;;  %v2724_v48 = vpop.f32.mrf.mxu1 }
 0x108   : > { %v1897_v52 = vpop.f32.mrf.mxu0  ;;  %v1976_v53 = vpop.f32.mrf.mxu1 }
 0x10a   : > { %v2728_v57 = vpop.f32.mrf.mxu0  ;;  %v2730_v58 = vpop.f32.mrf.mxu1 }
 0x10c   : > { %v1900_v63 = vpop.f32.mrf.mxu0  ;;  %v1979_v4 = vpop.f32.mrf.mxu1 }
 0x10e   : > { %v2734_v5 = vpop.f32.mrf.mxu0  ;;  %v2736_v9 = vpop.f32.mrf.mxu1 }
 0x110   : > { %v1903_v14 = vpop.f32.mrf.mxu0  ;;  %v1982_v15 = vpop.f32.mrf.mxu1 }
 0x112   : > { %v2740_v19 = vpop.f32.mrf.mxu0  ;;  %v2742_v20 = vpop.f32.mrf.mxu1 }
 0x114   : > { %v1906_v25 = vpop.f32.mrf.mxu0  ;;  %v1985_v29 = vpop.f32.mrf.mxu1 }
 0x116   : > { %v2746_v30 = vpop.f32.mrf.mxu0  ;;  %v2748_v34 = vpop.f32.mrf.mxu1 }
 0x118   : > { %v1909_v42 = vpop.f32.mrf.mxu0  ;;  %v1988_v43 = vpop.f32.mrf.mxu1 }
 0x11a   : > { %v2752_v52 = vpop.f32.mrf.mxu0  ;;  %v2754_v53 = vpop.f32.mrf.mxu1 }
 0x11c   : > { %v1912_v4 = vpop.f32.mrf.mxu0  ;;  %v1991_v14 = vpop.f32.mrf.mxu1 }
 0x11e   : > { %v2758_v15 = vpop.f32.mrf.mxu0  ;;  %v2760_v25 = vpop.f32.mrf.mxu1 }
 0x120   : > { %v1915_v24 = vpop.f32.mrf.mxu0  ;;  %v1994_v35 = vpop.f32.mrf.mxu1 }
 0x122   : > { %v2764_v42 = vpop.f32.mrf.mxu0  ;;  %v2766_v43 = vpop.f32.mrf.mxu1 }
 0x124   : > { %v1918_v62 = vpop.f32.mrf.mxu0  ;;  %v1997_v63 = vpop.f32.mrf.mxu1 }
 0x126   : > { %v2770_v4 = vpop.f32.mrf.mxu0  ;;  %v2772_v14 = vpop.f32.mrf.mxu1 }
 0x128   : > { %v1921_v41 = vpop.f32.mrf.mxu0  ;;  %v2000_v29 = vpop.f32.mrf.mxu1 }
 0x12a   : > { %v2776_v24 = vpop.f32.mrf.mxu0  ;;  %v2778_v35 = vpop.f32.mrf.mxu1 }
 0x12c   : > { %v1924_v10 = vpop.f32.mrf.mxu0  ;;  %v2003_v62 = vpop.f32.mrf.mxu1 }
 0x12e   : > { %v2782_v63 = vpop.f32.mrf.mxu0  ;;  %v2784_v28 = vpop.f32.mrf.mxu1 }
 0x130   : > { %v1927_v49 = vpop.f32.mrf.mxu0  ;;  %v2006_v41 = vpop.f32.mrf.mxu1 }
 0x131   : > { %v2801_v49 = vld [vmem:[%s2959_s2] ss:$0 sm:$0xff] }
 0x132   : > { %v2788_v29 = vpop.f32.mrf.mxu0  ;;  %v2790_v18 = vpop.f32.mrf.mxu1 }
 0x134   : > { %v1930_v33 = vpop.f32.mrf.mxu0  ;;  %v2009_v8 = vpop.f32.mrf.mxu1 }
 0x136   : > { %v951_v10 = vpop.f32.mrf.mxu0  ;;  %v1267_v62 = vpop.f32.mrf.mxu1 }
 0x137   : > { %v1075_v3 = vmax.f32 %v759_v40, %v951_v10 }
 0x138   : > { %v2016_v41 = vpop.f32.mrf.mxu0  ;;  %v2095_v23 = vpop.f32.mrf.mxu1 }
 0x139   : > { %v1391_v61 = vmax.f32 %v1075_v3, %v1267_v62 }
 0x13a   : > { %v956_v56 = vpop.f32.mrf.mxu0  ;;  %v1272_v51 = vpop.f32.mrf.mxu1 }
 0x13b   : > { %v1423_v33 = vadd.f32 %v2801_v49, %v1391_v61  ;;  %v1076_v8 = vmax.f32 %v760_v47, %v956_v56 }
 0x13c   : > { %v2019_v38 = vpop.f32.mrf.mxu0  ;;  %v2098_v39 = vpop.f32.mrf.mxu1 }
 0x13d   : > { %v1448_v40 = vmax.f32 %v1423_v33, 0.0  ;;  %v1392_v3 = vmax.f32 %v1076_v8, %v1272_v51  ;;  %v2962_v33 = vmax.f32 %v2662_v54, %v2664_v55 }
 0x13e   : > { %v961_v23 = vpop.f32.mrf.mxu0  ;;  %v1277_v10 = vpop.f32.mrf.mxu1 }
 0x13f   : > { %1474 = vst.msk [vmem:[%s2810_s27] sm:$0xff] %vm1473_vm3, %v1448_v40  ;;  %v1424_v61 = vadd.f32 %v2801_v49, %v1392_v3  ;;  %v1077_v46 = vmax.f32 %v2961_v45, %v961_v23 }
 0x140   : > { %v2022_v47 = vpop.f32.mrf.mxu0  ;;  %v2101_v56 = vpop.f32.mrf.mxu1 }
 0x141   : > { %v1449_v62 = vmax.f32 %v1424_v61, 0.0  ;;  %v1393_v41 = vmax.f32 %v1077_v46, %v1277_v10  ;;  %v2963_v61 = vmax.f32 %v2668_v59, %v2670_v60 }
 0x142   : > { %v966_v13 = vpop.f32.mrf.mxu0  ;;  %v1282_v38 = vpop.f32.mrf.mxu1 }
 0x143   : > { %1475 = vst.msk [vmem:[%s2810_s27 + $0x8] sm:$0xff] %vm1473_vm3, %v1449_v62  ;;  %v1425_v51 = vadd.f32 %v2801_v49, %v1393_v41  ;;  %v1078_v8 = vmax.f32 %v2962_v33, %v966_v13  ;;  %v2964_v41 = vmax.f32 %v2674_v0, %v2676_v2 }
 0x144   : > { %v2025_v39 = vpop.f32.mrf.mxu0  ;;  %v2104_v40 = vpop.f32.mrf.mxu1 }
 0x145   : > { %v1450_v50 = vmax.f32 %v1425_v51, 0.0  ;;  %v1394_v1 = vmax.f32 %v1078_v8, %v1282_v38 }
 0x146   : > { %v971_v3 = vpop.f32.mrf.mxu0  ;;  %v1287_v23 = vpop.f32.mrf.mxu1 }
 0x147   : > { %1476 = vst.msk [vmem:[%s2810_s27 + $0x10] sm:$0xff] %vm1473_vm3, %v1450_v50  ;;  %v1426_v10 = vadd.f32 %v2801_v49, %v1394_v1  ;;  %v1079_v45 = vmax.f32 %v2963_v61, %v971_v3  ;;  %v2965_v50 = vmax.f32 %v2680_v6, %v2682_v7 }
 0x148   : > { %v2028_v46 = vpop.f32.mrf.mxu0  ;;  %v2107_v47 = vpop.f32.mrf.mxu1 }
 0x149   : > { %v1451_v54 = vmax.f32 %v1426_v10, 0.0  ;;  %v1395_v55 = vmax.f32 %v1079_v45, %v1287_v23  ;;  %v2966_v46 = vmax.f32 %v2686_v11, %v2688_v12 }
 0x14a   : > { %v976_v13 = vpop.f32.mrf.mxu0  ;;  %v1292_v56 = vpop.f32.mrf.mxu1 }
 0x14b   : > { %1477 = vst.msk [vmem:[%s2810_s27 + $0x18] sm:$0xff] %vm1473_vm3, %v1451_v54  ;;  %v1427_v62 = vadd.f32 %v2801_v49, %v1395_v55  ;;  %v1080_v38 = vmax.f32 %v2964_v41, %v976_v13  ;;  %v2967_v41 = vmax.f32 %v2692_v16, %v2694_v17 }
 0x14c   : > { %v2031_v51 = vpop.f32.mrf.mxu0  ;;  %v2110_v33 = vpop.f32.mrf.mxu1 }
 0x14d   : > { %v1452_v59 = vmax.f32 %v1427_v62, 0.0  ;;  %v1396_v60 = vmax.f32 %v1080_v38, %v1292_v56 }
 0x14e   : > { %v981_v8 = vpop.f32.mrf.mxu0  ;;  %v1297_v39 = vpop.f32.mrf.mxu1 }
 0x14f   : > { %1478 = vst.msk [vmem:[%s2810_s27 + $0x20] sm:$0xff] %vm1473_vm3, %v1452_v59  ;;  %v1428_v40 = vadd.f32 %v2801_v49, %v1396_v60  ;;  %v1081_v1 = vmax.f32 %v2965_v50, %v981_v8 }
 0x150   : > { %v2034_v3 = vpop.f32.mrf.mxu0  ;;  %v2113_v23 = vpop.f32.mrf.mxu1 }
 0x151   : > { %v1453_v0 = vmax.f32 %v1428_v40, 0.0  ;;  %v1397_v2 = vmax.f32 %v1081_v1, %v1297_v39  ;;  %v2968_v39 = vmax.f32 %v2698_v21, %v2700_v22 }
 0x152   : > { %v986_v10 = vpop.f32.mrf.mxu0  ;;  %v1302_v61 = vpop.f32.mrf.mxu1 }
 0x153   : > { %1479 = vst.msk [vmem:[%s2810_s27 + $0x28] sm:$0xff] %vm1473_vm3, %v1453_v0  ;;  %v1429_v45 = vadd.f32 %v2801_v49, %v1397_v2  ;;  %v1082_v47 = vmax.f32 %v2966_v46, %v986_v10  ;;  %v2969_v2 = vmax.f32 %v2704_v26, %v2706_v27 }
 0x154   : > { %v2037_v54 = vpop.f32.mrf.mxu0  ;;  %v2116_v55 = vpop.f32.mrf.mxu1 }
 0x155   : > { %v1454_v6 = vmax.f32 %v1429_v45, 0.0  ;;  %v1398_v7 = vmax.f32 %v1082_v47, %v1302_v61  ;;  %v2970_v55 = vmax.f32 %v2710_v31, %v2712_v32 }
 0x156   : > { %v991_v13 = vpop.f32.mrf.mxu0  ;;  %v1307_v56 = vpop.f32.mrf.mxu1 }
 0x157   : > { %1480 = vst.msk [vmem:[%s2810_s27 + $0x30] sm:$0xff] %vm1473_vm3, %v1454_v6  ;;  %v1430_v62 = vadd.f32 %v2801_v49, %v1398_v7  ;;  %v1083_v38 = vmax.f32 %v2967_v41, %v991_v13 }
 0x158   : > { %v2040_v51 = vpop.f32.mrf.mxu0  ;;  %v2119_v33 = vpop.f32.mrf.mxu1 }
 0x159   : > { %v1455_v11 = vmax.f32 %v1430_v62, 0.0  ;;  %v1399_v12 = vmax.f32 %v1083_v38, %v1307_v56  ;;  %v2971_v38 = vmax.f32 %v2716_v36, %v2718_v37 }
 0x15a   : > { %v996_v59 = vpop.f32.mrf.mxu0  ;;  %v1312_v60 = vpop.f32.mrf.mxu1 }
 0x15b   : > { %1481 = vst.msk [vmem:[%s2810_s27 + $0x38] sm:$0xff] %vm1473_vm3, %v1455_v11  ;;  %v1431_v8 = vadd.f32 %v2801_v49, %v1399_v12  ;;  %v1084_v40 = vmax.f32 %v2968_v39, %v996_v59 }
 0x15c   : > { %v2043_v50 = vpop.f32.mrf.mxu0  ;;  %v2122_v1 = vpop.f32.mrf.mxu1 }
 0x15d   : > { %v1456_v16 = vmax.f32 %v1431_v8, 0.0  ;;  %v1400_v17 = vmax.f32 %v1084_v40, %v1312_v60  ;;  %v2972_v8 = vmax.f32 %v2722_v44, %v2724_v48 }
 0x15e   : > { %v1001_v3 = vpop.f32.mrf.mxu0  ;;  %v1317_v23 = vpop.f32.mrf.mxu1 }
 0x15f   : > { %1482 = vst.msk [vmem:[%s2810_s27 + $0x40] sm:$0xff] %vm1473_vm3, %v1456_v16  ;;  %v1432_v0 = vadd.f32 %v2801_v49, %v1400_v17  ;;  %v1085_v10 = vmax.f32 %v2969_v2, %v1001_v3  ;;  %v2973_v3 = vmax.f32 %v2728_v57, %v2730_v58 }
 0x160   : > { %v2046_v61 = vpop.f32.mrf.mxu0  ;;  %v2125_v45 = vpop.f32.mrf.mxu1 }
 0x161   : > { %v1457_v21 = vmax.f32 %v1432_v0, 0.0  ;;  %v1401_v22 = vmax.f32 %v1085_v10, %v1317_v23 }
 0x162   : > { %v1006_v46 = vpop.f32.mrf.mxu0  ;;  %v1322_v47 = vpop.f32.mrf.mxu1 }
 0x163   : > { %1483 = vst.msk [vmem:[%s2810_s27 + $0x48] sm:$0xff] %vm1473_vm3, %v1457_v21  ;;  %v1433_v54 = vadd.f32 %v2801_v49, %v1401_v22  ;;  %v1086_v6 = vmax.f32 %v2970_v55, %v1006_v46  ;;  %v2974_v21 = vmax.f32 %v2734_v5, %v2736_v9 }
 0x164   : > { %v2049_v7 = vpop.f32.mrf.mxu0  ;;  %v2128_v13 = vpop.f32.mrf.mxu1 }
 0x165   : > { %v1458_v26 = vmax.f32 %v1433_v54, 0.0  ;;  %v1402_v27 = vmax.f32 %v1086_v6, %v1322_v47  ;;  %v2975_v7 = vmax.f32 %v2740_v19, %v2742_v20 }
 0x166   : > { %v1011_v56 = vpop.f32.mrf.mxu0  ;;  %v1327_v62 = vpop.f32.mrf.mxu1 }
 0x167   : > { %1484 = vst.msk [vmem:[%s2810_s27 + $0x50] sm:$0xff] %vm1473_vm3, %v1458_v26  ;;  %v1434_v41 = vadd.f32 %v2801_v49, %v1402_v27  ;;  %v1087_v51 = vmax.f32 %v2971_v38, %v1011_v56  ;;  %v2976_v38 = vmax.f32 %v2746_v30, %v2748_v34 }
 0x168   : > { %v2052_v33 = vpop.f32.mrf.mxu0  ;;  %v2131_v11 = vpop.f32.mrf.mxu1 }
 0x169   : > { %v1459_v31 = vmax.f32 %v1434_v41, 0.0  ;;  %v1403_v32 = vmax.f32 %v1087_v51, %v1327_v62 }
 0x16a   : > { %v1016_v12 = vpop.f32.mrf.mxu0  ;;  %v1332_v59 = vpop.f32.mrf.mxu1 }
 0x16b   : > { %1485 = vst.msk [vmem:[%s2810_s27 + $0x58] sm:$0xff] %vm1473_vm3, %v1459_v31  ;;  %v1435_v60 = vadd.f32 %v2801_v49, %v1403_v32  ;;  %v1088_v39 = vmax.f32 %v2972_v8, %v1016_v12 }
 0x16c   : > { %v2055_v40 = vpop.f32.mrf.mxu0  ;;  %v2134_v50 = vpop.f32.mrf.mxu1 }
 0x16d   : > { %v1460_v36 = vmax.f32 %v1435_v60, 0.0  ;;  %v1404_v37 = vmax.f32 %v1088_v39, %v1332_v59  ;;  %v2977_v59 = vmax.f32 %v2752_v52, %v2754_v53 }
 0x16e   : > { %v1021_v1 = vpop.f32.mrf.mxu0  ;;  %v1337_v16 = vpop.f32.mrf.mxu1 }
 0x16f   : > { %1486 = vst.msk [vmem:[%s2810_s27 + $0x60] sm:$0xff] %vm1473_vm3, %v1460_v36  ;;  %v1436_v17 = vadd.f32 %v2801_v49, %v1404_v37  ;;  %v1089_v23 = vmax.f32 %v2973_v3, %v1021_v1  ;;  %v2978_v37 = vmax.f32 %v2758_v15, %v2760_v25 }
 0x170   : > { %v2058_v0 = vpop.f32.mrf.mxu0  ;;  %v2137_v2 = vpop.f32.mrf.mxu1 }
 0x171   : > { %v1461_v44 = vmax.f32 %v1436_v17, 0.0  ;;  %v1405_v48 = vmax.f32 %v1089_v23, %v1337_v16  ;;  %v2979_v2 = vmax.f32 %v2764_v42, %v2766_v43 }
 0x172   : > { %v1026_v10 = vpop.f32.mrf.mxu0  ;;  %v1342_v61 = vpop.f32.mrf.mxu1 }
 0x173   : > { %1487 = vst.msk [vmem:[%s2810_s27 + $0x68] sm:$0xff] %vm1473_vm3, %v1461_v44  ;;  %v1437_v45 = vadd.f32 %v2801_v49, %v1405_v48  ;;  %v1090_v22 = vmax.f32 %v2974_v21, %v1026_v10 }
 0x174   : > { %v2061_v46 = vpop.f32.mrf.mxu0  ;;  %v2140_v47 = vpop.f32.mrf.mxu1 }
 0x175   : > { %v1462_v57 = vmax.f32 %v1437_v45, 0.0  ;;  %v1406_v58 = vmax.f32 %v1090_v22, %v1342_v61  ;;  %v2980_v22 = vmax.f32 %v2770_v4, %v2772_v14 }
 0x176   : > { %v1031_v54 = vpop.f32.mrf.mxu0  ;;  %v1347_v55 = vpop.f32.mrf.mxu1 }
 0x177   : > { %1488 = vst.msk [vmem:[%s2810_s27 + $0x70] sm:$0xff] %vm1473_vm3, %v1462_v57  ;;  %v1438_v6 = vadd.f32 %v2801_v49, %v1406_v58  ;;  %v1091_v13 = vmax.f32 %v2975_v7, %v1031_v54 }
 0x178   : > { %v2064_v26 = vpop.f32.mrf.mxu0  ;;  %v2143_v27 = vpop.f32.mrf.mxu1 }
 0x179   : > { %v1463_v5 = vmax.f32 %v1438_v6, 0.0  ;;  %v1407_v9 = vmax.f32 %v1091_v13, %v1347_v55  ;;  %v2981_v6 = vmax.f32 %v2776_v24, %v2778_v35 }
 0x17a   : > { %v1036_v56 = vpop.f32.mrf.mxu0  ;;  %v1352_v62 = vpop.f32.mrf.mxu1 }
 0x17b   : > { %1489 = vst.msk [vmem:[%s2810_s27 + $0x78] sm:$0xff] %vm1473_vm3, %v1463_v5  ;;  %v1439_v41 = vadd.f32 %v2801_v49, %v1407_v9  ;;  %v1092_v51 = vmax.f32 %v2976_v38, %v1036_v56  ;;  %v2982_v56 = vmax.f32 %v2782_v63, %v2784_v28 }
 0x17c   : > { %v2067_v33 = vpop.f32.mrf.mxu0  ;;  %v2146_v11 = vpop.f32.mrf.mxu1 }
 0x17d   : > { %v1464_v19 = vmax.f32 %v1439_v41, 0.0  ;;  %v1408_v20 = vmax.f32 %v1092_v51, %v1352_v62 }
 0x17e   : > { %v1041_v31 = vpop.f32.mrf.mxu0  ;;  %v1357_v32 = vpop.f32.mrf.mxu1 }
 0x17f   : > { %1490 = vst.msk [vmem:[%s2810_s27 + $0x80] sm:$0xff] %vm1473_vm3, %v1464_v19  ;;  %v1440_v12 = vadd.f32 %v2801_v49, %v1408_v20  ;;  %v1093_v60 = vmax.f32 %v2977_v59, %v1041_v31  ;;  %v2983_v19 = vmax.f32 %v2788_v29, %v2790_v18 }
 0x180   : > { %v2070_v8 = vpop.f32.mrf.mxu0  ;;  %v2149_v39 = vpop.f32.mrf.mxu1 }
 0x181   : > { %v1465_v30 = vmax.f32 %v1440_v12, 0.0  ;;  %v1409_v34 = vmax.f32 %v1093_v60, %v1357_v32 }
 0x182   : > { %v1046_v40 = vpop.f32.mrf.mxu0  ;;  %v1362_v50 = vpop.f32.mrf.mxu1 }
 0x183   : > { %1491 = vst.msk [vmem:[%s2810_s27 + $0x88] sm:$0xff] %vm1473_vm3, %v1465_v30  ;;  %v1441_v36 = vadd.f32 %v2801_v49, %v1409_v34  ;;  %v1094_v1 = vmax.f32 %v2978_v37, %v1046_v40 }
 0x184   : > { %v2073_v16 = vpop.f32.mrf.mxu0  ;;  %v2152_v17 = vpop.f32.mrf.mxu1 }
 0x185   : > { %v1466_v52 = vmax.f32 %v1441_v36, 0.0  ;;  %v1410_v53 = vmax.f32 %v1094_v1, %v1362_v50 }
 0x186   : > { %v1051_v3 = vpop.f32.mrf.mxu0  ;;  %v1367_v23 = vpop.f32.mrf.mxu1 }
 0x187   : > { %1492 = vst.msk [vmem:[%s2810_s27 + $0x90] sm:$0xff] %vm1473_vm3, %v1466_v52  ;;  %v1442_v0 = vadd.f32 %v2801_v49, %v1410_v53  ;;  %v1095_v44 = vmax.f32 %v2979_v2, %v1051_v3 }
 0x188   : > { %v2076_v48 = vpop.f32.mrf.mxu0  ;;  %v2155_v10 = vpop.f32.mrf.mxu1 }
 0x189   : > { %v1467_v15 = vmax.f32 %v1442_v0, 0.0  ;;  %v1411_v25 = vmax.f32 %v1095_v44, %v1367_v23 }
 0x18a   : > { %v1056_v61 = vpop.f32.mrf.mxu0  ;;  %v1372_v45 = vpop.f32.mrf.mxu1 }
 0x18b   : > { %1493 = vst.msk [vmem:[%s2810_s27 + $0x98] sm:$0xff] %vm1473_vm3, %v1467_v15  ;;  %v1443_v21 = vadd.f32 %v2801_v49, %v1411_v25  ;;  %v1096_v46 = vmax.f32 %v2980_v22, %v1056_v61 }
 0x18c   : > { %v2079_v47 = vpop.f32.mrf.mxu0  ;;  %v2158_v57 = vpop.f32.mrf.mxu1 }
 0x18d   : > { %v1468_v42 = vmax.f32 %v1443_v21, 0.0  ;;  %v1412_v43 = vmax.f32 %v1096_v46, %v1372_v45 }
 0x18e   : > { %v1061_v58 = vpop.f32.mrf.mxu0  ;;  %v1377_v54 = vpop.f32.mrf.mxu1 }
 0x18f   : > { %1494 = vst.msk [vmem:[%s2810_s27 + $0xa0] sm:$0xff] %vm1473_vm3, %v1468_v42  ;;  %v1444_v55 = vadd.f32 %v2801_v49, %v1412_v43  ;;  %v1097_v7 = vmax.f32 %v2981_v6, %v1061_v58 }
 0x190   : > { %v2082_v13 = vpop.f32.mrf.mxu0  ;;  %v2161_v26 = vpop.f32.mrf.mxu1 }
 0x191   : > { %v1469_v4 = vmax.f32 %v1444_v55, 0.0  ;;  %v1413_v14 = vmax.f32 %v1097_v7, %v1377_v54 }
 0x192   : > { %v1066_v27 = vpop.f32.mrf.mxu0  ;;  %v1382_v5 = vpop.f32.mrf.mxu1 }
 0x193   : > { %1495 = vst.msk [vmem:[%s2810_s27 + $0xa8] sm:$0xff] %vm1473_vm3, %v1469_v4  ;;  %v1445_v9 = vadd.f32 %v2801_v49, %v1413_v14  ;;  %v1098_v62 = vmax.f32 %v2982_v56, %v1066_v27 }
 0x194   : > { %v2085_v41 = vpop.f32.mrf.mxu0  ;;  %v2164_v38 = vpop.f32.mrf.mxu1 }
 0x195   : > { %v1470_v24 = vmax.f32 %v1445_v9, 0.0  ;;  %v1414_v35 = vmax.f32 %v1098_v62, %v1382_v5 }
 0x196   : > { %v1071_v51 = vpop.f32.mrf.mxu0  ;;  %v1387_v33 = vpop.f32.mrf.mxu1 }
 0x197   : > { %1496 = vst.msk [vmem:[%s2810_s27 + $0xb0] sm:$0xff] %vm1473_vm3, %v1470_v24  ;;  %v1446_v11 = vadd.f32 %v2801_v49, %v1414_v35  ;;  %v1099_v20 = vmax.f32 %v2983_v19, %v1071_v51 }
 0x198   : > { %v2088_v31 = vpop.f32.mrf.mxu0  ;;  %v2167_v32 = vpop.f32.mrf.mxu1 }
 0x199   : > { %v1471_v12 = vmax.f32 %v1446_v11, 0.0  ;;  %v1415_v28 = vmax.f32 %v1099_v20, %v1387_v33 }
 0x19b   : > { %1497 = vst.msk [vmem:[%s2810_s27 + $0xb8] sm:$0xff] %vm1473_vm3, %v1471_v12  ;;  %v1447_v63 = vadd.f32 %v2801_v49, %v1415_v28 }
 0x19d   : > { %v1472_v59 = vmax.f32 %v1447_v63, 0.0 }
 0x19f   : > { %1499 = vst.msk [vmem:[%s2810_s27 + $0xc0] sm:$0xf] %vm1498_vm4, %v1472_v59 }
 0x1a0 PF: > { %s13_s12 = sadd.s32 1, %s2186_s12  }
 0x1a1   : > { %p10_p4 = scmp.ge.s32.totalorder %s13_s12, 4  }
 0x1a3   :  { %12 = sbr.rel (!%p10_p4) target bundleno = 1 (0x1), region = 65 }

// kernel: conv_feature_extractor.4
= control target key start
LH: loop header
LB: loop body
LE: loop exit
PB: predicated region body
PF: predicated region fallthrough
CT: control target
= control target key end

     0   :  { %s1808_s12 = smov 0   ;;  %s2479_s0 = inlined_call_operand.vmem [shape: f32[2,4,49,288], index: 0, kind: input, shape index: {}]   ;;  %s2480_s1 = inlined_call_operand.vmem [shape: f32[288,64], index: 1, kind: input, shape index: {}]   ;;  %s2481_s2 = inlined_call_operand.vmem [shape: f32[1,64], index: 2, kind: input, shape index: {}]   ;;  %s2482_s3 = inlined_call_operand.vmem [shape: f32[2,49,64], index: 3, kind: output, shape index: {}]  }
   0x1 LB: > { %s1285_s13 = sadd.s32 4294967295, %s1784_s12   ;;  %p1289_p0 = scmp.ge.s32.totalorder %s1784_s12, 1  ;;  %s1784_s12 = sphi %s1808_s12, %s13_s12  }
   0x2   : > { %p137_p1 = scmp.lt.s32.totalorder %s1784_s12, 3 }
   0x4   : > { %p138_p2 = pnand %p1289_p0, %p137_p1 }
   0x6   : > { %141 = sbr.rel (%p138_p2) target bundleno = 365 (0x16d), region = 32 }
   0xb   : > { %v1819_v0 = vld [vmem:[%s2480_s1 + $0xf8] sm:$0xff]  ;;  %p161_p3 = scmp.lt.s32.totalorder %s1285_s13, 1  ;;  %v1786_v3 = vmov 0.0   ;;  %v1836_v4 = vld [vmem:[%s2480_s1 + $0xf0] sm:$0xff]  ;;  %v1853_v7 = vld [vmem:[%s2480_s1 + $0xe8] sm:$0xff]  ;;  %vm228_vm0 = vcmask 261120  }
   0xc   : > { %v1824_v1 = vld [vmem:[%s2480_s1 + $0x78] sm:$0xff]  ;;  %1386 = vmatprep.subr.mxu0 %v1819_v0  ;;  %1642 = vmatprep.subr.mxu1 %v1786_v3  ;;  %v1841_v5 = vld [vmem:[%s2480_s1 + $0x70] sm:$0xff]  ;;  %v1862_v8 = vld [vmem:[%s2480_s1 + $0x68] sm:$0xff]  ;;  %vm1787_vm1 = vmmov 0   ;;  %vm1221_vm2 = vcmask 523264   ;;  %vm1228_vm3 = vcmask 516096  }
   0xd   : > { %v1829_v2 = vld [vmem:[%s2480_s1 + $0x118] sm:$0xff]  ;;  %v1846_v6 = vld [vmem:[%s2480_s1 + $0x110] sm:$0xff]  ;;  %1387 = vmatpush3.msra.mxu0 %v1824_v1  ;;  %s2488_s13 = smov (!%p161_p3, %s1285_s13), 1  ;;  %v1867_v9 = vld [vmem:[%s2480_s1 + $0x108] sm:$0xff]  ;;  %1650 = vmatprep.mubr.msk.f32.mxu1 %vm1787_vm1, %v1786_v3 }
   0xe   : > { %1643 = vmatpush3.msra.mxu1 %v1829_v2  ;;  %1388 = vmatprep.subr.mxu0 %v1836_v4  ;;  %v1874_v10 = vld [vmem:[%s2480_s1 + $0xe0] sm:$0xff]  ;;  %s1766_s7 = smul.u32 672, %s2488_s13  ;;  %v1894_v13 = vld [vmem:[%s2480_s1 + $0xd8] sm:$0xff]  ;;  %v1914_v16 = vld [vmem:[%s2480_s1 + $0xd0] sm:$0xff] }
   0xf   : > { %1644 = vmatprep.subr.mxu1 %v1786_v3  ;;  %1389 = vmatpush3.msra.mxu0 %v1841_v5  ;;  %v1882_v11 = vld [vmem:[%s2480_s1 + $0x60] sm:$0xff]  ;;  %v1906_v14 = vld [vmem:[%s2480_s1 + $0x58] sm:$0xff]  ;;  %v1922_v17 = vld [vmem:[%s2480_s1 + $0x50] sm:$0xff] }
  0x10   : > { %1645 = vmatpush3.msra.mxu1 %v1846_v6  ;;  %1390 = vmatprep.subr.mxu0 %v1853_v7  ;;  %v1887_v12 = vld [vmem:[%s2480_s1 + $0x100] sm:$0xff]  ;;  %s1899_s18 = scalar_lea.vmem %s2479_s0, %s1766_s7  ;;  %v1929_v18 = vld [vmem:[%s2480_s1 + $0xc8] sm:$0xff]  ;;  %v1957_v22 = vld [vmem:[%s2480_s1 + $0xb8] sm:$0xff] }
  0x11   : > { %1646 = vmatprep.subr.mxu1 %v1786_v3  ;;  %1391 = vmatpush3.msra.mxu0 %v1862_v8  ;;  %v209_v15 = vld [vmem:[%s1899_s18 + $0x10] sm:$0xff]  ;;  %v1936_v19 = vld [vmem:[%s2480_s1 + $0x48] sm:$0xff]  ;;  %v1943_v20 = vld [vmem:[%s2480_s1 + $0xc0] sm:$0xff] }
  0x12   : > { %1647 = vmatpush3.msra.mxu1 %v1867_v9  ;;  %1392 = vmatprep.subr.mxu0 %v1874_v10  ;;  %v1950_v21 = vld [vmem:[%s2480_s1 + $0x40] sm:$0xff]  ;;  %v1966_v23 = vld [vmem:[%s2480_s1 + $0x38] sm:$0xff]  ;;  %v212_v24 = vld [vmem:[%s1899_s18 + $0x28] sm:$0xff] }
  0x13   : > { %1648 = vmatprep.subr.mxu1 %v1786_v3  ;;  %1393 = vmatpush3.msra.mxu0 %v1882_v11  ;;  %v1974_v25 = vld [vmem:[%s2480_s1 + $0xb0] sm:$0xff]  ;;  %v1989_v27 = vld [vmem:[%s2480_s1 + $0xa8] sm:$0xff]  ;;  %v215_v29 = vld [vmem:[%s1899_s18 + $0x40] sm:$0xff] }
  0x14   : > { %1649 = vmatpush3.msra.mxu1 %v1887_v12  ;;  %1394 = vmatprep.subr.mxu0 %v1894_v13  ;;  %v1982_v26 = vld [vmem:[%s2480_s1 + $0x30] sm:$0xff]  ;;  %v1998_v28 = vld [vmem:[%s2480_s1 + $0x28] sm:$0xff]  ;;  %v2006_v30 = vld [vmem:[%s2480_s1 + $0xa0] sm:$0xff] }
  0x15   : > { %1450 = vmatprep.subr.mxu1 %v1819_v0  ;;  %1395 = vmatpush3.msra.mxu0 %v1906_v14  ;;  %v2014_v31 = vld [vmem:[%s2480_s1 + $0x20] sm:$0xff]  ;;  %v2021_v32 = vld [vmem:[%s2480_s1 + $0x98] sm:$0xff]  ;;  %v2038_v35 = vld [vmem:[%s2480_s1 + $0x90] sm:$0xff] }
  0x16   : > { %1651 = vmatmul.mubr.msk.f32.vlgmr.msra.gmra.mxu1 %vm228_vm0, %v209_v15  ;;  %1396 = vmatprep.subr.mxu0 %v1914_v16  ;;  %v2030_v33 = vld [vmem:[%s2480_s1 + $0x18] sm:$0xff]  ;;  %v2046_v36 = vld [vmem:[%s2480_s1 + $0x10] sm:$0xff]  ;;  %v2053_v37 = vld [vmem:[%s2480_s1 + $0x88] sm:$0xff] }
  0x17   : > { %1451 = vmatpush3.msra.mxu1 %v1824_v1  ;;  %1397 = vmatpush3.msra.mxu0 %v1922_v17  ;;  %v218_v34 = vld [vmem:[%s1899_s18 + $0x58] sm:$0xff]  ;;  %v2062_v38 = vld [vmem:[%s2480_s1 + $0x8] sm:$0xff]  ;;  %v221_v39 = vld [vmem:[%s1899_s18 + $0x70] sm:$0xff] }
  0x18   : > { %1452 = vmatprep.subr.mxu1 %v1836_v4  ;;  %1398 = vmatprep.subr.mxu0 %v1929_v18  ;;  %v2070_v40 = vld [vmem:[%s2480_s1 + $0x80] sm:$0xff]  ;;  %v208_v42 = vld [vmem:[%s1899_s18 + $0x8] sm:$0xff]  ;;  %v210_v46 = vld [vmem:[%s1899_s18 + $0x18] sm:$0xff] }
  0x19   : > { %1453 = vmatpush3.msra.mxu1 %v1841_v5  ;;  %1399 = vmatpush3.msra.mxu0 %v1936_v19  ;;  %v2078_v41 = vld [vmem:[%s2480_s1] sm:$0xff]  ;;  %v224_v44 = vld [vmem:[%s1899_s18 + $0x88] sm:$0xff]  ;;  %v214_v48 = vld [vmem:[%s1899_s18 + $0x38] sm:$0xff] }
  0x1a   : > { %1454 = vmatprep.subr.mxu1 %v1853_v7  ;;  %1400 = vmatprep.subr.mxu0 %v1943_v20  ;;  %v207_v43 = vld [vmem:[%s1899_s18] sm:$0xff]  ;;  %v213_v49 = vld [vmem:[%s1899_s18 + $0x30] sm:$0xff]  ;;  %v1299_v51 = vld [vmem:[%s1899_s18 + $0xa8] sm:$0xff] }
  0x1b   : > { %1455 = vmatpush3.msra.mxu1 %v1862_v8  ;;  %1401 = vmatpush3.msra.mxu0 %v1950_v21  ;;  %v211_v45 = vld [vmem:[%s1899_s18 + $0x20] sm:$0xff]  ;;  %v1300_v50 = vld [vmem:[%s1899_s18 + $0xb0] sm:$0xff]  ;;  %v216_v53 = vld [vmem:[%s1899_s18 + $0x48] sm:$0xff] }
  0x1c   : > { %1456 = vmatprep.subr.mxu1 %v1874_v10  ;;  %1402 = vmatprep.subr.mxu0 %v1957_v22  ;;  %v227_v47 = vld [vmem:[%s1899_s18 + $0xa0] sm:$0x1]  ;;  %v217_v52 = vld [vmem:[%s1899_s18 + $0x50] sm:$0xff]  ;;  %v220_v54 = vld [vmem:[%s1899_s18 + $0x68] sm:$0xff] }
  0x1d   : > { %1457 = vmatpush3.msra.mxu1 %v1882_v11  ;;  %1653 = vmatprep.mubr.msk.f32.mxu1 %vm1787_vm1, %v1786_v3  ;;  %v219_v55 = vld [vmem:[%s1899_s18 + $0x60] sm:$0xff]  ;;  %v1303_v56 = vld [vmem:[%s1899_s18 + $0xc8] sm:$0xff]  ;;  %v222_v59 = vld [vmem:[%s1899_s18 + $0x78] sm:$0xff] }
  0x1e   : > { %1458 = vmatprep.subr.mxu1 %v1894_v13  ;;  %1403 = vmatpush3.msra.mxu0 %v1966_v23  ;;  %v223_v57 = vld [vmem:[%s1899_s18 + $0x80] sm:$0xff]  ;;  %v1305_v61 = vld [vmem:[%s1899_s18 + $0xd8] sm:$0xff]  ;;  %v225_v63 = vld [vmem:[%s1899_s18 + $0x90] sm:$0x1] }
  0x1f   : > { %1654 = vmatmul.mubr.msk.f32.gmra.mxu1 %vm228_vm0, %v212_v24  ;;  %1404 = vmatprep.subr.mxu0 %v1974_v25  ;;  %v1302_v58 = vld [vmem:[%s1899_s18 + $0xc0] sm:$0xff]  ;;  %v226_v62 = vld [vmem:[%s1899_s18 + $0x98] sm:$0x1]  ;;  %v1308_v24 = vld [vmem:[%s1899_s18 + $0xf0] sm:$0xff] }
  0x20   : > { %1459 = vmatpush3.msra.mxu1 %v1906_v14  ;;  %1405 = vmatpush3.msra.mxu0 %v1982_v26  ;;  %v1306_v60 = vld [vmem:[%s1899_s18 + $0xe0] sm:$0xff]  ;;  %v1309_v15 = vld [vmem:[%s1899_s18 + $0xf8] sm:$0xff] }
  0x21   : > { %1460 = vmatprep.subr.mxu1 %v1914_v16  ;;  %1406 = vmatprep.subr.mxu0 %v1989_v27 }
  0x22   : > { %1461 = vmatpush3.msra.mxu1 %v1922_v17  ;;  %1656 = vmatprep.mubr.msk.f32.mxu1 %vm1787_vm1, %v1786_v3 }
  0x23   : > { %1462 = vmatprep.subr.mxu1 %v1929_v18  ;;  %1407 = vmatpush3.msra.mxu0 %v1998_v28 }
  0x24   : > { %1657 = vmatmul.mubr.msk.f32.gmra.mxu1 %vm228_vm0, %v215_v29  ;;  %1408 = vmatprep.subr.mxu0 %v2006_v30  ;;  %v1312_v29 = vld [vmem:[%s1899_s18 + $0x110] sm:$0xff] }
  0x25   : > { %1463 = vmatpush3.msra.mxu1 %v1936_v19  ;;  %1409 = vmatpush3.msra.mxu0 %v2014_v31 }
  0x26   : > { %1464 = vmatprep.subr.mxu1 %v1943_v20  ;;  %1410 = vmatprep.subr.mxu0 %v2021_v32 }
  0x27   : > { %1465 = vmatpush3.msra.mxu1 %v1950_v21  ;;  %1659 = vmatprep.mubr.msk.f32.mxu1 %vm1787_vm1, %v1786_v3 }
  0x28   : > { %1466 = vmatprep.subr.mxu1 %v1957_v22  ;;  %1411 = vmatpush3.msra.mxu0 %v2030_v33 }
  0x29   : > { %1660 = vmatmul.mubr.msk.f32.gmra.mxu1 %vm228_vm0, %v218_v34  ;;  %1412 = vmatprep.subr.mxu0 %v2038_v35  ;;  %v1301_v34 = vld [vmem:[%s1899_s18 + $0xb8] sm:$0xff] }
  0x2a   : > { %1467 = vmatpush3.msra.mxu1 %v1966_v23  ;;  %1413 = vmatpush3.msra.mxu0 %v2046_v36 }
  0x2b   : > { %1468 = vmatprep.subr.mxu1 %v1974_v25  ;;  %1414 = vmatprep.subr.mxu0 %v2053_v37 }
  0x2c   : > { %1469 = vmatpush3.msra.mxu1 %v1982_v26  ;;  %1662 = vmatprep.mubr.msk.f32.mxu1 %vm1787_vm1, %v1786_v3 }
  0x2d   : > { %1470 = vmatprep.subr.mxu1 %v1989_v27  ;;  %1415 = vmatpush3.msra.mxu0 %v2062_v38 }
  0x2e   : > { %1663 = vmatmul.mubr.msk.f32.gmra.mxu1 %vm228_vm0, %v221_v39  ;;  %1416 = vmatprep.subr.mxu0 %v2070_v40  ;;  %v1311_v39 = vld [vmem:[%s1899_s18 + $0x108] sm:$0xff] }
  0x2f   : > { %1471 = vmatpush3.msra.mxu1 %v1998_v28  ;;  %1417 = vmatpush3.msra.mxu0 %v2078_v41 }
  0x30   : > { %1472 = vmatprep.subr.mxu1 %v2006_v30  ;;  %314 = vmatprep.mubr.f32.mxu0 %v208_v42  ;;  %v1315_v42 = vld [vmem:[%s1899_s18 + $0x128] sm:$0xff] }
  0x31   : > { %1473 = vmatpush3.msra.mxu1 %v2014_v31  ;;  %315 = vmatmul.mubr.f32.vlgmr.msra.gmra.mxu0 %v207_v43  ;;  %v1304_v43 = vld [vmem:[%s1899_s18 + $0xd0] sm:$0xff] }
  0x32   : > { %1665 = vmatprep.mubr.msk.f32.mxu1 %vm1787_vm1, %v1786_v3  ;;  %1474 = vmatprep.subr.mxu1 %v2021_v32 }
  0x33   : > { %1671 = vmatprep.subr.mxu0 %v1786_v3  ;;  %1666 = vmatmul.mubr.msk.f32.gmra.mxu1 %vm228_vm0, %v224_v44  ;;  %v1314_v44 = vld [vmem:[%s1899_s18 + $0x120] sm:$0xff] }
  0x34   : > { %1475 = vmatpush3.msra.mxu1 %v2030_v33  ;;  %1672 = vmatpush3.msra.mxu0 %v1829_v2 }
  0x35   : > { %1476 = vmatprep.subr.mxu1 %v2038_v35  ;;  %319 = vmatprep.mubr.f32.mxu0 %v211_v45  ;;  %v1318_v45 = vld [vmem:[%s1899_s18 + $0x140] sm:$0x1] }
  0x36   : > { %1477 = vmatpush3.msra.mxu1 %v2046_v36  ;;  %320 = vmatmul.mubr.f32.gmra.mxu0 %v210_v46  ;;  %v1307_v46 = vld [vmem:[%s1899_s18 + $0xe8] sm:$0xff] }
  0x37   : > { %1668 = vmatprep.mubr.msk.f32.mxu1 %vm1787_vm1, %v1786_v3  ;;  %1478 = vmatprep.subr.mxu1 %v2053_v37 }
  0x38   : > { %1669 = vmatmul.mubr.msk.f32.gmra.mxu1 %vm228_vm0, %v227_v47  ;;  %324 = vmatprep.mubr.f32.mxu0 %v214_v48  ;;  %v1317_v47 = vld [vmem:[%s1899_s18 + $0x138] sm:$0x1] }
  0x39   : > { %1479 = vmatpush3.msra.mxu1 %v2062_v38  ;;  %1673 = vmatprep.subr.mxu0 %v1786_v3  ;;  %v1328_v48 = vld [vmem:[%s1899_s18 + $0x158] sm:$0xff] }
  0x3a   : > { %1480 = vmatprep.subr.mxu1 %v2070_v40  ;;  %325 = vmatmul.mubr.f32.gmra.mxu0 %v213_v49  ;;  %v1310_v49 = vld [vmem:[%s1899_s18 + $0x100] sm:$0xff] }
  0x3b   : > { %1481 = vmatpush3.msra.mxu1 %v2078_v41  ;;  %557 = vmatprep.mubr.f32.mxu1 %v1300_v50  ;;  %v1327_v50 = vld [vmem:[%s1899_s18 + $0x150] sm:$0xff] }
  0x3c   : > { %1674 = vmatpush3.msra.mxu0 %v1846_v6  ;;  %1514 = vmatprep.subr.mxu1 %v1819_v0 }
  0x3d   : > { %558 = vmatmul.mubr.f32.vlgmr.msra.gmra.mxu1 %v1299_v51  ;;  %329 = vmatprep.mubr.f32.mxu0 %v217_v52  ;;  %v1313_v51 = vld [vmem:[%s1899_s18 + $0x118] sm:$0xff]  ;;  %v1331_v52 = vld [vmem:[%s1899_s18 + $0x170] sm:$0xff] }
  0x3e   : > { %1515 = vmatpush3.msra.mxu1 %v1824_v1  ;;  %330 = vmatmul.mubr.f32.gmra.mxu0 %v216_v53  ;;  %v1330_v53 = vld [vmem:[%s1899_s18 + $0x168] sm:$0xff] }
  0x3f   : > { %1516 = vmatprep.subr.mxu1 %v1836_v4  ;;  %1675 = vmatprep.subr.mxu0 %v1786_v3 }
  0x40   : > { %1517 = vmatpush3.msra.mxu1 %v1841_v5  ;;  %334 = vmatprep.mubr.f32.mxu0 %v220_v54  ;;  %v1366_v54 = vld [vmem:[%s1899_s18 + $0x250] sm:$0xff] }
  0x41   : > { %1518 = vmatprep.subr.mxu1 %v1853_v7  ;;  %1676 = vmatpush3.msra.mxu0 %v1867_v9 }
  0x42   : > { %1519 = vmatpush3.msra.mxu1 %v1862_v8  ;;  %335 = vmatmul.mubr.f32.gmra.mxu0 %v219_v55  ;;  %v1369_v55 = vld [vmem:[%s1899_s18 + $0x268] sm:$0xff] }
  0x43   : > { %1520 = vmatprep.subr.mxu1 %v1874_v10  ;;  %562 = vmatprep.mubr.f32.mxu1 %v1303_v56  ;;  %v1375_v56 = vld [vmem:[%s1899_s18 + $0x298] sm:$0x1] }
  0x44   : > { %1521 = vmatpush3.msra.mxu1 %v1882_v11  ;;  %339 = vmatprep.mubr.f32.mxu0 %v223_v57  ;;  %v1372_v57 = vld [vmem:[%s1899_s18 + $0x280] sm:$0xff] }
  0x45   : > { %1522 = vmatprep.subr.mxu1 %v1894_v13  ;;  %563 = vmatmul.mubr.f32.gmra.mxu1 %v1302_v58 }
  0x46   : > { %1523 = vmatpush3.msra.mxu1 %v1906_v14  ;;  %340 = vmatmul.mubr.f32.gmra.mxu0 %v222_v59 }
  0x47   : > { %1524 = vmatprep.subr.mxu1 %v1914_v16  ;;  %567 = vmatprep.mubr.f32.mxu1 %v1306_v60 }
  0x48   : > { %1525 = vmatpush3.msra.mxu1 %v1922_v17  ;;  %1677 = vmatprep.subr.mxu0 %v1786_v3 }
  0x49   : > { %1526 = vmatprep.subr.mxu1 %v1929_v18  ;;  %568 = vmatmul.mubr.f32.gmra.mxu1 %v1305_v61 }
  0x4a   : > { %1527 = vmatpush3.msra.mxu1 %v1936_v19  ;;  %1678 = vmatpush3.msra.mxu0 %v1887_v12 }
  0x4b   : > { %1528 = vmatprep.subr.mxu1 %v1943_v20  ;;  %344 = vmatprep.mubr.f32.mxu0 %v226_v62 }
  0x4c   : > { %1529 = vmatpush3.msra.mxu1 %v1950_v21  ;;  %345 = vmatmul.mubr.f32.gmra.mxu0 %v225_v63 }
  0x4d   : > { %572 = vmatprep.mubr.f32.mxu1 %v1309_v15  ;;  %1530 = vmatprep.subr.mxu1 %v1957_v22 }
  0x4e   : > { %573 = vmatmul.mubr.f32.gmra.mxu1 %v1308_v24  ;;  %1679 = vmatprep.mubr.msk.f32.mxu0 %vm1787_vm1, %v1786_v3 }
  0x4f   : > { %1531 = vmatpush3.msra.mxu1 %v1966_v23  ;;  %577 = vmatprep.mubr.f32.mxu1 %v1312_v29 }
  0x50   : > { %1532 = vmatprep.subr.mxu1 %v1974_v25  ;;  %1680 = vmatmul.mubr.msk.f32.vlgmr.msra.gmra.mxu0 %vm228_vm0, %v1301_v34 }
  0x51   : > { %1533 = vmatpush3.msra.mxu1 %v1982_v26  ;;  %1700 = vmatprep.subr.mxu0 %v1786_v3 }
  0x52   : > { %1534 = vmatprep.subr.mxu1 %v1989_v27  ;;  %578 = vmatmul.mubr.f32.gmra.mxu1 %v1311_v39 }
  0x53   : > { %1535 = vmatpush3.msra.mxu1 %v1998_v28  ;;  %1701 = vmatpush3.msra.mxu0 %v1829_v2 }
  0x54   : > { %1536 = vmatprep.subr.mxu1 %v2006_v30  ;;  %1682 = vmatprep.mubr.msk.f32.mxu0 %vm1787_vm1, %v1786_v3 }
  0x55   : > { %1537 = vmatpush3.msra.mxu1 %v2014_v31  ;;  %582 = vmatprep.mubr.f32.mxu1 %v1315_v42 }
  0x56   : > { %1683 = vmatmul.mubr.msk.f32.gmra.mxu0 %vm228_vm0, %v1304_v43  ;;  %1538 = vmatprep.subr.mxu1 %v2021_v32 }
  0x57   : > { %583 = vmatmul.mubr.f32.gmra.mxu1 %v1314_v44  ;;  %1685 = vmatprep.mubr.msk.f32.mxu0 %vm1787_vm1, %v1786_v3 }
  0x58   : > { %1539 = vmatpush3.msra.mxu1 %v2030_v33  ;;  %1702 = vmatprep.subr.mxu0 %v1786_v3 }
  0x59   : > { %1540 = vmatprep.subr.mxu1 %v2038_v35  ;;  %587 = vmatprep.mubr.f32.mxu1 %v1318_v45 }
  0x5a   : > { %1541 = vmatpush3.msra.mxu1 %v2046_v36  ;;  %1686 = vmatmul.mubr.msk.f32.gmra.mxu0 %vm228_vm0, %v1307_v46 }
  0x5b   : > { %1542 = vmatprep.subr.mxu1 %v2053_v37  ;;  %1703 = vmatpush3.msra.mxu0 %v1846_v6 }
  0x5c   : > { %588 = vmatmul.mubr.f32.gmra.mxu1 %v1317_v47  ;;  %1688 = vmatprep.mubr.msk.f32.mxu0 %vm1787_vm1, %v1786_v3 }
  0x5d   : > { %1543 = vmatpush3.msra.mxu1 %v2062_v38  ;;  %807 = vmatprep.mubr.f32.mxu1 %v1328_v48 }
  0x5e   : > { %1544 = vmatprep.subr.mxu1 %v2070_v40  ;;  %1689 = vmatmul.mubr.msk.f32.gmra.mxu0 %vm228_vm0, %v1310_v49 }
  0x5f   : > { %1545 = vmatpush3.msra.mxu1 %v2078_v41  ;;  %1704 = vmatprep.subr.mxu0 %v1786_v3 }
  0x60   : > { %1578 = vmatprep.subr.mxu1 %v1819_v0  ;;  %808 = vmatmul.mubr.f32.vlgmr.msra.gmra.mxu1 %v1327_v50  ;;  %v1316_v0 = vld [vmem:[%s1899_s18 + $0x130] sm:$0xff] }
  0x61   : > { %1579 = vmatpush3.msra.mxu1 %v1824_v1  ;;  %1691 = vmatprep.mubr.msk.f32.mxu0 %vm1787_vm1, %v1786_v3  ;;  %v1334_v1 = vld [vmem:[%s1899_s18 + $0x188] sm:$0xff] }
  0x62   : > { %1580 = vmatprep.subr.mxu1 %v1836_v4  ;;  %1705 = vmatpush3.msra.mxu0 %v1867_v9  ;;  %v1319_v4 = vld [vmem:[%s1899_s18 + $0x148] sm:$0x1] }
  0x63   : > { %1581 = vmatpush3.msra.mxu1 %v1841_v5  ;;  %1692 = vmatmul.mubr.msk.f32.gmra.mxu0 %vm228_vm0, %v1313_v51  ;;  %v1333_v5 = vld [vmem:[%s1899_s18 + $0x180] sm:$0xff] }
  0x64   : > { %1582 = vmatprep.subr.mxu1 %v1853_v7  ;;  %1694 = vmatprep.mubr.msk.f32.mxu0 %vm1787_vm1, %v1786_v3  ;;  %v1337_v7 = vld [vmem:[%s1899_s18 + $0x1a0] sm:$0xff] }
  0x65   : > { %1583 = vmatpush3.msra.mxu1 %v1862_v8  ;;  %812 = vmatprep.mubr.f32.mxu1 %v1331_v52  ;;  %v1329_v8 = vld [vmem:[%s1899_s18 + $0x160] sm:$0xff] }
  0x66   : > { %1584 = vmatprep.subr.mxu1 %v1874_v10  ;;  %813 = vmatmul.mubr.f32.gmra.mxu1 %v1330_v53  ;;  %v1336_v10 = vld [vmem:[%s1899_s18 + $0x198] sm:$0xff] }
  0x67   : > { %1585 = vmatpush3.msra.mxu1 %v1882_v11  ;;  %1695 = vmatmul.mubr.msk.f32.gmra.mxu0 %vm228_vm0, %v1316_v0  ;;  %v1340_v11 = vld [vmem:[%s1899_s18 + $0x1b8] sm:$0xff] }
  0x68   : > { %1586 = vmatprep.subr.mxu1 %v1894_v13  ;;  %1706 = vmatprep.subr.mxu0 %v1786_v3  ;;  %v1339_v13 = vld [vmem:[%s1899_s18 + $0x1b0] sm:$0xff] }
  0x69   : > { %1587 = vmatpush3.msra.mxu1 %v1906_v14  ;;  %1707 = vmatpush3.msra.mxu0 %v1887_v12  ;;  %v1332_v14 = vld [vmem:[%s1899_s18 + $0x178] sm:$0xff] }
  0x6a   : > { %1588 = vmatprep.subr.mxu1 %v1914_v16  ;;  %1697 = vmatprep.mubr.msk.f32.mxu0 %vm1787_vm1, %v1786_v3  ;;  %v1343_v16 = vld [vmem:[%s1899_s18 + $0x1d0] sm:$0xff] }
  0x6b   : > { %817 = vmatprep.mubr.f32.mxu1 %v1334_v1  ;;  %1589 = vmatpush3.msra.mxu1 %v1922_v17  ;;  %v1335_v17 = vld [vmem:[%s1899_s18 + $0x190] sm:$0xff] }
  0x6c   : > { %1698 = vmatmul.mubr.msk.f32.gmra.mxu0 %vm228_vm0, %v1319_v4  ;;  %818 = vmatmul.mubr.f32.gmra.mxu1 %v1333_v5 }
  0x6d   : > { %1590 = vmatprep.subr.mxu1 %v1929_v18  ;;  %822 = vmatprep.mubr.f32.mxu1 %v1337_v7  ;;  %v1342_v18 = vld [vmem:[%s1899_s18 + $0x1c8] sm:$0xff] }
  0x6e   : > { %1591 = vmatpush3.msra.mxu1 %v1936_v19  ;;  %1708 = vmatprep.mubr.msk.f32.mxu0 %vm1787_vm1, %v1786_v3  ;;  %v1346_v19 = vld [vmem:[%s1899_s18 + $0x1e8] sm:$0x1] }
  0x6f   : > { %1592 = vmatprep.subr.mxu1 %v1943_v20  ;;  %1729 = vmatprep.subr.mxu0 %v1786_v3  ;;  %v1345_v20 = vld [vmem:[%s1899_s18 + $0x1e0] sm:$0x1] }
  0x70   : > { %1593 = vmatpush3.msra.mxu1 %v1950_v21  ;;  %1709 = vmatmul.mubr.msk.f32.vlgmr.msra.gmra.mxu0 %vm228_vm0, %v1329_v8  ;;  %v1338_v21 = vld [vmem:[%s1899_s18 + $0x1a8] sm:$0xff] }
  0x71   : > { %823 = vmatmul.mubr.f32.gmra.mxu1 %v1336_v10  ;;  %1594 = vmatprep.subr.mxu1 %v1957_v22  ;;  %v1356_v22 = vld [vmem:[%s1899_s18 + $0x200] sm:$0xff] }
  0x72   : > { %1595 = vmatpush3.msra.mxu1 %v1966_v23  ;;  %1730 = vmatpush3.msra.mxu0 %v1829_v2  ;;  %v1341_v23 = vld [vmem:[%s1899_s18 + $0x1c0] sm:$0xff] }
  0x73   : > { %1596 = vmatprep.subr.mxu1 %v1974_v25  ;;  %827 = vmatprep.mubr.f32.mxu1 %v1340_v11  ;;  %v1355_v25 = vld [vmem:[%s1899_s18 + $0x1f8] sm:$0xff] }
  0x74   : > { %1711 = vmatprep.mubr.msk.f32.mxu0 %vm1787_vm1, %v1786_v3  ;;  %1597 = vmatpush3.msra.mxu1 %v1982_v26  ;;  %v1359_v26 = vld [vmem:[%s1899_s18 + $0x218] sm:$0xff] }
  0x75   : > { %828 = vmatmul.mubr.f32.gmra.mxu1 %v1339_v13  ;;  %1712 = vmatmul.mubr.msk.f32.gmra.mxu0 %vm228_vm0, %v1332_v14 }
  0x76   : > { %1598 = vmatprep.subr.mxu1 %v1989_v27  ;;  %832 = vmatprep.mubr.f32.mxu1 %v1343_v16  ;;  %v1344_v27 = vld [vmem:[%s1899_s18 + $0x1d8] sm:$0xff] }
  0x77   : > { %1599 = vmatpush3.msra.mxu1 %v1998_v28  ;;  %1714 = vmatprep.mubr.msk.f32.mxu0 %vm1787_vm1, %v1786_v3  ;;  %v1358_v28 = vld [vmem:[%s1899_s18 + $0x210] sm:$0xff] }
  0x78   : > { %1600 = vmatprep.subr.mxu1 %v2006_v30  ;;  %1731 = vmatprep.subr.mxu0 %v1786_v3  ;;  %v1362_v30 = vld [vmem:[%s1899_s18 + $0x230] sm:$0xff] }
  0x79   : > { %1601 = vmatpush3.msra.mxu1 %v2014_v31  ;;  %1715 = vmatmul.mubr.msk.f32.gmra.mxu0 %vm228_vm0, %v1335_v17  ;;  %v1347_v31 = vld [vmem:[%s1899_s18 + $0x1f0] sm:$0x1] }
  0x7a   : > { %833 = vmatmul.mubr.f32.gmra.mxu1 %v1342_v18  ;;  %1602 = vmatprep.subr.mxu1 %v2021_v32  ;;  %v1361_v32 = vld [vmem:[%s1899_s18 + $0x228] sm:$0xff] }
  0x7b   : > { %1732 = vmatpush3.msra.mxu0 %v1846_v6  ;;  %1603 = vmatpush3.msra.mxu1 %v2030_v33  ;;  %v1365_v33 = vld [vmem:[%s1899_s18 + $0x248] sm:$0xff] }
  0x7c   : > { %1604 = vmatprep.subr.mxu1 %v2038_v35  ;;  %837 = vmatprep.mubr.f32.mxu1 %v1346_v19  ;;  %v1357_v35 = vld [vmem:[%s1899_s18 + $0x208] sm:$0xff] }
  0x7d   : > { %1717 = vmatprep.mubr.msk.f32.mxu0 %vm1787_vm1, %v1786_v3  ;;  %1605 = vmatpush3.msra.mxu1 %v2046_v36  ;;  %v1368_v36 = vld [vmem:[%s1899_s18 + $0x260] sm:$0xff] }
  0x7e   : > { %838 = vmatmul.mubr.f32.gmra.mxu1 %v1345_v20  ;;  %1718 = vmatmul.mubr.msk.f32.gmra.mxu0 %vm228_vm0, %v1338_v21 }
  0x7f   : > { %1606 = vmatprep.subr.mxu1 %v2053_v37  ;;  %1733 = vmatprep.subr.mxu0 %v1786_v3  ;;  %v1360_v37 = vld [vmem:[%s1899_s18 + $0x220] sm:$0xff] }
  0x80   : > { %1607 = vmatpush3.msra.mxu1 %v2062_v38  ;;  %1720 = vmatprep.mubr.msk.f32.mxu0 %vm1787_vm1, %v1786_v3  ;;  %v1371_v38 = vld [vmem:[%s1899_s18 + $0x278] sm:$0xff] }
  0x81   : > { %1608 = vmatprep.subr.mxu1 %v2070_v40  ;;  %1057 = vmatprep.mubr.f32.mxu1 %v1356_v22  ;;  %v1363_v40 = vld [vmem:[%s1899_s18 + $0x238] sm:$0xff] }
  0x82   : > { %1609 = vmatpush3.msra.mxu1 %v2078_v41  ;;  %1734 = vmatpush3.msra.mxu0 %v1867_v9  ;;  %v1374_v41 = vld [vmem:[%s1899_s18 + $0x290] sm:$0x1] }
  0x83   : > { %1721 = vmatmul.mubr.msk.f32.gmra.mxu0 %vm228_vm0, %v1341_v23  ;;  %1058 = vmatmul.mubr.f32.vlgmr.msra.gmra.mxu1 %v1355_v25 }
  0x84   : > { %1723 = vmatprep.mubr.msk.f32.mxu0 %vm1787_vm1, %v1786_v3  ;;  %1062 = vmatprep.mubr.f32.mxu1 %v1359_v26 }
  0x85   : > { %1758 = vmatprep.subr.mxu1 %v1786_v3  ;;  %1735 = vmatprep.subr.mxu0 %v1786_v3 }
  0x86   : > { %1762 = vmatpush3.msra.mxu1 %v1829_v2  ;;  %1736 = vmatpush3.msra.mxu0 %v1887_v12  ;;  %v1364_v2 = vld [vmem:[%s1899_s18 + $0x240] sm:$0xff] }
  0x87   : > { %1724 = vmatmul.mubr.msk.f32.gmra.mxu0 %vm228_vm0, %v1344_v27  ;;  %1063 = vmatmul.mubr.f32.gmra.mxu1 %v1358_v28 }
  0x88   : > { %1726 = vmatprep.mubr.msk.f32.mxu0 %vm1787_vm1, %v1786_v3  ;;  %1067 = vmatprep.mubr.f32.mxu1 %v1362_v30 }
  0x89   : > { %1759 = vmatprep.subr.mxu1 %v1786_v3 }
  0x8a   : > { %1763 = vmatpush3.msra.mxu1 %v1846_v6  ;;  %v1367_v6 = vld [vmem:[%s1899_s18 + $0x258] sm:$0xff] }
  0x8b   : > { %1727 = vmatmul.mubr.msk.f32.gmra.mxu0 %vm228_vm0, %v1347_v31  ;;  %1068 = vmatmul.mubr.f32.gmra.mxu1 %v1361_v32 }
  0x8c   : > { %1072 = vmatprep.mubr.f32.mxu1 %v1365_v33  ;;  %1737 = vmatprep.mubr.msk.f32.mxu0 %vm1787_vm1, %v1786_v3 }
  0x8d   : > { %1760 = vmatprep.subr.mxu1 %v1786_v3 }
  0x8e   : > { %1764 = vmatpush3.msra.mxu1 %v1867_v9  ;;  %v1370_v9 = vld [vmem:[%s1899_s18 + $0x270] sm:$0xff] }
  0x8f   : > { %1073 = vmatmul.mubr.f32.gmra.mxu1 %v1364_v2  ;;  %1738 = vmatmul.mubr.msk.f32.vlgmr.msra.gmra.mxu0 %vm228_vm0, %v1357_v35 }
  0x90   : > { %1077 = vmatprep.mubr.f32.mxu1 %v1368_v36  ;;  %1740 = vmatprep.mubr.msk.f32.mxu0 %vm1787_vm1, %v1786_v3 }
  0x91   : > { %1761 = vmatprep.subr.mxu1 %v1786_v3 }
  0x92   : > { %1765 = vmatpush3.msra.mxu1 %v1887_v12  ;;  %v1373_v12 = vld [vmem:[%s1899_s18 + $0x288] sm:$0x1]  ;;  %s1767_s18 = smul.u32 56, %s2488_s13 }
  0x93   : > { %1078 = vmatmul.mubr.f32.gmra.mxu1 %v1367_v6  ;;  %1741 = vmatmul.mubr.msk.f32.gmra.mxu0 %vm228_vm0, %v1360_v37 }
  0x94   : > { %1082 = vmatprep.mubr.f32.mxu1 %v1371_v38  ;;  %1743 = vmatprep.mubr.msk.f32.mxu0 %vm1787_vm1, %v1786_v3  ;;  %s2432_s20 = scalar_lea.vmem %s2482_s3, %s1767_s18 }
  0x97   : > { %1083 = vmatmul.mubr.f32.gmra.mxu1 %v1370_v9  ;;  %1744 = vmatmul.mubr.msk.f32.gmra.mxu0 %vm228_vm0, %v1363_v40 }
  0x98   : > { %1087 = vmatprep.mubr.f32.mxu1 %v1374_v41  ;;  %1746 = vmatprep.mubr.msk.f32.mxu0 %vm1787_vm1, %v1786_v3 }
  0x9b   : > { %1088 = vmatmul.mubr.f32.gmra.mxu1 %v1373_v12  ;;  %1747 = vmatmul.mubr.msk.f32.gmra.mxu0 %vm228_vm0, %v1366_v54 }
  0x9c   : > { %1749 = vmatprep.mubr.msk.f32.mxu0 %vm1787_vm1, %v1786_v3  ;;  %1755 = vmatprep.mubr.msk.f32.mxu1 %vm1787_vm1, %v1786_v3 }
  0x9f   : > { %1750 = vmatmul.mubr.msk.f32.gmra.mxu0 %vm228_vm0, %v1369_v55  ;;  %1756 = vmatmul.mubr.msk.f32.vlgmr.msra.gmra.mxu1 %vm228_vm0, %v1375_v56 }
  0xa0   : > { %1752 = vmatprep.mubr.msk.f32.mxu0 %vm1787_vm1, %v1786_v3 }
  0xa3   : > { %1753 = vmatmul.mubr.msk.f32.gmra.mxu0 %vm228_vm0, %v1372_v57 }
  0xd6   : > { %v416_v58 = vpop.f32.mrf.mxu1 }
  0xd8   : > { %v1652_v59 = vpop.f32.mrf.mxu1 }
  0xdf   : > { %v421_v60 = vpop.f32.mrf.mxu1 }
  0xe1   : > { %v1655_v61 = vpop.f32.mrf.mxu1 }
  0xe4   : > { %v426_v62 = vpop.f32.mrf.mxu1 }
  0xe6   : > { %v1658_v63 = vpop.f32.mrf.mxu1 }
  0xe9   : > { %v431_v15 = vpop.f32.mrf.mxu1 }
  0xeb   : > { %v1661_v24 = vpop.f32.mrf.mxu1 }
  0xee   : > { %v436_v29 = vpop.f32.mrf.mxu1 }
  0xf0   : > { %v1664_v34 = vpop.f32.mrf.mxu1 }
  0xf1   : > { %v1418_v39 = vpop.f32.mrf.mxu0 }
  0xf3   : > { %v1419_v42 = vpop.f32.mrf.mxu0  ;;  %v441_v43 = vpop.f32.mrf.mxu1 }
  0xf4   : > { %v1420_v44 = vadd.f32 %v1419_v42, %v1418_v39 }
  0xf5   : > { %v1667_v45 = vpop.f32.mrf.mxu1 }
  0xf6   : > { %v2340_v46 = vadd.f32 %v1420_v44, %v416_v58  ;;  %v1421_v3 = vpop.f32.mrf.mxu0 }
  0xf8   : > { %v1422_v47 = vpop.f32.mrf.mxu0  ;;  %v446_v48 = vpop.f32.mrf.mxu1 }
  0xf9   : > { %v1423_v49 = vadd.f32 %v1422_v47, %v1421_v3 }
  0xfa   : > { %v1424_v50 = vpop.f32.mrf.mxu0  ;;  %v1670_v51 = vpop.f32.mrf.mxu1 }
  0xfb   : > { %v2342_v52 = vadd.f32 %v1423_v49, %v421_v60 }
  0xfc   : > { %v1425_v53 = vpop.f32.mrf.mxu0 }
  0xfd   : > { %v1426_v0 = vadd.f32 %v1425_v53, %v1424_v50  ;;  %v2346_v5 = vpop.f32.mrf.mxu1 }
  0xfe   : > { %v1427_v1 = vpop.f32.mrf.mxu0 }
  0xff   : > { %v2344_v4 = vadd.f32 %v1426_v0, %v426_v62  ;;  %v2348_v11 = vpop.f32.mrf.mxu1 }
 0x100   : > { %v1428_v7 = vpop.f32.mrf.mxu0 }
 0x101   : > { %v1429_v8 = vadd.f32 %v1428_v7, %v1427_v1 }
 0x102   : > { %v1430_v10 = vpop.f32.mrf.mxu0 }
 0x103   : > { %v2350_v13 = vadd.f32 %v1429_v8, %v431_v15 }
 0x104   : > { %v1431_v14 = vpop.f32.mrf.mxu0 }
 0x105   : > { %v1432_v16 = vadd.f32 %v1431_v14, %v1430_v10  ;;  %v2352_v17 = vpop.f32.mrf.mxu1 }
 0x106   : > { %v1433_v18 = vpop.f32.mrf.mxu0 }
 0x107   : > { %v2354_v19 = vadd.f32 %v1432_v16, %v436_v29  ;;  %v2356_v20 = vpop.f32.mrf.mxu1 }
 0x108   : > { %v1434_v21 = vpop.f32.mrf.mxu0 }
 0x109   : > { %v1435_v22 = vadd.f32 %v1434_v21, %v1433_v18  ;;  %v2358_v23 = vpop.f32.mrf.mxu1 }
 0x10b   : > { %v2360_v25 = vadd.f32 %v1435_v22, %v441_v43  ;;  %v2362_v26 = vpop.f32.mrf.mxu1 }
 0x10c   : > { %v1436_v27 = vpop.f32.mrf.mxu0 }
 0x10d   : > { %2483 = vst [vmem:[#allocation2_spill] sm:$0xff] %v2360_v25 }
 0x10e   : > { %v1437_v28 = vpop.f32.mrf.mxu0  ;;  %v2364_v30 = vpop.f32.mrf.mxu1 }
 0x10f   : > { %v1438_v31 = vadd.f32 %v1437_v28, %v1436_v27 }
 0x110   : > { %v659_v32 = vpop.f32.mrf.mxu0  ;;  %v2366_v33 = vpop.f32.mrf.mxu1 }
 0x111   : > { %v2368_v2 = vadd.f32 %v1438_v31, %v446_v48  ;;  %v1484_v31 = vadd.f32 %v2348_v11, %v2346_v5  ;;  %v1490_v5 = vadd.f32 %v2362_v26, %v2358_v23  ;;  %v1493_v23 = vadd.f32 %v2366_v33, %v2364_v30 }
 0x112   : > { %v1681_v35 = vpop.f32.mrf.mxu0  ;;  %v2370_v36 = vpop.f32.mrf.mxu1 }
 0x114   : > { %v2372_v6 = vpop.f32.mrf.mxu1 }
 0x116   : > { %v664_v37 = vpop.f32.mrf.mxu0 }
 0x117   : > { %v2374_v38 = vpop.f32.mrf.mxu1 }
 0x118   : > { %v1684_v9 = vpop.f32.mrf.mxu0 }
 0x119   : > { %v2376_v40 = vpop.f32.mrf.mxu1 }
 0x11a   : > { %v669_v41 = vpop.f32.mrf.mxu0 }
 0x11c   : > { %v1687_v12 = vpop.f32.mrf.mxu0  ;;  %v2378_v54 = vpop.f32.mrf.mxu1 }
 0x11d   : > { %v660_v12 = vadd.f32 %v1484_v31, %v659_v32 }
 0x11e   : > { %v2380_v55 = vpop.f32.mrf.mxu0  ;;  %v2382_v56 = vpop.f32.mrf.mxu1 }
 0x120   : > { %v1690_v57 = vpop.f32.mrf.mxu0  ;;  %v1546_v58 = vpop.f32.mrf.mxu1 }
 0x122   : > { %v1547_v59 = vpop.f32.mrf.mxu1 }
 0x123   : > { %v2384_v60 = vpop.f32.mrf.mxu0  ;;  %v1548_v57 = vadd.f32 %v1547_v59, %v1546_v58 }
 0x125   : > { %v1693_v61 = vpop.f32.mrf.mxu0 }
 0x126   : > { %v1549_v62 = vpop.f32.mrf.mxu1 }
 0x127   : > { %v2386_v63 = vpop.f32.mrf.mxu0 }
 0x128   : > { %v1550_v15 = vpop.f32.mrf.mxu1 }
 0x129   : > { %v1696_v24 = vpop.f32.mrf.mxu0  ;;  %v1551_v25 = vadd.f32 %v1550_v15, %v1549_v62 }
 0x12c   : > { %v2388_v29 = vpop.f32.mrf.mxu0  ;;  %v1552_v34 = vpop.f32.mrf.mxu1 }
 0x12e   : > { %v1699_v39 = vpop.f32.mrf.mxu0  ;;  %v1553_v42 = vpop.f32.mrf.mxu1 }
 0x12f   : > { %v1487_v39 = vadd.f32 %v2356_v20, %v2352_v17  ;;  %v2421_v17 = vld [vmem:[%s2481_s2] ss:$0 sm:$0xff]  ;;  %v1554_v62 = vadd.f32 %v1553_v42, %v1552_v34 }
 0x130   : > { %v909_v43 = vpop.f32.mrf.mxu0 }
 0x131   : > { %v2390_v44 = vpop.f32.mrf.mxu1 }
 0x132   : > { %v1710_v45 = vpop.f32.mrf.mxu0 }
 0x133   : > { %v1556_v3 = vpop.f32.mrf.mxu1  ;;  %v910_v45 = vadd.f32 %v1548_v57, %v909_v43 }
 0x134   : > { %v1557_v33 = vadd.f32 %v1556_v3, %v2390_v44 }
 0x135   : > { %v2392_v47 = vpop.f32.mrf.mxu1  ;;  %v914_v48 = vpop.f32.mrf.mxu0 }
 0x136   : > { %v915_v59 = vadd.f32 %v1551_v25, %v914_v48 }
 0x137   : > { %v2394_v49 = vpop.f32.mrf.mxu1  ;;  %v1713_v50 = vpop.f32.mrf.mxu0 }
 0x139   : > { %v919_v51 = vpop.f32.mrf.mxu0 }
 0x13a   : > { %v2396_v53 = vpop.f32.mrf.mxu1 }
 0x13b   : > { %v1716_v0 = vpop.f32.mrf.mxu0 }
 0x13c   : > { %v2398_v1 = vpop.f32.mrf.mxu1 }
 0x13e   : > { %v2400_v7 = vpop.f32.mrf.mxu1  ;;  %v924_v8 = vpop.f32.mrf.mxu0 }
 0x140   : > { %v2402_v10 = vpop.f32.mrf.mxu1  ;;  %v1719_v14 = vpop.f32.mrf.mxu0 }
 0x141   : > { %v693_v14 = vmax.f32 %v2340_v46, %v660_v12  ;;  %v675_v12 = vadd.f32 %v1493_v23, %v2380_v55 }
 0x143   : > { %v2404_v16 = vpop.f32.mrf.mxu0  ;;  %v1610_v18 = vpop.f32.mrf.mxu1  ;;  %v943_v58 = vmax.f32 %v693_v14, %v910_v45  ;;  %v696_v44 = vmax.f32 %v2350_v13, %v675_v12 }
 0x145   : > { %v1722_v21 = vpop.f32.mrf.mxu0  ;;  %v1611_v22 = vpop.f32.mrf.mxu1 }
 0x146   : > { %v665_v21 = vadd.f32 %v1487_v39, %v664_v37  ;;  %v925_v39 = vadd.f32 %v1557_v33, %v924_v8 }
 0x147   : > { %v2406_v27 = vpop.f32.mrf.mxu0  ;;  %v1613_v28 = vpop.f32.mrf.mxu1 }
 0x148   : > { %2484 = vst [vmem:[#allocation3_spill] sm:$0xff] %v2406_v27  ;;  %v1612_v27 = vadd.f32 %v1611_v22, %v1610_v18  ;;  %v694_v37 = vmax.f32 %v2342_v52, %v665_v21  ;;  %v1499_v21 = vadd.f32 %v2376_v40, %v2374_v38  ;;  %v1563_v38 = vadd.f32 %v2398_v1, %v2396_v53  ;;  %v2486_v53 = vld [vmem:[#allocation2_spill] sm:$0xff] }
 0x149   : > { %v1725_v35 = vpop.f32.mrf.mxu0  ;;  %v1614_v9 = vpop.f32.mrf.mxu1 }
 0x14a   : > { %v670_v35 = vadd.f32 %v1490_v5, %v669_v41  ;;  %v1615_v15 = vadd.f32 %v1614_v9, %v1613_v28  ;;  %v944_v48 = vmax.f32 %v694_v37, %v915_v59  ;;  %v920_v41 = vadd.f32 %v1554_v62, %v919_v51 }
 0x14b   : > { %v2410_v61 = vpop.f32.mrf.mxu0  ;;  %v1616_v24 = vpop.f32.mrf.mxu1  ;;  %v1496_v28 = vadd.f32 %v2372_v6, %v2370_v36  ;;  %v1560_v36 = vadd.f32 %v2394_v49, %v2392_v47 }
 0x14d   : > { %v1728_v50 = vpop.f32.mrf.mxu0  ;;  %v1617_v0 = vpop.f32.mrf.mxu1  ;;  %v680_v3 = vadd.f32 %v1496_v28, %v2384_v60  ;;  %v930_v13 = vadd.f32 %v1560_v36, %v2404_v16 }
 0x14e   : > { %v1618_v34 = vadd.f32 %v1617_v0, %v1616_v24 }
 0x14f   : > { %v1619_v11 = vpop.f32.mrf.mxu1  ;;  %v1159_v32 = vpop.f32.mrf.mxu0 }
 0x150   : > { %v1160_v31 = vadd.f32 %v1612_v27, %v1159_v32  ;;  %v695_v27 = vmax.f32 %v2344_v4, %v670_v35  ;;  %v1502_v4 = vadd.f32 %v2382_v56, %v2378_v54  ;;  %v1566_v56 = vadd.f32 %v2402_v10, %v2400_v7 }
 0x151   : > { %v1620_v20 = vpop.f32.mrf.mxu1  ;;  %v1739_v46 = vpop.f32.mrf.mxu0  ;;  %v946_v32 = vmax.f32 %v696_v44, %v925_v39  ;;  %v697_v7 = vmax.f32 %v2354_v19, %v680_v3  ;;  %v685_v10 = vadd.f32 %v1499_v21, %v2386_v63 }
 0x152   : > { %v1193_v43 = vmax.f32 %v943_v58, %v1160_v31  ;;  %v945_v57 = vmax.f32 %v695_v27, %v920_v41  ;;  %v690_v24 = vadd.f32 %v1502_v4, %v2388_v29  ;;  %v1621_v8 = vadd.f32 %v1620_v20, %v1619_v11  ;;  %v2485_v20 = vld [vmem:[#allocation3_spill] sm:$0xff] }
 0x153   : > { %v1622_v26 = vpop.f32.mrf.mxu1  ;;  %v1164_v25 = vpop.f32.mrf.mxu0  ;;  %v940_v29 = vadd.f32 %v1566_v56, %v2410_v61  ;;  %v947_v35 = vmax.f32 %v697_v7, %v930_v13  ;;  %v935_v46 = vadd.f32 %v1563_v38, %v2485_v20  ;;  %v698_v1 = vmax.f32 %v2486_v53, %v685_v10 }
 0x154   : > { %v1207_v18 = vadd.f32 %v2421_v17, %v1193_v43  ;;  %v1165_v22 = vadd.f32 %v1615_v15, %v1164_v25  ;;  %v699_v11 = vmax.f32 %v2368_v2, %v690_v24 }
 0x155   : > { %v1623_v52 = vpop.f32.mrf.mxu1  ;;  %v1742_v30 = vpop.f32.mrf.mxu0 }
 0x156   : > { %v1214_v42 = vmax.f32 %v1207_v18, 0.0  ;;  %v1194_v51 = vmax.f32 %v944_v48, %v1165_v22  ;;  %v1624_v58 = vadd.f32 %v1623_v52, %v1622_v26  ;;  %v949_v19 = vmax.f32 %v699_v11, %v940_v29 }
 0x157   : > { %v1625_v55 = vpop.f32.mrf.mxu1  ;;  %v1169_v9 = vpop.f32.mrf.mxu0  ;;  %v948_v22 = vmax.f32 %v698_v1, %v935_v46 }
 0x158   : > { %1222 = vst.msk [vmem:[%s2432_s20] sm:$0xff] %vm1221_vm2, %v1214_v42  ;;  %v1208_v45 = vadd.f32 %v2421_v17, %v1194_v51  ;;  %v1170_v50 = vadd.f32 %v1618_v34, %v1169_v9 }
 0x159   : > { %v1626_v6 = vpop.f32.mrf.mxu1  ;;  %v1745_v54 = vpop.f32.mrf.mxu0 }
 0x15a   : > { %v1215_v0 = vmax.f32 %v1208_v45, 0.0  ;;  %v1195_v14 = vmax.f32 %v945_v57, %v1170_v50  ;;  %v1627_v26 = vadd.f32 %v1626_v6, %v1625_v55 }
 0x15b   : > { %v1628_v5 = vpop.f32.mrf.mxu1  ;;  %v1174_v60 = vpop.f32.mrf.mxu0 }
 0x15c   : > { %1223 = vst.msk [vmem:[%s2432_s20 + $0x8] sm:$0xff] %vm1221_vm2, %v1215_v0  ;;  %v1209_v47 = vadd.f32 %v2421_v17, %v1195_v14  ;;  %v1175_v49 = vadd.f32 %v1621_v8, %v1174_v60 }
 0x15d   : > { %v1629_v40 = vpop.f32.mrf.mxu1  ;;  %v1748_v16 = vpop.f32.mrf.mxu0 }
 0x15e   : > { %v1216_v59 = vmax.f32 %v1209_v47, 0.0  ;;  %v1196_v61 = vmax.f32 %v946_v32, %v1175_v49  ;;  %v1630_v31 = vadd.f32 %v1629_v40, %v1628_v5 }
 0x15f   : > { %v1179_v37 = vpop.f32.mrf.mxu0  ;;  %v1189_v62 = vpop.f32.mrf.mxu1 }
 0x160   : > { %1224 = vst.msk [vmem:[%s2432_s20 + $0x10] sm:$0xff] %vm1221_vm2, %v1216_v59  ;;  %v1210_v2 = vadd.f32 %v2421_v17, %v1196_v61  ;;  %v1180_v63 = vadd.f32 %v1624_v58, %v1179_v37  ;;  %v1190_v15 = vadd.f32 %v1630_v31, %v1189_v62 }
 0x161   : > { %v1751_v43 = vpop.f32.mrf.mxu0  ;;  %v1757_v23 = vpop.f32.mrf.mxu1 }
 0x162   : > { %v1217_v25 = vmax.f32 %v1210_v2, 0.0  ;;  %v1197_v48 = vmax.f32 %v947_v35, %v1180_v63  ;;  %v1199_v41 = vmax.f32 %v949_v19, %v1190_v15 }
 0x163   : > { %v1184_v18 = vpop.f32.mrf.mxu0 }
 0x164   : > { %1225 = vst.msk [vmem:[%s2432_s20 + $0x18] sm:$0xff] %vm1221_vm2, %v1217_v25  ;;  %v1211_v27 = vadd.f32 %v2421_v17, %v1197_v48  ;;  %v1213_v12 = vadd.f32 %v2421_v17, %v1199_v41  ;;  %v1185_v52 = vadd.f32 %v1627_v26, %v1184_v18 }
 0x165   : > { %v1754_v30 = vpop.f32.mrf.mxu0 }
 0x166   : > { %v1218_v33 = vmax.f32 %v1211_v27, 0.0  ;;  %v1220_v34 = vmax.f32 %v1213_v12, 0.0  ;;  %v1198_v42 = vmax.f32 %v948_v22, %v1185_v52 }
 0x168   : > { %1226 = vst.msk [vmem:[%s2432_s20 + $0x20] sm:$0xff] %vm1221_vm2, %v1218_v33  ;;  %v1212_v51 = vadd.f32 %v2421_v17, %v1198_v42 }
 0x169   : > { %1229 = vst.msk [vmem:[%s2432_s20 + $0x30] sm:$0x1] %vm1228_vm3, %v1220_v34 }
 0x16a   : > { %v1219_v28 = vmax.f32 %v1212_v51, 0.0 }
 0x16c   : > { %1227 = vst.msk [vmem:[%s2432_s20 + $0x28] sm:$0xff] %vm1221_vm2, %v1219_v28 }
 0x16d PF: > { %s13_s12 = sadd.s32 1, %s1784_s12  }
 0x16e   : > { %p10_p4 = scmp.ge.s32.totalorder %s13_s12, 4  }
 0x170   :  { %12 = sbr.rel (!%p10_p4) target bundleno = 1 (0x1), region = 65 }

// kernel: conv_feature_extractor.5
= control target key start
LH: loop header
LB: loop body
LE: loop exit
PB: predicated region body
PF: predicated region fallthrough
CT: control target
= control target key end

     0   :  { %v1973_v27 = vmov 1983009808   ;;  %v432_v29 = vlaneseq  ;;  %s3214_s0 = inlined_call_operand.vmem [shape: f32[2,3136], index: 0, kind: input, shape index: {}]   ;;  %s3215_s1 = inlined_call_operand.vmem [shape: f32[3136,128], index: 1, kind: input, shape index: {}]   ;;  %s3216_s2 = inlined_call_operand.vmem [shape: f32[1,128], index: 2, kind: input, shape index: {}]   ;;  %s3217_s3 = inlined_call_operand.hbm [shape: f32[2,128], index: 3, kind: output, shape index: {}]  }
   0x1   :  { %v53_v0 = vld [vmem:[%s3215_s1 + $0xf8] sm:$0xff]  ;;  %v52_v2 = vld [vmem:[%s3215_s1 + $0xf0] sm:$0xff]  ;;  %v51_v6 = vld [vmem:[%s3215_s1 + $0xe8] sm:$0xff]  ;;  %v430_v28 = vunpack.c.l.s4 %v1973_v27 }
   0x2   :  { %v37_v1 = vld [vmem:[%s3215_s1 + $0x78] sm:$0xff]  ;;  %1493 = vmatprep.subr.mxu0 %v53_v0  ;;  %v36_v4 = vld [vmem:[%s3215_s1 + $0x70] sm:$0xff]  ;;  %v35_v8 = vld [vmem:[%s3215_s1 + $0x68] sm:$0xff]  ;;  %v433_v39 = vshrl.u32 %v432_v29, 7 }
   0x3   :  { %v85_v3 = vld [vmem:[%s3215_s1 + $0x1f8] sm:$0xff]  ;;  %1494 = vmatpush3.msra.mxu0 %v37_v1  ;;  %v84_v7 = vld [vmem:[%s3215_s1 + $0x1f0] sm:$0xff]  ;;  %v83_v10 = vld [vmem:[%s3215_s1 + $0x1e8] sm:$0xff]  ;;  %v431_v38 = vunpack.c.0.s8 %v430_v28 }
   0x4   :  { %v69_v5 = vld [vmem:[%s3215_s1 + $0x178] sm:$0xff]  ;;  %1528 = vmatprep.subr.mxu1 %v85_v3  ;;  %1495 = vmatprep.subr.mxu0 %v52_v2  ;;  %v68_v9 = vld [vmem:[%s3215_s1 + $0x170] sm:$0xff]  ;;  %v50_v11 = vld [vmem:[%s3215_s1 + $0xe0] sm:$0xff] }
   0x5   :  { %1529 = vmatpush3.msra.mxu1 %v69_v5  ;;  %1496 = vmatpush3.msra.mxu0 %v36_v4  ;;  %v67_v12 = vld [vmem:[%s3215_s1 + $0x168] sm:$0xff]  ;;  %v34_v13 = vld [vmem:[%s3215_s1 + $0x60] sm:$0xff]  ;;  %v49_v15 = vld [vmem:[%s3215_s1 + $0xd8] sm:$0xff]  ;;  %v2126_v48 = vsub.s32 %v431_v38, %v433_v39 }
   0x6   :  { %1530 = vmatprep.subr.mxu1 %v84_v7  ;;  %1497 = vmatprep.subr.mxu0 %v51_v6  ;;  %v82_v14 = vld [vmem:[%s3215_s1 + $0x1e0] sm:$0xff]  ;;  %v33_v17 = vld [vmem:[%s3215_s1 + $0x58] sm:$0xff]  ;;  %v48_v19 = vld [vmem:[%s3215_s1 + $0xd0] sm:$0xff] }
   0x7   :  { %1531 = vmatpush3.msra.mxu1 %v68_v9  ;;  %1498 = vmatpush3.msra.mxu0 %v35_v8  ;;  %v66_v16 = vld [vmem:[%s3215_s1 + $0x160] sm:$0xff]  ;;  %v81_v18 = vld [vmem:[%s3215_s1 + $0x1d8] sm:$0xff]  ;;  %v32_v21 = vld [vmem:[%s3215_s1 + $0x50] sm:$0xff] }
   0x8   :  { %1532 = vmatprep.subr.mxu1 %v83_v10  ;;  %1499 = vmatprep.subr.mxu0 %v50_v11  ;;  %v65_v20 = vld [vmem:[%s3215_s1 + $0x158] sm:$0xff]  ;;  %v80_v22 = vld [vmem:[%s3215_s1 + $0x1d0] sm:$0xff]  ;;  %v47_v23 = vld [vmem:[%s3215_s1 + $0xc8] sm:$0xff] }
   0x9   :  { %1533 = vmatpush3.msra.mxu1 %v67_v12  ;;  %1500 = vmatpush3.msra.mxu0 %v34_v13  ;;  %v64_v24 = vld [vmem:[%s3215_s1 + $0x150] sm:$0xff]  ;;  %v31_v25 = vld [vmem:[%s3215_s1 + $0x48] sm:$0xff]  ;;  %v46_v30 = vld [vmem:[%s3215_s1 + $0xc0] sm:$0xff] }
   0xa   :  { %1534 = vmatprep.subr.mxu1 %v82_v14  ;;  %1501 = vmatprep.subr.mxu0 %v49_v15  ;;  %v79_v26 = vld [vmem:[%s3215_s1 + $0x1c8] sm:$0xff]  ;;  %v30_v32 = vld [vmem:[%s3215_s1 + $0x40] sm:$0xff]  ;;  %v45_v34 = vld [vmem:[%s3215_s1 + $0xb8] sm:$0xff] }
   0xb   :  { %1535 = vmatpush3.msra.mxu1 %v66_v16  ;;  %1502 = vmatpush3.msra.mxu0 %v33_v17  ;;  %v63_v31 = vld [vmem:[%s3215_s1 + $0x148] sm:$0xff]  ;;  %v78_v33 = vld [vmem:[%s3215_s1 + $0x1c0] sm:$0xff]  ;;  %v29_v36 = vld [vmem:[%s3215_s1 + $0x38] sm:$0xff] }
   0xc   :  { %1536 = vmatprep.subr.mxu1 %v81_v18  ;;  %1503 = vmatprep.subr.mxu0 %v48_v19  ;;  %v62_v35 = vld [vmem:[%s3215_s1 + $0x140] sm:$0xff]  ;;  %v77_v37 = vld [vmem:[%s3215_s1 + $0x1b8] sm:$0xff]  ;;  %v44_v40 = vld [vmem:[%s3215_s1 + $0xb0] sm:$0xff] }
   0xd   :  { %1537 = vmatpush3.msra.mxu1 %v65_v20  ;;  %1504 = vmatpush3.msra.mxu0 %v32_v21  ;;  %v61_v41 = vld [vmem:[%s3215_s1 + $0x138] sm:$0xff]  ;;  %v28_v42 = vld [vmem:[%s3215_s1 + $0x30] sm:$0xff]  ;;  %v43_v44 = vld [vmem:[%s3215_s1 + $0xa8] sm:$0xff] }
   0xe   :  { %1538 = vmatprep.subr.mxu1 %v80_v22  ;;  %1505 = vmatprep.subr.mxu0 %v47_v23  ;;  %v76_v43 = vld [vmem:[%s3215_s1 + $0x1b0] sm:$0xff]  ;;  %v27_v46 = vld [vmem:[%s3215_s1 + $0x28] sm:$0xff]  ;;  %v42_v49 = vld [vmem:[%s3215_s1 + $0xa0] sm:$0xff] }
   0xf   :  { %1539 = vmatpush3.msra.mxu1 %v64_v24  ;;  %1506 = vmatpush3.msra.mxu0 %v31_v25  ;;  %v60_v45 = vld [vmem:[%s3215_s1 + $0x130] sm:$0xff]  ;;  %v75_v47 = vld [vmem:[%s3215_s1 + $0x1a8] sm:$0xff]  ;;  %v15_v51 = vld [vmem:[%s3214_s0] sm:$0xff] }
  0x10   :  { %1540 = vmatprep.subr.mxu1 %v79_v26  ;;  %1507 = vmatprep.subr.mxu0 %v46_v30  ;;  %v59_v50 = vld [vmem:[%s3215_s1 + $0x128] sm:$0xff]  ;;  %v26_v52 = vld [vmem:[%s3215_s1 + $0x20] sm:$0xff]  ;;  %v41_v54 = vld [vmem:[%s3215_s1 + $0x98] sm:$0xff]  ;;  %v435_v58 = vrot.slane %v15_v51, %v2126_v48  ;;  %v428_v59 = vcombine.high %v15_v51, %v15_v51 }
  0x11   :  { %1541 = vmatpush3.msra.mxu1 %v63_v31  ;;  %1508 = vmatpush3.msra.mxu0 %v30_v32  ;;  %v74_v53 = vld [vmem:[%s3215_s1 + $0x1a0] sm:$0xff]  ;;  %v25_v56 = vld [vmem:[%s3215_s1 + $0x18] sm:$0xff]  ;;  %v40_v60 = vld [vmem:[%s3215_s1 + $0x90] sm:$0xff] }
  0x12   :  { %1542 = vmatprep.subr.mxu1 %v78_v33  ;;  %1509 = vmatprep.subr.mxu0 %v45_v34  ;;  %v58_v55 = vld [vmem:[%s3215_s1 + $0x120] sm:$0xff]  ;;  %v73_v57 = vld [vmem:[%s3215_s1 + $0x198] sm:$0xff]  ;;  %v24_v62 = vld [vmem:[%s3215_s1 + $0x10] sm:$0xff]  ;;  %v443_v4 = vcombine.high %v435_v58, %v435_v58  ;;  %v442_v5 = vrot.slane %v428_v59, %v2126_v48 }
  0x13   :  { %1543 = vmatpush3.msra.mxu1 %v62_v35  ;;  %1510 = vmatpush3.msra.mxu0 %v29_v36  ;;  %v57_v61 = vld [vmem:[%s3215_s1 + $0x118] sm:$0xff]  ;;  %v72_v63 = vld [vmem:[%s3215_s1 + $0x190] sm:$0xff]  ;;  %v39_v0 = vld [vmem:[%s3215_s1 + $0x88] sm:$0xff] }
  0x14   :  { %1544 = vmatprep.subr.mxu1 %v77_v37  ;;  %1511 = vmatprep.subr.mxu0 %v44_v40  ;;  %v56_v1 = vld [vmem:[%s3215_s1 + $0x110] sm:$0xff]  ;;  %v23_v2 = vld [vmem:[%s3215_s1 + $0x8] sm:$0xff]  ;;  %v38_v6 = vld [vmem:[%s3215_s1 + $0x80] sm:$0xff]  ;;  %v444_v12 = vcombine.high %v442_v5, %v442_v5 }
  0x15   :  { %1545 = vmatpush3.msra.mxu1 %v61_v41  ;;  %1512 = vmatpush3.msra.mxu0 %v28_v42  ;;  %v71_v3 = vld [vmem:[%s3215_s1 + $0x188] sm:$0xff]  ;;  %v22_v7 = vld [vmem:[%s3215_s1] sm:$0xff]  ;;  %v117_v10 = vld [vmem:[%s3215_s1 + $0x2f8] sm:$0xff] }
  0x16   :  { %1546 = vmatprep.subr.mxu1 %v76_v43  ;;  %1513 = vmatprep.subr.mxu0 %v43_v44  ;;  %v55_v8 = vld [vmem:[%s3215_s1 + $0x108] sm:$0xff]  ;;  %v70_v9 = vld [vmem:[%s3215_s1 + $0x180] sm:$0xff]  ;;  %v101_v13 = vld [vmem:[%s3215_s1 + $0x278] sm:$0xff] }
  0x17   :  { %1547 = vmatpush3.msra.mxu1 %v60_v45  ;;  %1514 = vmatpush3.msra.mxu0 %v27_v46  ;;  %v54_v11 = vld [vmem:[%s3215_s1 + $0x100] sm:$0xff]  ;;  %v116_v14 = vld [vmem:[%s3215_s1 + $0x2f0] sm:$0xff]  ;;  %v149_v15 = vld [vmem:[%s3215_s1 + $0x3f8] sm:$0xff] }
  0x18   :  { %1548 = vmatprep.subr.mxu1 %v75_v47  ;;  %1515 = vmatprep.subr.mxu0 %v42_v49  ;;  %v100_v16 = vld [vmem:[%s3215_s1 + $0x270] sm:$0xff]  ;;  %v133_v17 = vld [vmem:[%s3215_s1 + $0x378] sm:$0xff]  ;;  %v115_v18 = vld [vmem:[%s3215_s1 + $0x2e8] sm:$0xff] }
  0x19   :  { %1549 = vmatpush3.msra.mxu1 %v59_v50  ;;  %1516 = vmatpush3.msra.mxu0 %v26_v52  ;;  %v148_v19 = vld [vmem:[%s3215_s1 + $0x3f0] sm:$0xff]  ;;  %v99_v20 = vld [vmem:[%s3215_s1 + $0x268] sm:$0xff]  ;;  %v114_v22 = vld [vmem:[%s3215_s1 + $0x2e0] sm:$0xff] }
  0x1a   :  { %1550 = vmatprep.subr.mxu1 %v74_v53  ;;  %1517 = vmatprep.subr.mxu0 %v41_v54  ;;  %v132_v21 = vld [vmem:[%s3215_s1 + $0x370] sm:$0xff]  ;;  %v147_v23 = vld [vmem:[%s3215_s1 + $0x3e8] sm:$0xff]  ;;  %v98_v24 = vld [vmem:[%s3215_s1 + $0x260] sm:$0xff] }
  0x1b   :  { %1551 = vmatpush3.msra.mxu1 %v58_v55  ;;  %1518 = vmatpush3.msra.mxu0 %v25_v56  ;;  %v131_v25 = vld [vmem:[%s3215_s1 + $0x368] sm:$0xff]  ;;  %v113_v26 = vld [vmem:[%s3215_s1 + $0x2d8] sm:$0xff]  ;;  %v146_v27 = vld [vmem:[%s3215_s1 + $0x3e0] sm:$0xff] }
  0x1c   :  { %1552 = vmatprep.subr.mxu1 %v73_v57  ;;  %1519 = vmatprep.subr.mxu0 %v40_v60  ;;  %v97_v28 = vld [vmem:[%s3215_s1 + $0x258] sm:$0xff]  ;;  %v130_v29 = vld [vmem:[%s3215_s1 + $0x360] sm:$0xff]  ;;  %v112_v30 = vld [vmem:[%s3215_s1 + $0x2d0] sm:$0xff] }
  0x1d   :  { %1553 = vmatpush3.msra.mxu1 %v57_v61  ;;  %1520 = vmatpush3.msra.mxu0 %v24_v62  ;;  %v145_v31 = vld [vmem:[%s3215_s1 + $0x3d8] sm:$0xff]  ;;  %v96_v32 = vld [vmem:[%s3215_s1 + $0x250] sm:$0xff]  ;;  %v111_v34 = vld [vmem:[%s3215_s1 + $0x2c8] sm:$0xff] }
  0x1e   :  { %1554 = vmatprep.subr.mxu1 %v72_v63  ;;  %1521 = vmatprep.subr.mxu0 %v39_v0  ;;  %v129_v33 = vld [vmem:[%s3215_s1 + $0x358] sm:$0xff]  ;;  %v144_v35 = vld [vmem:[%s3215_s1 + $0x3d0] sm:$0xff]  ;;  %v95_v36 = vld [vmem:[%s3215_s1 + $0x248] sm:$0xff] }
  0x1f   :  { %1555 = vmatpush3.msra.mxu1 %v56_v1  ;;  %1522 = vmatpush3.msra.mxu0 %v23_v2  ;;  %v128_v37 = vld [vmem:[%s3215_s1 + $0x350] sm:$0xff]  ;;  %v110_v38 = vld [vmem:[%s3215_s1 + $0x2c0] sm:$0xff]  ;;  %v143_v39 = vld [vmem:[%s3215_s1 + $0x3c8] sm:$0xff] }
  0x20   :  { %1556 = vmatprep.subr.mxu1 %v71_v3  ;;  %1523 = vmatprep.subr.mxu0 %v38_v6  ;;  %v94_v40 = vld [vmem:[%s3215_s1 + $0x240] sm:$0xff]  ;;  %v127_v41 = vld [vmem:[%s3215_s1 + $0x348] sm:$0xff]  ;;  %v109_v42 = vld [vmem:[%s3215_s1 + $0x2b8] sm:$0xff] }
  0x21   :  { %628 = vmatprep.mubr.f32.mxu0 %v443_v4  ;;  %1524 = vmatpush3.msra.mxu0 %v22_v7  ;;  %v142_v43 = vld [vmem:[%s3215_s1 + $0x3c0] sm:$0xff]  ;;  %v93_v44 = vld [vmem:[%s3215_s1 + $0x238] sm:$0xff]  ;;  %v108_v46 = vld [vmem:[%s3215_s1 + $0x2b0] sm:$0xff] }
  0x22   :  { %1557 = vmatpush3.msra.mxu1 %v55_v8  ;;  %629 = vmatmul.mubr.f32.vlgmr.msra.gmra.mxu0 %v435_v58  ;;  %v126_v45 = vld [vmem:[%s3215_s1 + $0x340] sm:$0xff]  ;;  %v141_v47 = vld [vmem:[%s3215_s1 + $0x3b8] sm:$0xff]  ;;  %v92_v49 = vld [vmem:[%s3215_s1 + $0x230] sm:$0xff] }
  0x23   :  { %1558 = vmatprep.subr.mxu1 %v70_v9  ;;  %1563 = vmatprep.subr.mxu0 %v117_v10  ;;  %v125_v50 = vld [vmem:[%s3215_s1 + $0x338] sm:$0xff]  ;;  %v107_v51 = vld [vmem:[%s3215_s1 + $0x2a8] sm:$0xff]  ;;  %v140_v52 = vld [vmem:[%s3215_s1 + $0x3b0] sm:$0xff] }
  0x24   :  { %1559 = vmatpush3.msra.mxu1 %v54_v11  ;;  %698 = vmatprep.mubr.f32.mxu1 %v444_v12  ;;  %v91_v53 = vld [vmem:[%s3215_s1 + $0x228] sm:$0xff]  ;;  %v124_v54 = vld [vmem:[%s3215_s1 + $0x330] sm:$0xff]  ;;  %v106_v55 = vld [vmem:[%s3215_s1 + $0x2a0] sm:$0xff] }
  0x25   :  { %1564 = vmatpush3.msra.mxu0 %v101_v13  ;;  %699 = vmatmul.mubr.f32.vlgmr.msra.gmra.mxu1 %v442_v5  ;;  %v139_v56 = vld [vmem:[%s3215_s1 + $0x3a8] sm:$0xff]  ;;  %v90_v57 = vld [vmem:[%s3215_s1 + $0x220] sm:$0xff]  ;;  %v105_v60 = vld [vmem:[%s3215_s1 + $0x298] sm:$0xff] }
  0x26   :  { %1565 = vmatprep.subr.mxu0 %v116_v14  ;;  %1598 = vmatprep.subr.mxu1 %v149_v15  ;;  %v16_v58 = vld [vmem:[%s3214_s0 + $0x8] sm:$0xff]  ;;  %v138_v61 = vld [vmem:[%s3215_s1 + $0x3a0] sm:$0xff]  ;;  %v89_v62 = vld [vmem:[%s3215_s1 + $0x218] sm:$0xff] }
  0x27   :  { %1566 = vmatpush3.msra.mxu0 %v100_v16  ;;  %1599 = vmatpush3.msra.mxu1 %v133_v17  ;;  %v123_v59 = vld [vmem:[%s3215_s1 + $0x328] sm:$0xff]  ;;  %v122_v63 = vld [vmem:[%s3215_s1 + $0x320] sm:$0xff]  ;;  %v104_v0 = vld [vmem:[%s3215_s1 + $0x290] sm:$0xff]  ;;  %v445_v1 = vcombine.high %v16_v58, %v16_v58  ;;  %v452_v4 = vrot.slane %v16_v58, %v2126_v48 }
  0x28   :  { %1567 = vmatprep.subr.mxu0 %v115_v18  ;;  %1600 = vmatprep.subr.mxu1 %v148_v19  ;;  %v137_v2 = vld [vmem:[%s3215_s1 + $0x398] sm:$0xff]  ;;  %v88_v3 = vld [vmem:[%s3215_s1 + $0x210] sm:$0xff]  ;;  %v103_v6 = vld [vmem:[%s3215_s1 + $0x288] sm:$0xff] }
  0x29   :  { %1568 = vmatpush3.msra.mxu0 %v99_v20  ;;  %1601 = vmatpush3.msra.mxu1 %v132_v21  ;;  %v121_v5 = vld [vmem:[%s3215_s1 + $0x318] sm:$0xff]  ;;  %v136_v7 = vld [vmem:[%s3215_s1 + $0x390] sm:$0xff]  ;;  %v87_v8 = vld [vmem:[%s3215_s1 + $0x208] sm:$0xff]  ;;  %v459_v11 = vrot.slane %v445_v1, %v2126_v48  ;;  %v460_v14 = vcombine.high %v452_v4, %v452_v4 }
  0x2a   :  { %1569 = vmatprep.subr.mxu0 %v114_v22  ;;  %1602 = vmatprep.subr.mxu1 %v147_v23  ;;  %v120_v9 = vld [vmem:[%s3215_s1 + $0x310] sm:$0xff]  ;;  %v102_v10 = vld [vmem:[%s3215_s1 + $0x280] sm:$0xff]  ;;  %v135_v12 = vld [vmem:[%s3215_s1 + $0x388] sm:$0xff] }
  0x2b   :  { %1570 = vmatpush3.msra.mxu0 %v98_v24  ;;  %1603 = vmatpush3.msra.mxu1 %v131_v25  ;;  %v86_v13 = vld [vmem:[%s3215_s1 + $0x200] sm:$0xff]  ;;  %v119_v15 = vld [vmem:[%s3215_s1 + $0x308] sm:$0xff]  ;;  %v181_v17 = vld [vmem:[%s3215_s1 + $0x4f8] sm:$0xff]  ;;  %v461_v19 = vcombine.high %v459_v11, %v459_v11 }
  0x2c   :  { %1571 = vmatprep.subr.mxu0 %v113_v26  ;;  %1604 = vmatprep.subr.mxu1 %v146_v27  ;;  %v134_v16 = vld [vmem:[%s3215_s1 + $0x380] sm:$0xff]  ;;  %v165_v20 = vld [vmem:[%s3215_s1 + $0x478] sm:$0xff]  ;;  %v180_v21 = vld [vmem:[%s3215_s1 + $0x4f0] sm:$0xff] }
  0x2d   :  { %1572 = vmatpush3.msra.mxu0 %v97_v28  ;;  %1605 = vmatpush3.msra.mxu1 %v130_v29  ;;  %v118_v18 = vld [vmem:[%s3215_s1 + $0x300] sm:$0xff]  ;;  %v213_v22 = vld [vmem:[%s3215_s1 + $0x5f8] sm:$0xff]  ;;  %v164_v23 = vld [vmem:[%s3215_s1 + $0x470] sm:$0xff] }
  0x2e   :  { %1573 = vmatprep.subr.mxu0 %v112_v30  ;;  %1606 = vmatprep.subr.mxu1 %v145_v31  ;;  %v197_v24 = vld [vmem:[%s3215_s1 + $0x578] sm:$0xff]  ;;  %v179_v25 = vld [vmem:[%s3215_s1 + $0x4e8] sm:$0xff]  ;;  %v212_v26 = vld [vmem:[%s3215_s1 + $0x5f0] sm:$0xff] }
  0x2f   :  { %1574 = vmatpush3.msra.mxu0 %v96_v32  ;;  %1607 = vmatpush3.msra.mxu1 %v129_v33  ;;  %v163_v27 = vld [vmem:[%s3215_s1 + $0x468] sm:$0xff]  ;;  %v196_v28 = vld [vmem:[%s3215_s1 + $0x570] sm:$0xff]  ;;  %v178_v29 = vld [vmem:[%s3215_s1 + $0x4e0] sm:$0xff] }
  0x30   :  { %1575 = vmatprep.subr.mxu0 %v111_v34  ;;  %1608 = vmatprep.subr.mxu1 %v144_v35  ;;  %v211_v30 = vld [vmem:[%s3215_s1 + $0x5e8] sm:$0xff]  ;;  %v162_v31 = vld [vmem:[%s3215_s1 + $0x460] sm:$0xff]  ;;  %v177_v33 = vld [vmem:[%s3215_s1 + $0x4d8] sm:$0xff] }
  0x31   :  { %1576 = vmatpush3.msra.mxu0 %v95_v36  ;;  %1609 = vmatpush3.msra.mxu1 %v128_v37  ;;  %v195_v32 = vld [vmem:[%s3215_s1 + $0x568] sm:$0xff]  ;;  %v210_v34 = vld [vmem:[%s3215_s1 + $0x5e0] sm:$0xff]  ;;  %v161_v35 = vld [vmem:[%s3215_s1 + $0x458] sm:$0xff] }
  0x32   :  { %1577 = vmatprep.subr.mxu0 %v110_v38  ;;  %1610 = vmatprep.subr.mxu1 %v143_v39  ;;  %v194_v36 = vld [vmem:[%s3215_s1 + $0x560] sm:$0xff]  ;;  %v176_v37 = vld [vmem:[%s3215_s1 + $0x4d0] sm:$0xff]  ;;  %v209_v38 = vld [vmem:[%s3215_s1 + $0x5d8] sm:$0xff] }
  0x33   :  { %1578 = vmatpush3.msra.mxu0 %v94_v40  ;;  %1611 = vmatpush3.msra.mxu1 %v127_v41  ;;  %v160_v39 = vld [vmem:[%s3215_s1 + $0x450] sm:$0xff]  ;;  %v193_v40 = vld [vmem:[%s3215_s1 + $0x558] sm:$0xff]  ;;  %v175_v41 = vld [vmem:[%s3215_s1 + $0x4c8] sm:$0xff] }
  0x34   :  { %1579 = vmatprep.subr.mxu0 %v109_v42  ;;  %1612 = vmatprep.subr.mxu1 %v142_v43  ;;  %v208_v42 = vld [vmem:[%s3215_s1 + $0x5d0] sm:$0xff]  ;;  %v159_v43 = vld [vmem:[%s3215_s1 + $0x448] sm:$0xff] }
  0x35   :  { %1580 = vmatpush3.msra.mxu0 %v93_v44  ;;  %1613 = vmatpush3.msra.mxu1 %v126_v45  ;;  %v192_v44 = vld [vmem:[%s3215_s1 + $0x550] sm:$0xff]  ;;  %v174_v45 = vld [vmem:[%s3215_s1 + $0x4c0] sm:$0xff]  ;;  %v171_v58 = vld [vmem:[%s3215_s1 + $0x4a8] sm:$0xff] }
  0x36   :  { %1581 = vmatprep.subr.mxu0 %v108_v46  ;;  %1614 = vmatprep.subr.mxu1 %v141_v47  ;;  %v207_v46 = vld [vmem:[%s3215_s1 + $0x5c8] sm:$0xff]  ;;  %v158_v47 = vld [vmem:[%s3215_s1 + $0x440] sm:$0xff]  ;;  %v17_v1 = vld [vmem:[%s3214_s0 + $0x10] sm:$0xff] }
  0x37   :  { %1582 = vmatpush3.msra.mxu0 %v92_v49  ;;  %1615 = vmatpush3.msra.mxu1 %v125_v50  ;;  %v191_v49 = vld [vmem:[%s3215_s1 + $0x548] sm:$0xff]  ;;  %v173_v50 = vld [vmem:[%s3215_s1 + $0x4b8] sm:$0xff] }
  0x38   :  { %1583 = vmatprep.subr.mxu0 %v107_v51  ;;  %1616 = vmatprep.subr.mxu1 %v140_v52  ;;  %v206_v51 = vld [vmem:[%s3215_s1 + $0x5c0] sm:$0xff]  ;;  %v157_v52 = vld [vmem:[%s3215_s1 + $0x438] sm:$0xff] }
  0x39   :  { %1584 = vmatpush3.msra.mxu0 %v91_v53  ;;  %1617 = vmatpush3.msra.mxu1 %v124_v54  ;;  %v190_v53 = vld [vmem:[%s3215_s1 + $0x540] sm:$0xff]  ;;  %v172_v54 = vld [vmem:[%s3215_s1 + $0x4b0] sm:$0xff] }
  0x3a   :  { %1585 = vmatprep.subr.mxu0 %v106_v55  ;;  %1618 = vmatprep.subr.mxu1 %v139_v56  ;;  %v205_v55 = vld [vmem:[%s3215_s1 + $0x5b8] sm:$0xff]  ;;  %v156_v56 = vld [vmem:[%s3215_s1 + $0x430] sm:$0xff] }
  0x3b   :  { %1586 = vmatpush3.msra.mxu0 %v90_v57  ;;  %1619 = vmatpush3.msra.mxu1 %v123_v59  ;;  %v189_v57 = vld [vmem:[%s3215_s1 + $0x538] sm:$0xff]  ;;  %v204_v59 = vld [vmem:[%s3215_s1 + $0x5b0] sm:$0xff] }
  0x3c   :  { %1587 = vmatprep.subr.mxu0 %v105_v60  ;;  %1620 = vmatprep.subr.mxu1 %v138_v61  ;;  %v155_v60 = vld [vmem:[%s3215_s1 + $0x428] sm:$0xff]  ;;  %v188_v61 = vld [vmem:[%s3215_s1 + $0x530] sm:$0xff] }
  0x3d   :  { %1588 = vmatpush3.msra.mxu0 %v89_v62  ;;  %1621 = vmatpush3.msra.mxu1 %v122_v63  ;;  %v170_v62 = vld [vmem:[%s3215_s1 + $0x4a0] sm:$0xff]  ;;  %v203_v63 = vld [vmem:[%s3215_s1 + $0x5a8] sm:$0xff] }
  0x3e   :  { %1589 = vmatprep.subr.mxu0 %v104_v0  ;;  %1622 = vmatprep.subr.mxu1 %v137_v2  ;;  %v154_v0 = vld [vmem:[%s3215_s1 + $0x420] sm:$0xff]  ;;  %v187_v2 = vld [vmem:[%s3215_s1 + $0x528] sm:$0xff] }
  0x3f   :  { %1590 = vmatpush3.msra.mxu0 %v88_v3  ;;  %1623 = vmatpush3.msra.mxu1 %v121_v5  ;;  %v169_v3 = vld [vmem:[%s3215_s1 + $0x498] sm:$0xff] }
  0x40   :  { %1591 = vmatprep.subr.mxu0 %v103_v6  ;;  %1624 = vmatprep.subr.mxu1 %v136_v7  ;;  %v153_v5 = vld [vmem:[%s3215_s1 + $0x418] sm:$0xff]  ;;  %v186_v6 = vld [vmem:[%s3215_s1 + $0x520] sm:$0xff]  ;;  %v168_v7 = vld [vmem:[%s3215_s1 + $0x490] sm:$0xff] }
  0x41   :  { %1592 = vmatpush3.msra.mxu0 %v87_v8  ;;  %1625 = vmatpush3.msra.mxu1 %v120_v9  ;;  %v462_v8 = vcombine.high %v17_v1, %v17_v1  ;;  %v201_v9 = vld [vmem:[%s3215_s1 + $0x598] sm:$0xff] }
  0x42   :  { %1593 = vmatprep.subr.mxu0 %v102_v10  ;;  %1626 = vmatprep.subr.mxu1 %v135_v12  ;;  %v152_v10 = vld [vmem:[%s3215_s1 + $0x410] sm:$0xff]  ;;  %v185_v12 = vld [vmem:[%s3215_s1 + $0x518] sm:$0xff] }
  0x43   :  { %1594 = vmatpush3.msra.mxu0 %v86_v13  ;;  %768 = vmatprep.mubr.f32.mxu0 %v460_v14  ;;  %v167_v13 = vld [vmem:[%s3215_s1 + $0x488] sm:$0xff]  ;;  %v200_v14 = vld [vmem:[%s3215_s1 + $0x590] sm:$0xff] }
  0x44   :  { %1627 = vmatpush3.msra.mxu1 %v119_v15  ;;  %769 = vmatmul.mubr.f32.vlgmr.msra.gmra.mxu0 %v452_v4  ;;  %v202_v4 = vld [vmem:[%s3215_s1 + $0x5a0] sm:$0xff]  ;;  %v151_v15 = vld [vmem:[%s3215_s1 + $0x408] sm:$0xff] }
  0x45   :  { %1628 = vmatprep.subr.mxu1 %v134_v16  ;;  %1633 = vmatprep.subr.mxu0 %v181_v17  ;;  %v184_v16 = vld [vmem:[%s3215_s1 + $0x510] sm:$0xff]  ;;  %v166_v17 = vld [vmem:[%s3215_s1 + $0x480] sm:$0xff] }
  0x46   :  { %1629 = vmatpush3.msra.mxu1 %v118_v18  ;;  %838 = vmatprep.mubr.f32.mxu1 %v461_v19  ;;  %v476_v18 = vrot.slane %v462_v8, %v2126_v48  ;;  %v199_v19 = vld [vmem:[%s3215_s1 + $0x588] sm:$0xff]  ;;  %v18_v8 = vld [vmem:[%s3214_s0 + $0x18] sm:$0xff] }
  0x47   :  { %1634 = vmatpush3.msra.mxu0 %v165_v20  ;;  %839 = vmatmul.mubr.f32.vlgmr.msra.gmra.mxu1 %v459_v11  ;;  %v469_v11 = vrot.slane %v17_v1, %v2126_v48  ;;  %v150_v20 = vld [vmem:[%s3215_s1 + $0x400] sm:$0xff]  ;;  %v235_v1 = vld [vmem:[%s3215_s1 + $0x6a8] sm:$0xff] }
  0x48   :  { %1635 = vmatprep.subr.mxu0 %v180_v21  ;;  %1668 = vmatprep.subr.mxu1 %v213_v22  ;;  %v183_v22 = vld [vmem:[%s3215_s1 + $0x508] sm:$0xff] }
  0x49   :  { %1636 = vmatpush3.msra.mxu0 %v164_v23  ;;  %1669 = vmatpush3.msra.mxu1 %v197_v24  ;;  %v477_v21 = vcombine.high %v469_v11, %v469_v11  ;;  %v198_v23 = vld [vmem:[%s3215_s1 + $0x580] sm:$0xff]  ;;  %v245_v24 = vld [vmem:[%s3215_s1 + $0x6f8] sm:$0xff] }
  0x4a   :  { %1637 = vmatprep.subr.mxu0 %v179_v25  ;;  %1670 = vmatprep.subr.mxu1 %v212_v26  ;;  %v182_v25 = vld [vmem:[%s3215_s1 + $0x500] sm:$0xff]  ;;  %v478_v26 = vcombine.high %v476_v18, %v476_v18 }
  0x4b   :  { %1638 = vmatpush3.msra.mxu0 %v163_v27  ;;  %1671 = vmatpush3.msra.mxu1 %v196_v28  ;;  %v229_v27 = vld [vmem:[%s3215_s1 + $0x678] sm:$0xff]  ;;  %v244_v28 = vld [vmem:[%s3215_s1 + $0x6f0] sm:$0xff] }
  0x4c   :  { %1639 = vmatprep.subr.mxu0 %v178_v29  ;;  %1672 = vmatprep.subr.mxu1 %v211_v30  ;;  %v277_v29 = vld [vmem:[%s3215_s1 + $0x7f8] sm:$0xff]  ;;  %v228_v30 = vld [vmem:[%s3215_s1 + $0x670] sm:$0xff] }
  0x4d   :  { %1640 = vmatpush3.msra.mxu0 %v162_v31  ;;  %1673 = vmatpush3.msra.mxu1 %v195_v32  ;;  %v261_v31 = vld [vmem:[%s3215_s1 + $0x778] sm:$0xff]  ;;  %v243_v32 = vld [vmem:[%s3215_s1 + $0x6e8] sm:$0xff] }
  0x4e   :  { %1641 = vmatprep.subr.mxu0 %v177_v33  ;;  %1674 = vmatprep.subr.mxu1 %v210_v34  ;;  %v276_v33 = vld [vmem:[%s3215_s1 + $0x7f0] sm:$0xff]  ;;  %v227_v34 = vld [vmem:[%s3215_s1 + $0x668] sm:$0xff] }
  0x4f   :  { %1642 = vmatpush3.msra.mxu0 %v161_v35  ;;  %1675 = vmatpush3.msra.mxu1 %v194_v36  ;;  %v260_v35 = vld [vmem:[%s3215_s1 + $0x770] sm:$0xff]  ;;  %v242_v36 = vld [vmem:[%s3215_s1 + $0x6e0] sm:$0xff] }
  0x50   :  { %1643 = vmatprep.subr.mxu0 %v176_v37  ;;  %1676 = vmatprep.subr.mxu1 %v209_v38  ;;  %v275_v37 = vld [vmem:[%s3215_s1 + $0x7e8] sm:$0xff]  ;;  %v226_v38 = vld [vmem:[%s3215_s1 + $0x660] sm:$0xff] }
  0x51   :  { %1644 = vmatpush3.msra.mxu0 %v160_v39  ;;  %1677 = vmatpush3.msra.mxu1 %v193_v40  ;;  %v259_v39 = vld [vmem:[%s3215_s1 + $0x768] sm:$0xff]  ;;  %v241_v40 = vld [vmem:[%s3215_s1 + $0x6d8] sm:$0xff] }
  0x52   :  { %1645 = vmatprep.subr.mxu0 %v175_v41  ;;  %1678 = vmatprep.subr.mxu1 %v208_v42  ;;  %v274_v41 = vld [vmem:[%s3215_s1 + $0x7e0] sm:$0xff]  ;;  %v225_v42 = vld [vmem:[%s3215_s1 + $0x658] sm:$0xff] }
  0x53   :  { %1646 = vmatpush3.msra.mxu0 %v159_v43  ;;  %1679 = vmatpush3.msra.mxu1 %v192_v44  ;;  %v258_v43 = vld [vmem:[%s3215_s1 + $0x760] sm:$0xff]  ;;  %v240_v44 = vld [vmem:[%s3215_s1 + $0x6d0] sm:$0xff] }
  0x54   :  { %1647 = vmatprep.subr.mxu0 %v174_v45  ;;  %1680 = vmatprep.subr.mxu1 %v207_v46  ;;  %v273_v45 = vld [vmem:[%s3215_s1 + $0x7d8] sm:$0xff]  ;;  %v224_v46 = vld [vmem:[%s3215_s1 + $0x650] sm:$0xff] }
  0x55   :  { %1648 = vmatpush3.msra.mxu0 %v158_v47  ;;  %1681 = vmatpush3.msra.mxu1 %v191_v49  ;;  %v257_v47 = vld [vmem:[%s3215_s1 + $0x758] sm:$0xff]  ;;  %v239_v49 = vld [vmem:[%s3215_s1 + $0x6c8] sm:$0xff] }
  0x56   :  { %1649 = vmatprep.subr.mxu0 %v173_v50  ;;  %1682 = vmatprep.subr.mxu1 %v206_v51  ;;  %v272_v50 = vld [vmem:[%s3215_s1 + $0x7d0] sm:$0xff]  ;;  %v223_v51 = vld [vmem:[%s3215_s1 + $0x648] sm:$0xff] }
  0x57   :  { %1650 = vmatpush3.msra.mxu0 %v157_v52  ;;  %1683 = vmatpush3.msra.mxu1 %v190_v53  ;;  %v256_v52 = vld [vmem:[%s3215_s1 + $0x750] sm:$0xff]  ;;  %v238_v53 = vld [vmem:[%s3215_s1 + $0x6c0] sm:$0xff] }
  0x58   :  { %1651 = vmatprep.subr.mxu0 %v172_v54  ;;  %1684 = vmatprep.subr.mxu1 %v205_v55  ;;  %v271_v54 = vld [vmem:[%s3215_s1 + $0x7c8] sm:$0xff]  ;;  %v222_v55 = vld [vmem:[%s3215_s1 + $0x640] sm:$0xff] }
  0x59   :  { %1652 = vmatpush3.msra.mxu0 %v156_v56  ;;  %1685 = vmatpush3.msra.mxu1 %v189_v57  ;;  %v255_v56 = vld [vmem:[%s3215_s1 + $0x748] sm:$0xff]  ;;  %v237_v57 = vld [vmem:[%s3215_s1 + $0x6b8] sm:$0xff] }
  0x5a   :  { %1653 = vmatprep.subr.mxu0 %v171_v58  ;;  %1686 = vmatprep.subr.mxu1 %v204_v59  ;;  %v270_v58 = vld [vmem:[%s3215_s1 + $0x7c0] sm:$0xff]  ;;  %v221_v59 = vld [vmem:[%s3215_s1 + $0x638] sm:$0xff] }
  0x5b   :  { %1654 = vmatpush3.msra.mxu0 %v155_v60  ;;  %1687 = vmatpush3.msra.mxu1 %v188_v61  ;;  %v254_v60 = vld [vmem:[%s3215_s1 + $0x740] sm:$0xff]  ;;  %v236_v61 = vld [vmem:[%s3215_s1 + $0x6b0] sm:$0xff] }
  0x5c   :  { %1655 = vmatprep.subr.mxu0 %v170_v62  ;;  %1688 = vmatprep.subr.mxu1 %v203_v63  ;;  %v269_v62 = vld [vmem:[%s3215_s1 + $0x7b8] sm:$0xff]  ;;  %v220_v63 = vld [vmem:[%s3215_s1 + $0x630] sm:$0xff] }
  0x5d   :  { %1656 = vmatpush3.msra.mxu0 %v154_v0  ;;  %1689 = vmatpush3.msra.mxu1 %v187_v2  ;;  %v253_v0 = vld [vmem:[%s3215_s1 + $0x738] sm:$0xff]  ;;  %v268_v2 = vld [vmem:[%s3215_s1 + $0x7b0] sm:$0xff] }
  0x5e   :  { %1657 = vmatprep.subr.mxu0 %v169_v3  ;;  %1690 = vmatprep.subr.mxu1 %v202_v4  ;;  %v219_v3 = vld [vmem:[%s3215_s1 + $0x628] sm:$0xff]  ;;  %v252_v4 = vld [vmem:[%s3215_s1 + $0x730] sm:$0xff] }
  0x5f   :  { %1658 = vmatpush3.msra.mxu0 %v153_v5  ;;  %1691 = vmatpush3.msra.mxu1 %v186_v6  ;;  %v234_v5 = vld [vmem:[%s3215_s1 + $0x6a0] sm:$0xff]  ;;  %v267_v6 = vld [vmem:[%s3215_s1 + $0x7a8] sm:$0xff] }
  0x60   :  { %1659 = vmatprep.subr.mxu0 %v168_v7  ;;  %1692 = vmatprep.subr.mxu1 %v201_v9  ;;  %v218_v7 = vld [vmem:[%s3215_s1 + $0x620] sm:$0xff]  ;;  %v251_v9 = vld [vmem:[%s3215_s1 + $0x728] sm:$0xff] }
  0x61   :  { %1660 = vmatpush3.msra.mxu0 %v152_v10  ;;  %1693 = vmatpush3.msra.mxu1 %v185_v12  ;;  %v233_v10 = vld [vmem:[%s3215_s1 + $0x698] sm:$0xff] }
  0x62   :  { %1661 = vmatprep.subr.mxu0 %v167_v13  ;;  %1694 = vmatprep.subr.mxu1 %v200_v14  ;;  %v217_v12 = vld [vmem:[%s3215_s1 + $0x618] sm:$0xff]  ;;  %v250_v13 = vld [vmem:[%s3215_s1 + $0x720] sm:$0xff]  ;;  %v232_v14 = vld [vmem:[%s3215_s1 + $0x690] sm:$0xff] }
  0x63   :  { %1662 = vmatpush3.msra.mxu0 %v151_v15  ;;  %1695 = vmatpush3.msra.mxu1 %v184_v16  ;;  %v479_v15 = vcombine.high %v18_v8, %v18_v8  ;;  %v265_v16 = vld [vmem:[%s3215_s1 + $0x798] sm:$0xff] }
  0x64   :  { %1663 = vmatprep.subr.mxu0 %v166_v17  ;;  %1696 = vmatprep.subr.mxu1 %v199_v19  ;;  %v216_v17 = vld [vmem:[%s3215_s1 + $0x610] sm:$0xff]  ;;  %v249_v19 = vld [vmem:[%s3215_s1 + $0x718] sm:$0xff] }
  0x65   :  { %1664 = vmatpush3.msra.mxu0 %v150_v20  ;;  %908 = vmatprep.mubr.f32.mxu0 %v477_v21  ;;  %v231_v20 = vld [vmem:[%s3215_s1 + $0x688] sm:$0xff]  ;;  %v264_v21 = vld [vmem:[%s3215_s1 + $0x790] sm:$0xff] }
  0x66   :  { %1697 = vmatpush3.msra.mxu1 %v183_v22  ;;  %909 = vmatmul.mubr.f32.vlgmr.msra.gmra.mxu0 %v469_v11  ;;  %v266_v11 = vld [vmem:[%s3215_s1 + $0x7a0] sm:$0xff]  ;;  %v215_v22 = vld [vmem:[%s3215_s1 + $0x608] sm:$0xff] }
  0x67   :  { %1698 = vmatprep.subr.mxu1 %v198_v23  ;;  %1703 = vmatprep.subr.mxu0 %v245_v24  ;;  %v248_v23 = vld [vmem:[%s3215_s1 + $0x710] sm:$0xff]  ;;  %v230_v24 = vld [vmem:[%s3215_s1 + $0x680] sm:$0xff] }
  0x68   :  { %1699 = vmatpush3.msra.mxu1 %v182_v25  ;;  %978 = vmatprep.mubr.f32.mxu1 %v478_v26  ;;  %v493_v25 = vrot.slane %v479_v15, %v2126_v48  ;;  %v263_v26 = vld [vmem:[%s3215_s1 + $0x788] sm:$0xff] }
  0x69   :  { %1704 = vmatpush3.msra.mxu0 %v229_v27  ;;  %979 = vmatmul.mubr.f32.vlgmr.msra.gmra.mxu1 %v476_v18  ;;  %v486_v18 = vrot.slane %v18_v8, %v2126_v48  ;;  %v214_v27 = vld [vmem:[%s3215_s1 + $0x600] sm:$0xff] }
  0x6a   :  { %1705 = vmatprep.subr.mxu0 %v244_v28  ;;  %1738 = vmatprep.subr.mxu1 %v277_v29  ;;  %v247_v29 = vld [vmem:[%s3215_s1 + $0x708] sm:$0xff] }
  0x6b   :  { %1706 = vmatpush3.msra.mxu0 %v228_v30  ;;  %1739 = vmatpush3.msra.mxu1 %v261_v31  ;;  %v494_v28 = vcombine.high %v486_v18, %v486_v18  ;;  %v262_v30 = vld [vmem:[%s3215_s1 + $0x780] sm:$0xff]  ;;  %v309_v31 = vld [vmem:[%s3215_s1 + $0x8f8] sm:$0xff] }
  0x6c   :  { %1707 = vmatprep.subr.mxu0 %v243_v32  ;;  %1740 = vmatprep.subr.mxu1 %v276_v33  ;;  %v246_v32 = vld [vmem:[%s3215_s1 + $0x700] sm:$0xff]  ;;  %v495_v33 = vcombine.high %v493_v25, %v493_v25 }
  0x6d   :  { %1708 = vmatpush3.msra.mxu0 %v227_v34  ;;  %1741 = vmatpush3.msra.mxu1 %v260_v35 }
  0x6e   :  { %1709 = vmatprep.subr.mxu0 %v242_v36  ;;  %1742 = vmatprep.subr.mxu1 %v275_v37 }
  0x6f   :  { %1710 = vmatpush3.msra.mxu0 %v226_v38  ;;  %1743 = vmatpush3.msra.mxu1 %v259_v39 }
  0x70   :  { %1711 = vmatprep.subr.mxu0 %v241_v40  ;;  %1744 = vmatprep.subr.mxu1 %v274_v41 }
  0x71   :  { %1712 = vmatpush3.msra.mxu0 %v225_v42  ;;  %1745 = vmatpush3.msra.mxu1 %v258_v43 }
  0x72   :  { %1713 = vmatprep.subr.mxu0 %v240_v44  ;;  %1746 = vmatprep.subr.mxu1 %v273_v45 }
  0x73   :  { %1714 = vmatpush3.msra.mxu0 %v224_v46  ;;  %1747 = vmatpush3.msra.mxu1 %v257_v47 }
  0x74   :  { %1715 = vmatprep.subr.mxu0 %v239_v49  ;;  %1748 = vmatprep.subr.mxu1 %v272_v50 }
  0x75   :  { %1716 = vmatpush3.msra.mxu0 %v223_v51  ;;  %1749 = vmatpush3.msra.mxu1 %v256_v52 }
  0x76   :  { %1717 = vmatprep.subr.mxu0 %v238_v53  ;;  %1750 = vmatprep.subr.mxu1 %v271_v54 }
  0x77   :  { %1718 = vmatpush3.msra.mxu0 %v222_v55  ;;  %1751 = vmatpush3.msra.mxu1 %v255_v56 }
  0x78   :  { %1719 = vmatprep.subr.mxu0 %v237_v57  ;;  %1752 = vmatprep.subr.mxu1 %v270_v58 }
  0x79   :  { %1720 = vmatpush3.msra.mxu0 %v221_v59  ;;  %1753 = vmatpush3.msra.mxu1 %v254_v60 }
  0x7a   :  { %1721 = vmatprep.subr.mxu0 %v236_v61  ;;  %1754 = vmatprep.subr.mxu1 %v269_v62 }
  0x7b   :  { %1722 = vmatpush3.msra.mxu0 %v220_v63  ;;  %1755 = vmatpush3.msra.mxu1 %v253_v0 }
  0x7c   :  { %1723 = vmatprep.subr.mxu0 %v235_v1  ;;  %1756 = vmatprep.subr.mxu1 %v268_v2 }
  0x7d   :  { %1724 = vmatpush3.msra.mxu0 %v219_v3  ;;  %1757 = vmatpush3.msra.mxu1 %v252_v4 }
  0x7e   :  { %1725 = vmatprep.subr.mxu0 %v234_v5  ;;  %1758 = vmatprep.subr.mxu1 %v267_v6 }
  0x7f   :  { %1726 = vmatpush3.msra.mxu0 %v218_v7  ;;  %1759 = vmatpush3.msra.mxu1 %v251_v9 }
  0x80   :  { %1727 = vmatprep.subr.mxu0 %v233_v10  ;;  %1760 = vmatprep.subr.mxu1 %v266_v11 }
  0x81   :  { %1728 = vmatpush3.msra.mxu0 %v217_v12  ;;  %1761 = vmatpush3.msra.mxu1 %v250_v13 }
  0x82   :  { %1729 = vmatprep.subr.mxu0 %v232_v14  ;;  %1762 = vmatprep.subr.mxu1 %v265_v16 }
  0x83   :  { %1730 = vmatpush3.msra.mxu0 %v216_v17  ;;  %1763 = vmatpush3.msra.mxu1 %v249_v19 }
  0x84   :  { %1731 = vmatprep.subr.mxu0 %v231_v20  ;;  %1764 = vmatprep.subr.mxu1 %v264_v21 }
  0x85   :  { %1732 = vmatpush3.msra.mxu0 %v215_v22  ;;  %1765 = vmatpush3.msra.mxu1 %v248_v23 }
  0x86   :  { %1733 = vmatprep.subr.mxu0 %v230_v24  ;;  %1766 = vmatprep.subr.mxu1 %v263_v26 }
  0x87   :  { %1734 = vmatpush3.msra.mxu0 %v214_v27 }
  0x88   :  { %8 = vsyncpa [#allocation3], 0  ;;  %1048 = vmatprep.mubr.f32.mxu0 %v494_v28  ;;  %1767 = vmatpush3.msra.mxu1 %v247_v29  ;;  %v293_v34 = vld [vmem:[%s3215_s1 + $0x878] sm:$0xff]  ;;  %v308_v35 = vld [vmem:[%s3215_s1 + $0x8f0] sm:$0xff]  ;;  %vm1975_vm0 = vmmov 0   ;;  %vm561_vm1 = vcmask 523264  }
  0x89   :  { %1049 = vmatmul.mubr.f32.vlgmr.msra.gmra.mxu0 %v486_v18  ;;  %1768 = vmatprep.subr.mxu1 %v262_v30  ;;  %v341_v36 = vld [vmem:[%s3215_s1 + $0x9f8] sm:$0xff]  ;;  %v292_v37 = vld [vmem:[%s3215_s1 + $0x870] sm:$0xff]  ;;  %v307_v39 = vld [vmem:[%s3215_s1 + $0x8e8] sm:$0xff] }
  0x8a   :  { %1773 = vmatprep.subr.mxu0 %v309_v31  ;;  %1769 = vmatpush3.msra.mxu1 %v246_v32  ;;  %v325_v38 = vld [vmem:[%s3215_s1 + $0x978] sm:$0xff]  ;;  %v340_v40 = vld [vmem:[%s3215_s1 + $0x9f0] sm:$0xff]  ;;  %v291_v41 = vld [vmem:[%s3215_s1 + $0x868] sm:$0xff] }
  0x8b   :  { %1118 = vmatprep.mubr.f32.mxu1 %v495_v33  ;;  %1774 = vmatpush3.msra.mxu0 %v293_v34  ;;  %v324_v42 = vld [vmem:[%s3215_s1 + $0x970] sm:$0xff]  ;;  %v306_v43 = vld [vmem:[%s3215_s1 + $0x8e0] sm:$0xff]  ;;  %v339_v44 = vld [vmem:[%s3215_s1 + $0x9e8] sm:$0xff] }
  0x8c   :  { %1119 = vmatmul.mubr.f32.vlgmr.msra.gmra.mxu1 %v493_v25  ;;  %1775 = vmatprep.subr.mxu0 %v308_v35  ;;  %v290_v45 = vld [vmem:[%s3215_s1 + $0x860] sm:$0xff]  ;;  %v323_v46 = vld [vmem:[%s3215_s1 + $0x968] sm:$0xff]  ;;  %v305_v47 = vld [vmem:[%s3215_s1 + $0x8d8] sm:$0xff] }
  0x8d   :  { %1808 = vmatprep.subr.mxu1 %v341_v36  ;;  %1776 = vmatpush3.msra.mxu0 %v292_v37  ;;  %v338_v49 = vld [vmem:[%s3215_s1 + $0x9e0] sm:$0xff]  ;;  %v289_v50 = vld [vmem:[%s3215_s1 + $0x858] sm:$0xff]  ;;  %v304_v52 = vld [vmem:[%s3215_s1 + $0x8d0] sm:$0xff] }
  0x8e   :  { %1809 = vmatpush3.msra.mxu1 %v325_v38  ;;  %1777 = vmatprep.subr.mxu0 %v307_v39  ;;  %v322_v51 = vld [vmem:[%s3215_s1 + $0x960] sm:$0xff]  ;;  %v337_v53 = vld [vmem:[%s3215_s1 + $0x9d8] sm:$0xff]  ;;  %v288_v54 = vld [vmem:[%s3215_s1 + $0x850] sm:$0xff] }
  0x8f   :  { %1810 = vmatprep.subr.mxu1 %v340_v40  ;;  %1778 = vmatpush3.msra.mxu0 %v291_v41  ;;  %v321_v55 = vld [vmem:[%s3215_s1 + $0x958] sm:$0xff]  ;;  %v303_v56 = vld [vmem:[%s3215_s1 + $0x8c8] sm:$0xff]  ;;  %v336_v57 = vld [vmem:[%s3215_s1 + $0x9d0] sm:$0xff] }
  0x90   :  { %1811 = vmatpush3.msra.mxu1 %v324_v42  ;;  %1779 = vmatprep.subr.mxu0 %v306_v43  ;;  %v287_v58 = vld [vmem:[%s3215_s1 + $0x848] sm:$0xff]  ;;  %v320_v59 = vld [vmem:[%s3215_s1 + $0x950] sm:$0xff]  ;;  %v302_v60 = vld [vmem:[%s3215_s1 + $0x8c0] sm:$0xff] }
  0x91   :  { %1812 = vmatprep.subr.mxu1 %v339_v44  ;;  %1780 = vmatpush3.msra.mxu0 %v290_v45  ;;  %v335_v61 = vld [vmem:[%s3215_s1 + $0x9c8] sm:$0xff]  ;;  %v286_v62 = vld [vmem:[%s3215_s1 + $0x840] sm:$0xff]  ;;  %v301_v0 = vld [vmem:[%s3215_s1 + $0x8b8] sm:$0xff] }
  0x92   :  { %1813 = vmatpush3.msra.mxu1 %v323_v46  ;;  %1781 = vmatprep.subr.mxu0 %v305_v47  ;;  %v319_v63 = vld [vmem:[%s3215_s1 + $0x948] sm:$0xff]  ;;  %v334_v1 = vld [vmem:[%s3215_s1 + $0x9c0] sm:$0xff]  ;;  %v285_v2 = vld [vmem:[%s3215_s1 + $0x838] sm:$0xff] }
  0x93   :  { %1814 = vmatprep.subr.mxu1 %v338_v49  ;;  %1782 = vmatpush3.msra.mxu0 %v289_v50  ;;  %v318_v3 = vld [vmem:[%s3215_s1 + $0x940] sm:$0xff]  ;;  %v300_v4 = vld [vmem:[%s3215_s1 + $0x8b0] sm:$0xff]  ;;  %v333_v5 = vld [vmem:[%s3215_s1 + $0x9b8] sm:$0xff] }
  0x94   :  { %1815 = vmatpush3.msra.mxu1 %v322_v51  ;;  %1783 = vmatprep.subr.mxu0 %v304_v52  ;;  %v284_v6 = vld [vmem:[%s3215_s1 + $0x830] sm:$0xff]  ;;  %v317_v7 = vld [vmem:[%s3215_s1 + $0x938] sm:$0xff]  ;;  %v299_v8 = vld [vmem:[%s3215_s1 + $0x8a8] sm:$0xff] }
  0x95   :  { %1816 = vmatprep.subr.mxu1 %v337_v53  ;;  %1784 = vmatpush3.msra.mxu0 %v288_v54  ;;  %v332_v9 = vld [vmem:[%s3215_s1 + $0x9b0] sm:$0xff]  ;;  %v283_v10 = vld [vmem:[%s3215_s1 + $0x828] sm:$0xff]  ;;  %v298_v12 = vld [vmem:[%s3215_s1 + $0x8a0] sm:$0xff] }
  0x96   :  { %1817 = vmatpush3.msra.mxu1 %v321_v55  ;;  %1785 = vmatprep.subr.mxu0 %v303_v56  ;;  %v316_v11 = vld [vmem:[%s3215_s1 + $0x930] sm:$0xff]  ;;  %v331_v13 = vld [vmem:[%s3215_s1 + $0x9a8] sm:$0xff]  ;;  %v282_v14 = vld [vmem:[%s3215_s1 + $0x820] sm:$0xff] }
  0x97   :  { %1818 = vmatprep.subr.mxu1 %v336_v57  ;;  %1786 = vmatpush3.msra.mxu0 %v287_v58  ;;  %v19_v15 = vld [vmem:[%s3214_s0 + $0x20] sm:$0xff]  ;;  %v315_v16 = vld [vmem:[%s3215_s1 + $0x928] sm:$0xff]  ;;  %v297_v17 = vld [vmem:[%s3215_s1 + $0x898] sm:$0xff] }
  0x98   :  { %1819 = vmatpush3.msra.mxu1 %v320_v59  ;;  %1787 = vmatprep.subr.mxu0 %v302_v60  ;;  %v330_v18 = vld [vmem:[%s3215_s1 + $0x9a0] sm:$0xff]  ;;  %v281_v19 = vld [vmem:[%s3215_s1 + $0x818] sm:$0xff]  ;;  %v296_v21 = vld [vmem:[%s3215_s1 + $0x890] sm:$0xff]  ;;  %v496_v22 = vcombine.high %v19_v15, %v19_v15  ;;  %v503_v25 = vrot.slane %v19_v15, %v2126_v48 }
  0x99   :  { %1820 = vmatprep.subr.mxu1 %v335_v61  ;;  %1788 = vmatpush3.msra.mxu0 %v286_v62  ;;  %v314_v20 = vld [vmem:[%s3215_s1 + $0x920] sm:$0xff]  ;;  %v329_v23 = vld [vmem:[%s3215_s1 + $0x998] sm:$0xff]  ;;  %v280_v24 = vld [vmem:[%s3215_s1 + $0x810] sm:$0xff] }
  0x9a   :  { %1821 = vmatpush3.msra.mxu1 %v319_v63  ;;  %1789 = vmatprep.subr.mxu0 %v301_v0  ;;  %v313_v26 = vld [vmem:[%s3215_s1 + $0x918] sm:$0xff]  ;;  %v295_v27 = vld [vmem:[%s3215_s1 + $0x888] sm:$0xff]  ;;  %v328_v28 = vld [vmem:[%s3215_s1 + $0x990] sm:$0xff]  ;;  %v510_v32 = vrot.slane %v496_v22, %v2126_v48  ;;  %v511_v35 = vcombine.high %v503_v25, %v503_v25 }
  0x9b   :  { %1822 = vmatprep.subr.mxu1 %v334_v1  ;;  %1790 = vmatpush3.msra.mxu0 %v285_v2  ;;  %v279_v29 = vld [vmem:[%s3215_s1 + $0x808] sm:$0xff]  ;;  %v312_v30 = vld [vmem:[%s3215_s1 + $0x910] sm:$0xff]  ;;  %v294_v31 = vld [vmem:[%s3215_s1 + $0x880] sm:$0xff] }
  0x9c   :  { %1823 = vmatpush3.msra.mxu1 %v318_v3  ;;  %1791 = vmatprep.subr.mxu0 %v300_v4  ;;  %v327_v33 = vld [vmem:[%s3215_s1 + $0x988] sm:$0xff]  ;;  %v278_v34 = vld [vmem:[%s3215_s1 + $0x800] sm:$0xff]  ;;  %v373_v38 = vld [vmem:[%s3215_s1 + $0xaf8] sm:$0xff]  ;;  %v512_v40 = vcombine.high %v510_v32, %v510_v32 }
  0x9d   :  { %1824 = vmatprep.subr.mxu1 %v333_v5  ;;  %1792 = vmatpush3.msra.mxu0 %v284_v6  ;;  %v311_v36 = vld [vmem:[%s3215_s1 + $0x908] sm:$0xff]  ;;  %v326_v37 = vld [vmem:[%s3215_s1 + $0x980] sm:$0xff]  ;;  %v357_v41 = vld [vmem:[%s3215_s1 + $0xa78] sm:$0xff] }
  0x9e   :  { %1825 = vmatpush3.msra.mxu1 %v317_v7  ;;  %1793 = vmatprep.subr.mxu0 %v299_v8  ;;  %v310_v39 = vld [vmem:[%s3215_s1 + $0x900] sm:$0xff]  ;;  %v372_v42 = vld [vmem:[%s3215_s1 + $0xaf0] sm:$0xff]  ;;  %v405_v43 = vld [vmem:[%s3215_s1 + $0xbf8] sm:$0xff] }
  0x9f   :  { %1826 = vmatprep.subr.mxu1 %v332_v9  ;;  %1794 = vmatpush3.msra.mxu0 %v283_v10  ;;  %v356_v44 = vld [vmem:[%s3215_s1 + $0xa70] sm:$0xff]  ;;  %v389_v45 = vld [vmem:[%s3215_s1 + $0xb78] sm:$0xff]  ;;  %v371_v46 = vld [vmem:[%s3215_s1 + $0xae8] sm:$0xff] }
  0xa0   :  { %1827 = vmatpush3.msra.mxu1 %v316_v11  ;;  %1795 = vmatprep.subr.mxu0 %v298_v12  ;;  %v404_v47 = vld [vmem:[%s3215_s1 + $0xbf0] sm:$0xff]  ;;  %v355_v49 = vld [vmem:[%s3215_s1 + $0xa68] sm:$0xff]  ;;  %v370_v51 = vld [vmem:[%s3215_s1 + $0xae0] sm:$0xff] }
  0xa1   :  { %1828 = vmatprep.subr.mxu1 %v331_v13  ;;  %1796 = vmatpush3.msra.mxu0 %v282_v14  ;;  %v388_v50 = vld [vmem:[%s3215_s1 + $0xb70] sm:$0xff]  ;;  %v403_v52 = vld [vmem:[%s3215_s1 + $0xbe8] sm:$0xff]  ;;  %v354_v53 = vld [vmem:[%s3215_s1 + $0xa60] sm:$0xff] }
  0xa2   :  { %1829 = vmatpush3.msra.mxu1 %v315_v16  ;;  %1797 = vmatprep.subr.mxu0 %v297_v17  ;;  %v387_v54 = vld [vmem:[%s3215_s1 + $0xb68] sm:$0xff]  ;;  %v369_v55 = vld [vmem:[%s3215_s1 + $0xad8] sm:$0xff]  ;;  %v402_v56 = vld [vmem:[%s3215_s1 + $0xbe0] sm:$0xff] }
  0xa3   :  { %1830 = vmatprep.subr.mxu1 %v330_v18  ;;  %1798 = vmatpush3.msra.mxu0 %v281_v19  ;;  %v353_v57 = vld [vmem:[%s3215_s1 + $0xa58] sm:$0xff]  ;;  %v386_v58 = vld [vmem:[%s3215_s1 + $0xb60] sm:$0xff]  ;;  %v368_v59 = vld [vmem:[%s3215_s1 + $0xad0] sm:$0xff] }
  0xa4   :  { %1831 = vmatpush3.msra.mxu1 %v314_v20  ;;  %1799 = vmatprep.subr.mxu0 %v296_v21  ;;  %v401_v60 = vld [vmem:[%s3215_s1 + $0xbd8] sm:$0xff]  ;;  %v352_v61 = vld [vmem:[%s3215_s1 + $0xa50] sm:$0xff]  ;;  %v367_v63 = vld [vmem:[%s3215_s1 + $0xac8] sm:$0xff] }
  0xa5   :  { %1832 = vmatprep.subr.mxu1 %v329_v23  ;;  %1800 = vmatpush3.msra.mxu0 %v280_v24  ;;  %v385_v62 = vld [vmem:[%s3215_s1 + $0xb58] sm:$0xff]  ;;  %v400_v0 = vld [vmem:[%s3215_s1 + $0xbd0] sm:$0xff]  ;;  %v351_v1 = vld [vmem:[%s3215_s1 + $0xa48] sm:$0xff] }
  0xa6   :  { %1833 = vmatpush3.msra.mxu1 %v313_v26  ;;  %1801 = vmatprep.subr.mxu0 %v295_v27  ;;  %v384_v2 = vld [vmem:[%s3215_s1 + $0xb50] sm:$0xff]  ;;  %v366_v3 = vld [vmem:[%s3215_s1 + $0xac0] sm:$0xff]  ;;  %v399_v4 = vld [vmem:[%s3215_s1 + $0xbc8] sm:$0xff] }
  0xa7   :  { %1834 = vmatprep.subr.mxu1 %v328_v28  ;;  %1802 = vmatpush3.msra.mxu0 %v279_v29  ;;  %v350_v5 = vld [vmem:[%s3215_s1 + $0xa40] sm:$0xff]  ;;  %v383_v6 = vld [vmem:[%s3215_s1 + $0xb48] sm:$0xff]  ;;  %v365_v7 = vld [vmem:[%s3215_s1 + $0xab8] sm:$0xff] }
  0xa8   :  { %1835 = vmatpush3.msra.mxu1 %v312_v30  ;;  %1803 = vmatprep.subr.mxu0 %v294_v31  ;;  %v398_v8 = vld [vmem:[%s3215_s1 + $0xbc0] sm:$0xff]  ;;  %v349_v9 = vld [vmem:[%s3215_s1 + $0xa38] sm:$0xff]  ;;  %v364_v11 = vld [vmem:[%s3215_s1 + $0xab0] sm:$0xff] }
  0xa9   :  { %1836 = vmatprep.subr.mxu1 %v327_v33  ;;  %1804 = vmatpush3.msra.mxu0 %v278_v34  ;;  %v382_v10 = vld [vmem:[%s3215_s1 + $0xb40] sm:$0xff]  ;;  %v397_v12 = vld [vmem:[%s3215_s1 + $0xbb8] sm:$0xff]  ;;  %v348_v13 = vld [vmem:[%s3215_s1 + $0xa30] sm:$0xff] }
  0xaa   :  { %1188 = vmatprep.mubr.f32.mxu0 %v511_v35  ;;  %1837 = vmatpush3.msra.mxu1 %v311_v36  ;;  %v381_v14 = vld [vmem:[%s3215_s1 + $0xb38] sm:$0xff]  ;;  %v363_v15 = vld [vmem:[%s3215_s1 + $0xaa8] sm:$0xff]  ;;  %v396_v16 = vld [vmem:[%s3215_s1 + $0xbb0] sm:$0xff] }
  0xab   :  { %1189 = vmatmul.mubr.f32.vlgmr.msra.gmra.mxu0 %v503_v25  ;;  %1838 = vmatprep.subr.mxu1 %v326_v37  ;;  %v347_v17 = vld [vmem:[%s3215_s1 + $0xa28] sm:$0xff]  ;;  %v380_v18 = vld [vmem:[%s3215_s1 + $0xb30] sm:$0xff]  ;;  %v362_v19 = vld [vmem:[%s3215_s1 + $0xaa0] sm:$0xff] }
  0xac   :  { %1843 = vmatprep.subr.mxu0 %v373_v38  ;;  %1839 = vmatpush3.msra.mxu1 %v310_v39  ;;  %v395_v20 = vld [vmem:[%s3215_s1 + $0xba8] sm:$0xff]  ;;  %v346_v21 = vld [vmem:[%s3215_s1 + $0xa20] sm:$0xff]  ;;  %v361_v24 = vld [vmem:[%s3215_s1 + $0xa98] sm:$0xff] }
  0xad   :  { %1258 = vmatprep.mubr.f32.mxu1 %v512_v40  ;;  %1844 = vmatpush3.msra.mxu0 %v357_v41  ;;  %v20_v22 = vld [vmem:[%s3214_s0 + $0x28] sm:$0xff]  ;;  %v394_v25 = vld [vmem:[%s3215_s1 + $0xba0] sm:$0xff]  ;;  %v345_v26 = vld [vmem:[%s3215_s1 + $0xa18] sm:$0xff] }
  0xae   :  { %1259 = vmatmul.mubr.f32.vlgmr.msra.gmra.mxu1 %v510_v32  ;;  %1845 = vmatprep.subr.mxu0 %v372_v42  ;;  %v379_v23 = vld [vmem:[%s3215_s1 + $0xb28] sm:$0xff]  ;;  %v378_v27 = vld [vmem:[%s3215_s1 + $0xb20] sm:$0xff]  ;;  %v360_v28 = vld [vmem:[%s3215_s1 + $0xa90] sm:$0xff]  ;;  %v513_v29 = vcombine.high %v20_v22, %v20_v22  ;;  %v520_v32 = vrot.slane %v20_v22, %v2126_v48 }
  0xaf   :  { %1878 = vmatprep.subr.mxu1 %v405_v43  ;;  %1846 = vmatpush3.msra.mxu0 %v356_v44  ;;  %v393_v30 = vld [vmem:[%s3215_s1 + $0xb98] sm:$0xff]  ;;  %v344_v31 = vld [vmem:[%s3215_s1 + $0xa10] sm:$0xff]  ;;  %v359_v34 = vld [vmem:[%s3215_s1 + $0xa88] sm:$0xff] }
  0xb0   :  { %1879 = vmatpush3.msra.mxu1 %v389_v45  ;;  %1847 = vmatprep.subr.mxu0 %v371_v46  ;;  %v377_v33 = vld [vmem:[%s3215_s1 + $0xb18] sm:$0xff]  ;;  %v392_v35 = vld [vmem:[%s3215_s1 + $0xb90] sm:$0xff]  ;;  %v343_v36 = vld [vmem:[%s3215_s1 + $0xa08] sm:$0xff]  ;;  %v527_v39 = vrot.slane %v513_v29, %v2126_v48  ;;  %v528_v42 = vcombine.high %v520_v32, %v520_v32 }
  0xb1   :  { %1880 = vmatprep.subr.mxu1 %v404_v47  ;;  %1848 = vmatpush3.msra.mxu0 %v355_v49  ;;  %v376_v37 = vld [vmem:[%s3215_s1 + $0xb10] sm:$0xff]  ;;  %v358_v38 = vld [vmem:[%s3215_s1 + $0xa80] sm:$0xff]  ;;  %v391_v40 = vld [vmem:[%s3215_s1 + $0xb88] sm:$0xff]  ;;  %v1974_v47 = vmov 0.0  }
  0xb2   :  { %1881 = vmatpush3.msra.mxu1 %v388_v50  ;;  %1849 = vmatprep.subr.mxu0 %v370_v51  ;;  %v342_v41 = vld [vmem:[%s3215_s1 + $0xa00] sm:$0xff]  ;;  %v375_v43 = vld [vmem:[%s3215_s1 + $0xb08] sm:$0xff]  ;;  %v529_v45 = vcombine.high %v527_v39, %v527_v39  ;;  %v413_v46 = vld [vmem:[%s3215_s1 + $0xc38] sm:$0xff] }
  0xb3   :  { %1882 = vmatprep.subr.mxu1 %v403_v52  ;;  %1850 = vmatpush3.msra.mxu0 %v354_v53  ;;  %v390_v48 = vld [vmem:[%s3215_s1 + $0xb80] sm:$0xff]  ;;  %v412_v49 = vld [vmem:[%s3215_s1 + $0xc30] sm:$0xff]  ;;  %v411_v50 = vld [vmem:[%s3215_s1 + $0xc28] sm:$0xff] }
  0xb4   :  { %1883 = vmatpush3.msra.mxu1 %v387_v54  ;;  %1851 = vmatprep.subr.mxu0 %v369_v55  ;;  %v374_v44 = vld [vmem:[%s3215_s1 + $0xb00] sm:$0xff]  ;;  %v409_v52 = vld [vmem:[%s3215_s1 + $0xc18] sm:$0xff]  ;;  %v408_v53 = vld [vmem:[%s3215_s1 + $0xc10] sm:$0xff] }
  0xb5   :  { %1884 = vmatprep.subr.mxu1 %v402_v56  ;;  %1852 = vmatpush3.msra.mxu0 %v353_v57  ;;  %v410_v51 = vld [vmem:[%s3215_s1 + $0xc20] sm:$0xff]  ;;  %v407_v54 = vld [vmem:[%s3215_s1 + $0xc08] sm:$0xff]  ;;  %v1491_v56 = vld.sshfl [vmem:[%s3214_s0 + $0x30] sm:$0x3 pattern:$0x76325410] }
  0xb6   :  { %1885 = vmatpush3.msra.mxu1 %v386_v58  ;;  %1853 = vmatprep.subr.mxu0 %v368_v59  ;;  %v406_v55 = vld [vmem:[%s3215_s1 + $0xc00] sm:$0xff]  ;;  %s1976_s0 = smov [#allocation2]  }
  0xb7   :  { %1886 = vmatprep.subr.mxu1 %v401_v60  ;;  %1854 = vmatpush3.msra.mxu0 %v352_v61  ;;  %s1482_s1 = sshll.u32 %s1976_s0, 4  ;;  %s1483_s1 = int_to_ptr.vmem [resolvable:$true] %s1482_s1 }
  0xb8   :  { %1887 = vmatpush3.msra.mxu1 %v385_v62  ;;  %1855 = vmatprep.subr.mxu0 %v367_v63  ;;  %v1490_v62 = vld [vmem:[%s3216_s2] ss:$0 sm:$0xff]  ;;  %s1951_s2 = scalar_lea.vmem %s1483_s1, 32  ;;  %p1956_p1 = scmp.lt.s32.totalorder %s1483_s1, %s1483_s1 }
  0xb9   :  { %1888 = vmatprep.subr.mxu1 %v400_v0  ;;  %1856 = vmatpush3.msra.mxu0 %v351_v1  ;;  %p1952_p0 = scmp.ne.s32.totalorder %s1483_s1, %s1951_s2  ;;  %p1957_p2 = scmp.lt.s32.totalorder %s1951_s2, %s1951_s2 }
  0xba   :  { %1889 = vmatpush3.msra.mxu1 %v384_v2  ;;  %1857 = vmatprep.subr.mxu0 %v366_v3 }
  0xbb   :  { %1890 = vmatprep.subr.mxu1 %v399_v4  ;;  %1858 = vmatpush3.msra.mxu0 %v350_v5  ;;  %p1958_p3 = por %p1957_p2, %p1956_p1 }
  0xbc   :  { %1891 = vmatpush3.msra.mxu1 %v383_v6  ;;  %1859 = vmatprep.subr.mxu0 %v365_v7 }
  0xbd   :  { %1892 = vmatprep.subr.mxu1 %v398_v8  ;;  %1860 = vmatpush3.msra.mxu0 %v349_v9  ;;  %p1959_p4 = pnand %p1958_p3, %p1952_p0 }
  0xbe   :  { %1893 = vmatpush3.msra.mxu1 %v382_v10  ;;  %1861 = vmatprep.subr.mxu0 %v364_v11 }
  0xbf   :  { %1894 = vmatprep.subr.mxu1 %v397_v12  ;;  %1862 = vmatpush3.msra.mxu0 %v348_v13 }
  0xc0   :  { %1895 = vmatpush3.msra.mxu1 %v381_v14  ;;  %1863 = vmatprep.subr.mxu0 %v363_v15 }
  0xc1   :  { %1896 = vmatprep.subr.mxu1 %v396_v16  ;;  %1864 = vmatpush3.msra.mxu0 %v347_v17 }
  0xc2   :  { %1897 = vmatpush3.msra.mxu1 %v380_v18  ;;  %1865 = vmatprep.subr.mxu0 %v362_v19 }
  0xc3   :  { %1898 = vmatprep.subr.mxu1 %v395_v20  ;;  %1866 = vmatpush3.msra.mxu0 %v346_v21 }
  0xc4   :  { %1899 = vmatpush3.msra.mxu1 %v379_v23  ;;  %1867 = vmatprep.subr.mxu0 %v361_v24 }
  0xc5   :  { %1900 = vmatprep.subr.mxu1 %v394_v25  ;;  %1868 = vmatpush3.msra.mxu0 %v345_v26 }
  0xc6   :  { %1901 = vmatpush3.msra.mxu1 %v378_v27  ;;  %1869 = vmatprep.subr.mxu0 %v360_v28 }
  0xc7   :  { %1902 = vmatprep.subr.mxu1 %v393_v30  ;;  %1870 = vmatpush3.msra.mxu0 %v344_v31 }
  0xc8   :  { %1903 = vmatpush3.msra.mxu1 %v377_v33  ;;  %1871 = vmatprep.subr.mxu0 %v359_v34 }
  0xc9   :  { %1904 = vmatprep.subr.mxu1 %v392_v35  ;;  %1872 = vmatpush3.msra.mxu0 %v343_v36 }
  0xca   :  { %1905 = vmatpush3.msra.mxu1 %v376_v37  ;;  %1873 = vmatprep.subr.mxu0 %v358_v38 }
  0xcb   :  { %1906 = vmatprep.subr.mxu1 %v391_v40  ;;  %1874 = vmatpush3.msra.mxu0 %v342_v41 }
  0xcc   :  { %1328 = vmatprep.mubr.f32.mxu0 %v528_v42  ;;  %1907 = vmatpush3.msra.mxu1 %v375_v43 }
  0xcd   :  { %1329 = vmatmul.mubr.f32.vlgmr.msra.gmra.mxu0 %v520_v32  ;;  %1908 = vmatprep.subr.mxu1 %v390_v48 }
  0xce   :  { %1922 = vmatprep.subr.mxu0 %v1974_v47  ;;  %1909 = vmatpush3.msra.mxu1 %v374_v44 }
  0xcf   :  { %1398 = vmatprep.mubr.f32.mxu1 %v529_v45  ;;  %1923 = vmatpush3.msra.mxu0 %v413_v46 }
  0xd0   :  { %1399 = vmatmul.mubr.f32.vlgmr.msra.gmra.mxu1 %v527_v39  ;;  %1924 = vmatprep.subr.mxu0 %v1974_v47 }
  0xd1   :  { %1925 = vmatpush3.msra.mxu0 %v412_v49  ;;  %1938 = vmatprep.mubr.msk.f32.mxu0 %vm1975_vm0, %v1974_v47 }
  0xd2   :  { %1926 = vmatprep.subr.mxu0 %v1974_v47 }
  0xd3   :  { %1927 = vmatpush3.msra.mxu0 %v411_v50 }
  0xd4   :  { %1928 = vmatprep.subr.mxu0 %v1974_v47 }
  0xd5   :  { %1929 = vmatpush3.msra.mxu0 %v410_v51 }
  0xd6   :  { %1930 = vmatprep.subr.mxu0 %v1974_v47 }
  0xd7   :  { %1931 = vmatpush3.msra.mxu0 %v409_v52 }
  0xd8   :  { %1932 = vmatprep.subr.mxu0 %v1974_v47 }
  0xd9   :  { %1933 = vmatpush3.msra.mxu0 %v408_v53 }
  0xda   :  { %1934 = vmatprep.subr.mxu0 %v1974_v47 }
  0xdb   :  { %1935 = vmatpush3.msra.mxu0 %v407_v54 }
  0xdc   :  { %1936 = vmatprep.subr.mxu0 %v1974_v47 }
  0xdd   :  { %1937 = vmatpush3.msra.mxu0 %v406_v55 }
  0xde   :  { %1939 = vmatmul.mubr.msk.f32.vlgmr.msra.gmra.mxu0 %vm561_vm1, %v1491_v56 }
  0xe2   :  { %v1525_v57 = vpop.f32.mrf.mxu0 }
  0xe4   :  { %v1526_v58 = vpop.f32.mrf.mxu0 }
  0xe5   :  { %v1560_v59 = vpop.f32.mrf.mxu1  ;;  %v1527_v61 = vadd.f32 %v1526_v58, %v1525_v57 }
  0xe7   :  { %v1561_v63 = vpop.f32.mrf.mxu1  ;;  %v631_v2 = vadd.f32 %v1527_v61, %v1490_v62 }
  0xe8   :  { %v1562_v3 = vadd.f32 %v1561_v63, %v1560_v59 }
  0xea   :  { %v701_v7 = vadd.f32 %v1562_v3, %v631_v2 }
 0x104   :  { %v1595_v60 = vpop.f32.mrf.mxu0 }
 0x106   :  { %v1596_v0 = vpop.f32.mrf.mxu0 }
 0x107   :  { %v1630_v1 = vpop.f32.mrf.mxu1  ;;  %v1597_v5 = vadd.f32 %v1596_v0, %v1595_v60 }
 0x109   :  { %v1631_v6 = vpop.f32.mrf.mxu1  ;;  %v771_v10 = vadd.f32 %v1597_v5, %v701_v7 }
 0x10a   :  { %v1632_v11 = vadd.f32 %v1631_v6, %v1630_v1 }
 0x10c   :  { %v841_v15 = vadd.f32 %v1632_v11, %v771_v10 }
 0x126   :  { %v1665_v4 = vpop.f32.mrf.mxu0 }
 0x128   :  { %v1666_v8 = vpop.f32.mrf.mxu0 }
 0x129   :  { %v1700_v9 = vpop.f32.mrf.mxu1  ;;  %v1667_v13 = vadd.f32 %v1666_v8, %v1665_v4 }
 0x12b   :  { %v1701_v14 = vpop.f32.mrf.mxu1  ;;  %v911_v18 = vadd.f32 %v1667_v13, %v841_v15 }
 0x12c   :  { %v1702_v19 = vadd.f32 %v1701_v14, %v1700_v9 }
 0x12e   :  { %v981_v23 = vadd.f32 %v1702_v19, %v911_v18 }
 0x149   :  { %v1735_v12 = vpop.f32.mrf.mxu0 }
 0x14b   :  { %v1736_v16 = vpop.f32.mrf.mxu0 }
 0x14c   :  { %v1770_v17 = vpop.f32.mrf.mxu1  ;;  %v1737_v21 = vadd.f32 %v1736_v16, %v1735_v12 }
 0x14e   :  { %v1771_v22 = vpop.f32.mrf.mxu1  ;;  %v1051_v26 = vadd.f32 %v1737_v21, %v981_v23 }
 0x14f   :  { %v1772_v27 = vadd.f32 %v1771_v22, %v1770_v17 }
 0x151   :  { %v1121_v31 = vadd.f32 %v1772_v27, %v1051_v26 }
 0x16b   :  { %v1805_v20 = vpop.f32.mrf.mxu0 }
 0x16d   :  { %v1806_v24 = vpop.f32.mrf.mxu0 }
 0x16e   :  { %v1840_v25 = vpop.f32.mrf.mxu1  ;;  %v1807_v29 = vadd.f32 %v1806_v24, %v1805_v20 }
 0x170   :  { %v1841_v30 = vpop.f32.mrf.mxu1  ;;  %v1191_v34 = vadd.f32 %v1807_v29, %v1121_v31 }
 0x171   :  { %v1842_v35 = vadd.f32 %v1841_v30, %v1840_v25 }
 0x173   :  { %v1261_v38 = vadd.f32 %v1842_v35, %v1191_v34 }
 0x18d   :  { %v1875_v28 = vpop.f32.mrf.mxu0 }
 0x18f   :  { %v1876_v32 = vpop.f32.mrf.mxu0 }
 0x190   :  { %v1910_v33 = vpop.f32.mrf.mxu1  ;;  %v1877_v36 = vadd.f32 %v1876_v32, %v1875_v28 }
 0x192   :  { %v1911_v37 = vpop.f32.mrf.mxu1  ;;  %v1331_v39 = vadd.f32 %v1877_v36, %v1261_v38 }
 0x193   :  { %v1912_v40 = vadd.f32 %v1911_v37, %v1910_v33 }
 0x195   :  { %v1401_v41 = vadd.f32 %v1912_v40, %v1331_v39 }
 0x19e   :  { %v1470_v42 = vpop.f32.mrf.mxu0 }
 0x19f   :  { %v1471_v43 = vadd.f32 %v1470_v42, %v1401_v41 }
 0x1a0   :  { %v1940_v48 = vpop.f32.mrf.mxu0 }
 0x1a1   :  { %v1474_v44 = vmax.f32 %v1471_v43, 0.0 }
 0x1a3   :  { %1475 = vst [vmem:[#allocation2] sm:$0x3] %v1474_v44 }
 0x1a4   :  { %1962 = shalt.err (!%p1959_p4)
}
 0x1a5   :  { %1485 = dma.vmem_to_hbm [thread:$0]  %s1483_s1, 32, %s3217_s3, [#allocation3]  }
 0x1a6   :  { %1971 = dma.done.wait [#allocation3], 32  }
 0x1a7   :  { %1972 = vsyncadd [#allocation3], 4294967264 }
 0x1a8   :  { %1489 = vsyncpa [#allocation3], 1 }

</bundles_post_ra>
